<compile_context>
chip_gen: v7x
topology: tpu7x:2x2x1
jax: 0.10.0
libtpu: 0.0.40
codegen_flags: <defaults>
</compile_context>

<pallas_src>
import functools

import jax
import jax.numpy as jnp
from jax.experimental import pallas as pl
from jax.experimental.pallas import tpu as pltpu


def siren_kernel(x_ref,
                 w1_ref, b1_ref,
                 w2_ref, b2_ref,
                 w3_ref, b3_ref,
                 w4_ref, b4_ref,
                 w5_ref, b5_ref,
                 o_ref):
    """One row-tile of the fused 5-layer SIREN MLP (weights are pre-packed)."""
    x = x_ref[...]
    # block1: Linear + Sine(w0=30); the 30x scale is folded into w1/b1.
    h = jnp.sin(jnp.dot(x, w1_ref[...], preferred_element_type=jnp.float32)
                + b1_ref[...])
    # block2: 3x (Linear + Sine), then final Linear(H, 1).
    h = jnp.sin(jnp.dot(h, w2_ref[...], preferred_element_type=jnp.float32)
                + b2_ref[...])
    h = jnp.sin(jnp.dot(h, w3_ref[...], preferred_element_type=jnp.float32)
                + b3_ref[...])
    h = jnp.sin(jnp.dot(h, w4_ref[...], preferred_element_type=jnp.float32)
                + b4_ref[...])
    o_ref[...] = (jnp.dot(h, w5_ref[...], preferred_element_type=jnp.float32)
                  + b5_ref[...]).astype(o_ref.dtype)
    # TODO(synk): lane-dense output ((tm,pack) -> (tm*pack//128,128) reshape before the
    # store) would replace masked vst.msk stores with full-width vst (few-% win); skipped
    # because Mosaic value-reshape support across both tiled dims is version-dependent.


def choose_pack(d_in, hidden_dim):
    """How many samples to pack side-by-side onto the 128 lanes."""
    m = max(d_in, hidden_dim)
    return 128 // m if (m <= 128 and 128 % m == 0) else 1


def pack_siren_params(params, pack):
    """One-time parameter prep: fold w0=30 into layer 1, block-diagonally pack.

    Call ONCE per parameter set and reuse the result across forward calls
    (re-running the krons + extra HBM round trips every call is wasted work).
    Weights in `params` are stored transposed: (in_features, out_features).
    """
    eye = jnp.eye(pack, dtype=jnp.float32)
    bd = lambda w: jnp.kron(eye, w.astype(jnp.float32))     # (pack*in, pack*out)
    tb = lambda b: jnp.tile(b.astype(jnp.float32), (1, pack))  # (1, pack*out)
    return {
        "w1": bd(params["w1"] * 30.0), "b1": tb(params["b1"] * 30.0),
        "w2": bd(params["w2"]),        "b2": tb(params["b2"]),
        "w3": bd(params["w3"]),        "b3": tb(params["b3"]),
        "w4": bd(params["w4"]),        "b4": tb(params["b4"]),
        "w5": bd(params["w5"]),        "b5": tb(params["b5"]),
    }


@functools.partial(jax.jit, static_argnames=("block_rows",))
def siren_forward(x, pp, block_rows=2048):
    """Fused SIREN forward.

    x: (N, latent+3) float32.  pp: output of pack_siren_params().
    block_rows: target packed rows per grid step (= block_rows*pack samples).
      At 2048 packed rows the per-step VMEM footprint is ~6 MB (x tile 1 MB x2
      buffers, ~0.5 MB packed weights x2, a few 1 MB f32 activation slabs) --
      comfortably inside even v5e's 16 MiB default scoped VMEM and v7x's
      32 MiB, while each step carries enough compute to hide the ~0.35 us
      per-grid-step pipeline overhead.
    """
    N, d_in = x.shape
    pack = pp["w5"].shape[1]
    assert pp["w1"].shape[0] == pack * d_in, "packed params do not match input width"

    # ---- grid / tile selection: as few, as large tiles as possible; pad the
    # batch instead of searching for divisors.  No forced >=2 split (pure
    # overhead on single-TC v5e/v6e); when >1 step is needed keep the grid
    # even so v7x's two TensorCores get balanced work.
    n_p = -(-N // pack)                        # packed rows needed
    grid = max(1, -(-n_p // block_rows))
    if grid > 1 and grid % 2:
        grid += 1                              # even grid for v7x megacore balance
    tm_p = -(-n_p // grid)                     # rows per step ...
    tm_p = -(-tm_p // 8) * 8                   # ... sublane (8) aligned
    n_pad_p = grid * tm_p

    pad = n_pad_p * pack - N
    if pad:
        x = jnp.concatenate([x, jnp.zeros((pad, d_in), x.dtype)], axis=0)
    xp = x.reshape(n_pad_p, pack * d_in)       # `pack` samples per lane-row

    full = lambda a: pl.BlockSpec(a.shape, lambda i: (0,) * a.ndim)

    out = pl.pallas_call(
        siren_kernel,
        out_shape=jax.ShapeDtypeStruct((n_pad_p, pack), jnp.float32),
        grid_spec=pltpu.PrefetchScalarGridSpec(
            num_scalar_prefetch=0,
            grid=(grid,),
            in_specs=[
                pl.BlockSpec((tm_p, pack * d_in), lambda i: (i, 0)),  # x tile
                full(pp["w1"]), full(pp["b1"]),
                full(pp["w2"]), full(pp["b2"]),
                full(pp["w3"]), full(pp["b3"]),
                full(pp["w4"]), full(pp["b4"]),
                full(pp["w5"]), full(pp["b5"]),
            ],
            out_specs=pl.BlockSpec((tm_p, pack), lambda i: (i, 0)),
        ),
        compiler_params=pltpu.CompilerParams(
            dimension_semantics=("parallel",)),
    )(xp, pp["w1"], pp["b1"], pp["w2"], pp["b2"], pp["w3"], pp["b3"],
      pp["w4"], pp["b4"], pp["w5"], pp["b5"])

    # (n_pad_p, pack) row-major flatten restores original sample order; drop padding.
    return out.reshape(-1)[:N]


def init_params(key, latent_size, hidden_dim):
    """Deterministic init mirroring the PyTorch module's init distributions.

    - block1 Linear: first_layer_sine_init -> U(-1/fan_in, 1/fan_in) weight,
      default U(-1/sqrt(fan_in), 1/sqrt(fan_in)) bias.
    - block2 Linears: default PyTorch Linear init.
    Weights are stored TRANSPOSED: (in_features, out_features).
    """
    d_in = latent_size + 3
    keys = jax.random.split(key, 10)

    def uniform(k, shape, bound):
        return jax.random.uniform(k, shape, jnp.float32, -bound, bound)

    params = {}
    params["w1"] = uniform(keys[0], (d_in, hidden_dim), 1.0 / d_in)
    params["b1"] = uniform(keys[1], (1, hidden_dim), 1.0 / jnp.sqrt(d_in))
    bh = 1.0 / jnp.sqrt(hidden_dim)
    params["w2"] = uniform(keys[2], (hidden_dim, hidden_dim), bh)
    params["b2"] = uniform(keys[3], (1, hidden_dim), bh)
    params["w3"] = uniform(keys[4], (hidden_dim, hidden_dim), bh)
    params["b3"] = uniform(keys[5], (1, hidden_dim), bh)
    params["w4"] = uniform(keys[6], (hidden_dim, hidden_dim), bh)
    params["b4"] = uniform(keys[7], (1, hidden_dim), bh)
    params["w5"] = uniform(keys[8], (hidden_dim, 1), bh)
    params["b5"] = uniform(keys[9], (1, 1), bh)
    return params


def siren_reference(x, p):
    """Pure-JAX reference of the same forward pass (unpacked params)."""
    h = jnp.sin(30.0 * (x @ p["w1"] + p["b1"]))
    h = jnp.sin(h @ p["w2"] + p["b2"])
    h = jnp.sin(h @ p["w3"] + p["b3"])
    h = jnp.sin(h @ p["w4"] + p["b4"])
    return (h @ p["w5"] + p["b5"]).squeeze(-1)


if __name__ == "__main__":
    # Small shapes consistent with the module: latent_size=29 -> input dim 32,
    # hidden_dim=32 (packs 4 samples per 128-lane row).
    latent_size = 29
    hidden_dim = 32

    key = jax.random.PRNGKey(0)
    k_x, k_p = jax.random.split(key)
    params = init_params(k_p, latent_size, hidden_dim)

    # One-time weight packing, reused across forward calls.
    pack = choose_pack(latent_size + 3, hidden_dim)
    packed = pack_siren_params(params, pack)
    packed = jax.block_until_ready(packed)

    # 1) N a multiple of the pack factor (single big tile, grid=1).
    N = 256
    x = jax.random.normal(k_x, (N, latent_size + 3), jnp.float32)
    out = jax.block_until_ready(siren_forward(x, packed))
    ref = siren_reference(x, params)
    assert out.shape == (N,), out.shape
    assert jnp.allclose(out, ref, atol=1e-4, rtol=1e-4), "mismatch vs reference"

    # 2) Awkward N exercises the padding path (no divisor collapse / pack fallback).
    N2 = 250
    x2 = x[:N2]
    out2 = jax.block_until_ready(siren_forward(x2, packed))
    ref2 = siren_reference(x2, params)
    assert out2.shape == (N2,), out2.shape
    assert jnp.allclose(out2, ref2, atol=1e-4, rtol=1e-4), "mismatch vs reference (padded)"

    print("KERNEL_OK")
</pallas_src>

<mosaic_0001>
module attributes {stable_mosaic.version = 11 : i64} {
  func.func @siren_kernel(%arg0: i32, %arg1: memref<64x128xf32, #tpu.memory_space<vmem>>, %arg2: memref<128x128xf32, #tpu.memory_space<vmem>>, %arg3: memref<1x128xf32, #tpu.memory_space<vmem>>, %arg4: memref<128x128xf32, #tpu.memory_space<vmem>>, %arg5: memref<1x128xf32, #tpu.memory_space<vmem>>, %arg6: memref<128x128xf32, #tpu.memory_space<vmem>>, %arg7: memref<1x128xf32, #tpu.memory_space<vmem>>, %arg8: memref<128x128xf32, #tpu.memory_space<vmem>>, %arg9: memref<1x128xf32, #tpu.memory_space<vmem>>, %arg10: memref<128x4xf32, #tpu.memory_space<vmem>>, %arg11: memref<1x4xf32, #tpu.memory_space<vmem>>, %arg12: memref<64x4xf32, #tpu.memory_space<vmem>>) attributes {dimension_semantics = [#tpu.dimension_semantics<parallel>], iteration_bounds = array<i64: 1>, scalar_prefetch = 0 : i64, scratch_operands = 0 : i64, tpu.core_type = #tpu.core_type<tc>, window_params = [{transform_indices = @transform_0, window_bounds = array<i64: 64, 128>}, {pipeline_mode = #tpu.pipeline_mode<synchronous>, transform_indices = @transform_1, window_bounds = array<i64: 128, 128>}, {pipeline_mode = #tpu.pipeline_mode<synchronous>, transform_indices = @transform_2, window_bounds = array<i64: 1, 128>}, {pipeline_mode = #tpu.pipeline_mode<synchronous>, transform_indices = @transform_3, window_bounds = array<i64: 128, 128>}, {pipeline_mode = #tpu.pipeline_mode<synchronous>, transform_indices = @transform_4, window_bounds = array<i64: 1, 128>}, {pipeline_mode = #tpu.pipeline_mode<synchronous>, transform_indices = @transform_5, window_bounds = array<i64: 128, 128>}, {pipeline_mode = #tpu.pipeline_mode<synchronous>, transform_indices = @transform_6, window_bounds = array<i64: 1, 128>}, {pipeline_mode = #tpu.pipeline_mode<synchronous>, transform_indices = @transform_7, window_bounds = array<i64: 128, 128>}, {pipeline_mode = #tpu.pipeline_mode<synchronous>, transform_indices = @transform_8, window_bounds = array<i64: 1, 128>}, {pipeline_mode = #tpu.pipeline_mode<synchronous>, transform_indices = @transform_9, window_bounds = array<i64: 128, 4>}, {pipeline_mode = #tpu.pipeline_mode<synchronous>, transform_indices = @transform_10, window_bounds = array<i64: 1, 4>}, {transform_indices = @transform_11, window_bounds = array<i64: 64, 4>}]} {
    %c0 = arith.constant 0 : index
    %c0_0 = arith.constant 0 : index
    %0 = vector.load %arg1[%c0, %c0_0] : memref<64x128xf32, #tpu.memory_space<vmem>>, vector<64x128xf32>
    %c0_1 = arith.constant 0 : index
    %c0_2 = arith.constant 0 : index
    %1 = vector.load %arg2[%c0_1, %c0_2] : memref<128x128xf32, #tpu.memory_space<vmem>>, vector<128x128xf32>
    %cst = arith.constant dense<0.000000e+00> : vector<64x128xf32>
    %2 = tpu.matmul %0, %1, %cst {dimension_numbers = #tpu.dot_dimension_numbers<[1], [0], [0], [1], [0, 0, 1, 1], [], []>} : vector<64x128xf32>, vector<128x128xf32>, vector<64x128xf32> -> vector<64x128xf32>
    %c0_3 = arith.constant 0 : index
    %c0_4 = arith.constant 0 : index
    %3 = vector.load %arg3[%c0_3, %c0_4] : memref<1x128xf32, #tpu.memory_space<vmem>>, vector<1x128xf32>
    %4 = vector.broadcast %3 : vector<1x128xf32> to vector<64x128xf32>
    %5 = arith.addf %2, %4 : vector<64x128xf32>
    %6 = math.sin %5 : vector<64x128xf32>
    %c0_5 = arith.constant 0 : index
    %c0_6 = arith.constant 0 : index
    %7 = vector.load %arg4[%c0_5, %c0_6] : memref<128x128xf32, #tpu.memory_space<vmem>>, vector<128x128xf32>
    %cst_7 = arith.constant dense<0.000000e+00> : vector<64x128xf32>
    %8 = tpu.matmul %6, %7, %cst_7 {dimension_numbers = #tpu.dot_dimension_numbers<[1], [0], [0], [1], [0, 0, 1, 1], [], []>} : vector<64x128xf32>, vector<128x128xf32>, vector<64x128xf32> -> vector<64x128xf32>
    %c0_8 = arith.constant 0 : index
    %c0_9 = arith.constant 0 : index
    %9 = vector.load %arg5[%c0_8, %c0_9] : memref<1x128xf32, #tpu.memory_space<vmem>>, vector<1x128xf32>
    %10 = vector.broadcast %9 : vector<1x128xf32> to vector<64x128xf32>
    %11 = arith.addf %8, %10 : vector<64x128xf32>
    %12 = math.sin %11 : vector<64x128xf32>
    %c0_10 = arith.constant 0 : index
    %c0_11 = arith.constant 0 : index
    %13 = vector.load %arg6[%c0_10, %c0_11] : memref<128x128xf32, #tpu.memory_space<vmem>>, vector<128x128xf32>
    %cst_12 = arith.constant dense<0.000000e+00> : vector<64x128xf32>
    %14 = tpu.matmul %12, %13, %cst_12 {dimension_numbers = #tpu.dot_dimension_numbers<[1], [0], [0], [1], [0, 0, 1, 1], [], []>} : vector<64x128xf32>, vector<128x128xf32>, vector<64x128xf32> -> vector<64x128xf32>
    %c0_13 = arith.constant 0 : index
    %c0_14 = arith.constant 0 : index
    %15 = vector.load %arg7[%c0_13, %c0_14] : memref<1x128xf32, #tpu.memory_space<vmem>>, vector<1x128xf32>
    %16 = vector.broadcast %15 : vector<1x128xf32> to vector<64x128xf32>
    %17 = arith.addf %14, %16 : vector<64x128xf32>
    %18 = math.sin %17 : vector<64x128xf32>
    %c0_15 = arith.constant 0 : index
    %c0_16 = arith.constant 0 : index
    %19 = vector.load %arg8[%c0_15, %c0_16] : memref<128x128xf32, #tpu.memory_space<vmem>>, vector<128x128xf32>
    %cst_17 = arith.constant dense<0.000000e+00> : vector<64x128xf32>
    %20 = tpu.matmul %18, %19, %cst_17 {dimension_numbers = #tpu.dot_dimension_numbers<[1], [0], [0], [1], [0, 0, 1, 1], [], []>} : vector<64x128xf32>, vector<128x128xf32>, vector<64x128xf32> -> vector<64x128xf32>
    %c0_18 = arith.constant 0 : index
    %c0_19 = arith.constant 0 : index
    %21 = vector.load %arg9[%c0_18, %c0_19] : memref<1x128xf32, #tpu.memory_space<vmem>>, vector<1x128xf32>
    %22 = vector.broadcast %21 : vector<1x128xf32> to vector<64x128xf32>
    %23 = arith.addf %20, %22 : vector<64x128xf32>
    %24 = math.sin %23 : vector<64x128xf32>
    %c0_20 = arith.constant 0 : index
    %c0_21 = arith.constant 0 : index
    %25 = vector.load %arg10[%c0_20, %c0_21] : memref<128x4xf32, #tpu.memory_space<vmem>>, vector<128x4xf32>
    %cst_22 = arith.constant dense<0.000000e+00> : vector<64x4xf32>
    %26 = tpu.matmul %24, %25, %cst_22 {dimension_numbers = #tpu.dot_dimension_numbers<[1], [0], [0], [1], [0, 0, 1, 1], [], []>} : vector<64x128xf32>, vector<128x4xf32>, vector<64x4xf32> -> vector<64x4xf32>
    %c0_23 = arith.constant 0 : index
    %c0_24 = arith.constant 0 : index
    %27 = vector.load %arg11[%c0_23, %c0_24] : memref<1x4xf32, #tpu.memory_space<vmem>>, vector<1x4xf32>
    %28 = vector.broadcast %27 : vector<1x4xf32> to vector<64x4xf32>
    %29 = arith.addf %26, %28 : vector<64x4xf32>
    %c0_25 = arith.constant 0 : index
    %c0_26 = arith.constant 0 : index
    %30 = vector.load %arg12[%c0_25, %c0_26] : memref<64x4xf32, #tpu.memory_space<vmem>>, vector<64x4xf32>
    tpu.vector_store %arg12[%c0_25, %c0_26], %29 {strides = array<i32>} : memref<64x4xf32, #tpu.memory_space<vmem>>, vector<64x4xf32>,
    return
  }
  func.func @transform_0(%arg0: i32) -> (i32, i32) {
    %c0_i32 = arith.constant 0 : i32
    %c0_i32_0 = arith.constant 0 : i32
    return %arg0, %c0_i32 : i32, i32
  }
  func.func @transform_1(%arg0: i32) -> (i32, i32) {
    %c0_i32 = arith.constant 0 : i32
    %c0_i32_0 = arith.constant 0 : i32
    %c0_i32_1 = arith.constant 0 : i32
    return %c0_i32, %c0_i32_0 : i32, i32
  }
  func.func @transform_2(%arg0: i32) -> (i32, i32) {
    %c0_i32 = arith.constant 0 : i32
    %c0_i32_0 = arith.constant 0 : i32
    %c0_i32_1 = arith.constant 0 : i32
    return %c0_i32, %c0_i32_0 : i32, i32
  }
  func.func @transform_3(%arg0: i32) -> (i32, i32) {
    %c0_i32 = arith.constant 0 : i32
    %c0_i32_0 = arith.constant 0 : i32
    %c0_i32_1 = arith.constant 0 : i32
    return %c0_i32, %c0_i32_0 : i32, i32
  }
  func.func @transform_4(%arg0: i32) -> (i32, i32) {
    %c0_i32 = arith.constant 0 : i32
    %c0_i32_0 = arith.constant 0 : i32
    %c0_i32_1 = arith.constant 0 : i32
    return %c0_i32, %c0_i32_0 : i32, i32
  }
  func.func @transform_5(%arg0: i32) -> (i32, i32) {
    %c0_i32 = arith.constant 0 : i32
    %c0_i32_0 = arith.constant 0 : i32
    %c0_i32_1 = arith.constant 0 : i32
    return %c0_i32, %c0_i32_0 : i32, i32
  }
  func.func @transform_6(%arg0: i32) -> (i32, i32) {
    %c0_i32 = arith.constant 0 : i32
    %c0_i32_0 = arith.constant 0 : i32
    %c0_i32_1 = arith.constant 0 : i32
    return %c0_i32, %c0_i32_0 : i32, i32
  }
  func.func @transform_7(%arg0: i32) -> (i32, i32) {
    %c0_i32 = arith.constant 0 : i32
    %c0_i32_0 = arith.constant 0 : i32
    %c0_i32_1 = arith.constant 0 : i32
    return %c0_i32, %c0_i32_0 : i32, i32
  }
  func.func @transform_8(%arg0: i32) -> (i32, i32) {
    %c0_i32 = arith.constant 0 : i32
    %c0_i32_0 = arith.constant 0 : i32
    %c0_i32_1 = arith.constant 0 : i32
    return %c0_i32, %c0_i32_0 : i32, i32
  }
  func.func @transform_9(%arg0: i32) -> (i32, i32) {
    %c0_i32 = arith.constant 0 : i32
    %c0_i32_0 = arith.constant 0 : i32
    %c0_i32_1 = arith.constant 0 : i32
    return %c0_i32, %c0_i32_0 : i32, i32
  }
  func.func @transform_10(%arg0: i32) -> (i32, i32) {
    %c0_i32 = arith.constant 0 : i32
    %c0_i32_0 = arith.constant 0 : i32
    %c0_i32_1 = arith.constant 0 : i32
    return %c0_i32, %c0_i32_0 : i32, i32
  }
  func.func @transform_11(%arg0: i32) -> (i32, i32) {
    %c0_i32 = arith.constant 0 : i32
    %c0_i32_0 = arith.constant 0 : i32
    return %arg0, %c0_i32 : i32, i32
  }
}

</mosaic_0001>

<bundles_post_ra>
// kernel: siren_forward.1
= control target key start
LH: loop header
LB: loop body
LE: loop exit
PB: predicated region body
PF: predicated region fallthrough
CT: control target
= control target key end

     0   :  { %v8244_v57 = vmov 683565275   ;;  %v8246_v59 = vmov 2475754826   ;;  %v8241_v63 = vmov 2131351028   ;;  %s8223_s1 = inlined_call_operand.vmem [shape: f32[128,128], index: 1, kind: input, shape index: {}]   ;;  %s8224_s0 = inlined_call_operand.vmem [shape: f32[64,128], index: 0, kind: input, shape index: {}]   ;;  %s8225_s2 = inlined_call_operand.vmem [shape: f32[1,128], index: 2, kind: input, shape index: {}]   ;;  %s8226_s3 = inlined_call_operand.vmem [shape: f32[128,128], index: 3, kind: input, shape index: {}]   ;;  %s8227_s4 = inlined_call_operand.vmem [shape: f32[1,128], index: 4, kind: input, shape index: {}]   ;;  %s8228_s5 = inlined_call_operand.vmem [shape: f32[128,128], index: 5, kind: input, shape index: {}]   ;;  %s8229_s6 = inlined_call_operand.vmem [shape: f32[1,128], index: 6, kind: input, shape index: {}]   ;;  %s8230_s7 = inlined_call_operand.vmem [shape: f32[128,128], index: 7, kind: input, shape index: {}]   ;;  %s8231_s8 = inlined_call_operand.vmem [shape: f32[1,128], index: 8, kind: input, shape index: {}]   ;;  %s8232_s9 = inlined_call_operand.vmem [shape: f32[128,4], index: 9, kind: input, shape index: {}]   ;;  %s8233_s10 = inlined_call_operand.vmem [shape: f32[1,4], index: 10, kind: input, shape index: {}]   ;;  %s8234_s11 = inlined_call_operand.vmem [shape: f32[64,4], index: 11, kind: output, shape index: {}]  }
   0x1   :  { %v46_v0 = vld [vmem:[%s8223_s1] sm:$0xff]  ;;  %v47_v1 = vld [vmem:[%s8223_s1 + $0x8] sm:$0xff]  ;;  %v48_v2 = vld [vmem:[%s8223_s1 + $0x10] sm:$0xff] }
   0x2   :  { %v4500_v3 = vpack.c.bf16 %v47_v1, %v46_v0  ;;  %v49_v4 = vld [vmem:[%s8223_s1 + $0x18] sm:$0xff]  ;;  %v50_v6 = vld [vmem:[%s8223_s1 + $0x20] sm:$0xff]  ;;  %v51_v7 = vld [vmem:[%s8223_s1 + $0x28] sm:$0xff] }
   0x3   :  { %v4504_v5 = vpack.c.bf16 %v49_v4, %v48_v2  ;;  %v4508_v8 = vpack.c.bf16 %v51_v7, %v50_v6  ;;  %v38_v9 = vld [vmem:[%s8224_s0] sm:$0xff]  ;;  %v52_v10 = vld [vmem:[%s8223_s1 + $0x30] sm:$0xff]  ;;  %v53_v11 = vld [vmem:[%s8223_s1 + $0x38] sm:$0xff]  ;;  %v8252_v2 = vmov 2102212464  }
   0x4   :  { %4501 = vmatprep.subr.bf16.mxu0 %v4500_v3  ;;  %4312 = vmatprep.mubr.f32.mxu0 %v38_v9  ;;  %v4512_v12 = vpack.c.bf16 %v53_v11, %v52_v10  ;;  %v54_v13 = vld [vmem:[%s8223_s1 + $0x40] sm:$0xff]  ;;  %v55_v14 = vld [vmem:[%s8223_s1 + $0x48] sm:$0xff]  ;;  %v56_v16 = vld [vmem:[%s8223_s1 + $0x50] sm:$0xff] }
   0x5   :  { %4503 = vmatpush3.bf16.msra.mxu0 %v4500_v3  ;;  %v4516_v15 = vpack.c.bf16 %v55_v14, %v54_v13  ;;  %v57_v17 = vld [vmem:[%s8223_s1 + $0x58] sm:$0xff]  ;;  %v58_v19 = vld [vmem:[%s8223_s1 + $0x60] sm:$0xff]  ;;  %v59_v20 = vld [vmem:[%s8223_s1 + $0x68] sm:$0xff] }
   0x6   :  { %4505 = vmatprep.subr.bf16.mxu0 %v4504_v5  ;;  %v4520_v18 = vpack.c.bf16 %v57_v17, %v56_v16  ;;  %v4524_v21 = vpack.c.bf16 %v59_v20, %v58_v19  ;;  %v60_v22 = vld [vmem:[%s8223_s1 + $0x70] sm:$0xff]  ;;  %v61_v23 = vld [vmem:[%s8223_s1 + $0x78] sm:$0xff]  ;;  %v39_v25 = vld [vmem:[%s8224_s0 + $0x8] sm:$0xff] }
   0x7   :  { %v4528_v24 = vpack.c.bf16 %v61_v23, %v60_v22  ;;  %v40_v26 = vld [vmem:[%s8224_s0 + $0x10] sm:$0xff]  ;;  %v41_v27 = vld [vmem:[%s8224_s0 + $0x18] sm:$0xff]  ;;  %v42_v28 = vld [vmem:[%s8224_s0 + $0x20] sm:$0xff] }
   0x8   :  { %v43_v29 = vld [vmem:[%s8224_s0 + $0x28] sm:$0xff]  ;;  %v44_v30 = vld [vmem:[%s8224_s0 + $0x30] sm:$0xff]  ;;  %v45_v31 = vld [vmem:[%s8224_s0 + $0x38] sm:$0xff] }
   0x9   :  { %4507 = vmatpush3.bf16.msra.mxu0 %v4504_v5  ;;  %v5079_v32 = vld [vmem:[%s8225_s2] ss:$0 sm:$0xff]  ;;  %v8250_v5 = vmov 920167782  }
   0xa   :  { %4509 = vmatprep.subr.bf16.mxu0 %v4508_v8 }
   0xd   :  { %4511 = vmatpush3.bf16.msra.mxu0 %v4508_v8  ;;  %v8248_v8 = vmov 1326507024  }
   0xe   :  { %4513 = vmatprep.subr.bf16.mxu0 %v4512_v12 }
  0x11   :  { %4515 = vmatpush3.bf16.msra.mxu0 %v4512_v12 }
  0x12   :  { %4517 = vmatprep.subr.bf16.mxu0 %v4516_v15 }
  0x15   :  { %4519 = vmatpush3.bf16.msra.mxu0 %v4516_v15 }
  0x16   :  { %4521 = vmatprep.subr.bf16.mxu0 %v4520_v18 }
  0x19   :  { %4523 = vmatpush3.bf16.msra.mxu0 %v4520_v18 }
  0x1a   :  { %4525 = vmatprep.subr.bf16.mxu0 %v4524_v21 }
  0x1d   :  { %4527 = vmatpush3.bf16.msra.mxu0 %v4524_v21 }
  0x1e   :  { %4529 = vmatprep.subr.bf16.mxu0 %v4528_v24 }
  0x21   :  { %4531 = vmatpush3.bf16.msra.mxu0 %v4528_v24 }
  0x24   :  { %4313 = vmatmul.mubr.f32.vlgmr.msra.gmra.mrb[0].mxu0 %v39_v25 }
  0x25   :  { %4315 = vmatprep.mubr.f32.mxu0 %v40_v26 }
  0x28   :  { %4316 = vmatmul.mubr.f32.gmra.mrb[2].mxu0 %v41_v27 }
  0x29   :  { %4318 = vmatprep.mubr.f32.mxu0 %v42_v28 }
  0x2c   :  { %4319 = vmatmul.mubr.f32.gmra.mrb[4].mxu0 %v43_v29 }
  0x2d   :  { %4321 = vmatprep.mubr.f32.mxu0 %v44_v30 }
  0x30   :  { %4322 = vmatmul.mubr.f32.gmra.mrb[6].mxu0 %v45_v31 }
  0xf7   :  { %v4314_v33 = vpop.f32.mrb[0].mxu0 }
  0xf8   :  { %v5082_v34 = vadd.f32 %v4314_v33, %v5079_v32  ;;  %v5084_v35 = vpop.f32.mrb[1].mxu0 }
  0xfa   :  { %v281_v36 = vand.u32 2139095040, %v5082_v34  ;;  %v8240_v46 = vand.u32 2147483647, %v5082_v34 }
  0xfb   :  { %v4317_v37 = vpop.f32.mrb[2].mxu0 }
  0xfc   :  { %v282_v38 = vshrl.u32 %v281_v36, 23  ;;  %v5088_v39 = vadd.f32 %v4317_v37, %v5079_v32  ;;  %v145_v40 = vpop.f32.mrb[3].mxu0  ;;  %v285_v53 = vand.u32 8388607, %v8240_v46 }
  0xfd   :  { %v5097_v47 = vadd.f32 %v5079_v32, %v145_v40 }
  0xfe   :  { %v4032_v41 = vadd.s32 4294967169, %v282_v38  ;;  %v489_v42 = vand.u32 2139095040, %v5088_v39  ;;  %v286_v14 = vor.u32 8388608, %v285_v53  ;;  %v8238_v18 = vand.u32 2147483647, %v5088_v39 }
  0xff   :  { %v5091_v43 = vpop.f32.mrb[4].mxu0  ;;  %v385_v55 = vand.u32 2139095040, %v5097_v47 }
 0x100   :  { %v288_v44 = vadd.s32 1, %v4032_v41  ;;  %v5093_v45 = vpop.f32.mrb[5].mxu0  ;;  %v490_v49 = vshrl.u32 %v489_v42, 23  ;;  %v326_v27 = vshll.u32 %v286_v14, 8  ;;  %v493_v31 = vand.u32 8388607, %v8238_v18 }
 0x101   :  { %v386_v13 = vshrl.u32 %v385_v55, 23 }
 0x102   :  { %vm289_vm0 = vcmp.gt.s32.totalorder %v288_v44, 0  ;;  %v4040_v61 = vadd.s32 4294967169, %v490_v49 }
 0x103   :  { %v290_v48 = vsel %vm289_vm0, %v288_v44, 0  ;;  %v5099_v50 = vpop.f32.mrb[6].mxu0  ;;  %v4036_v25 = vadd.s32 4294967169, %v386_v13  ;;  %v5153_v44 = vadd.f32 %v5079_v32, %v5084_v35 }
 0x104   :  { %v292_v51 = vand.u32 31, %v290_v48  ;;  %v5101_v52 = vpop.f32.mrb[7].mxu0  ;;  %v5106_v56 = vshrl.u32 %v290_v48, 5  ;;  %v496_v19 = vadd.s32 1, %v4040_v61 }
 0x105   :  { %v392_v37 = vadd.s32 1, %v4036_v25  ;;  %8287 = vst [vmem:[#allocation2_spill] sm:$0xff] %v5153_v44 }
 0x106   :  { %v293_v54 = vsub.s32 32, %v292_v51  ;;  %v295_v58 = vshll.u32 %v8244_v57, %v292_v51  ;;  %v298_v60 = vshll.u32 %v8246_v59, %v292_v51  ;;  %v301_v1 = vshll.u32 %v8241_v63, %v292_v51 }
 0x107   :  { %v304_v4 = vshll.u32 %v8252_v2, %v292_v51  ;;  %v307_v7 = vshll.u32 %v8250_v5, %v292_v51  ;;  %vm310_vm1 = vcmp.lt.s32.totalorder %v5106_v56, 1  ;;  %vm313_vm2 = vcmp.lt.s32.totalorder %v5106_v56, 4 }
 0x108   :  { %v296_v62 = vshrl.u32 %v8246_v59, %v293_v54  ;;  %v299_v0 = vshrl.u32 %v8241_v63, %v293_v54  ;;  %v302_v3 = vshrl.u32 %v8252_v2, %v293_v54  ;;  %v305_v6 = vshrl.u32 %v8250_v5, %v293_v54 }
 0x109   :  { %v308_v9 = vshrl.u32 %v8248_v8, %v293_v54  ;;  %vm312_vm3 = vcmp.lt.s32.totalorder %v5106_v56, 3  ;;  %vm311_vm4 = vcmp.lt.s32.totalorder %v5106_v56, 2  ;;  %vm497_vm5 = vcmp.gt.s32.totalorder %v496_v19, 0 }
 0x10a   :  { %v297_v10 = vor.u32 %v296_v62, %v295_v58  ;;  %v300_v11 = vor.u32 %v299_v0, %v298_v60  ;;  %v303_v12 = vor.u32 %v302_v3, %v301_v1  ;;  %v306_v15 = vor.u32 %v305_v6, %v304_v4 }
 0x10b   :  { %v309_v16 = vor.u32 %v308_v9, %v307_v7  ;;  %v498_v36 = vsel %vm497_vm5, %v496_v19, 0  ;;  %v294_v38 = vshrl.u32 %v8244_v57, %v293_v54  ;;  %v494_v51 = vor.u32 8388608, %v493_v31 }
 0x10c   :  { %v318_v17 = vsel %vm310_vm1, %v297_v10, %v300_v11  ;;  %v319_v20 = vsel %vm313_vm2, %v306_v15, 920167782  ;;  %v322_v21 = vsel %vm310_vm1, %v300_v11, %v303_v12  ;;  %v315_v33 = vsel %vm313_vm2, %v303_v12, 2102212464 }
 0x10d   :  { %v323_v22 = vsel %vm313_vm2, %v309_v16, 1326507024  ;;  %v320_v23 = vsel %vm312_vm3, %v303_v12, %v319_v20  ;;  %v500_v42 = vand.u32 31, %v498_v36  ;;  %v314_v48 = vsel %vm310_vm1, %v294_v38, %v297_v10 }
 0x10e   :  { %v324_v24 = vsel %vm312_vm3, %v306_v15, %v323_v22  ;;  %v321_v26 = vsel %vm311_vm4, %v318_v17, %v320_v23  ;;  %v316_v49 = vsel %vm312_vm3, %v300_v11, %v315_v33  ;;  %v5159_v55 = vshrl.u32 %v498_v36, 5 }
 0x10f   :  { %v325_v28 = vsel %vm311_vm4, %v322_v21, %v324_v24  ;;  %v5139_v29 = vmul.u32.u64.low %v326_v27, %v321_v26  ;;  %v5140_v30 = vmul.u32.u64.high %v326_v27, %v321_v26, %v5139_v29  ;;  %v501_v53 = vsub.s32 32, %v500_v42 }
 0x110   :  { %v5148_v40 = vmul.u32.u64.low %v326_v27, %v325_v28  ;;  %v5149_v41 = vmul.u32.u64.high %v326_v27, %v325_v28, %v5148_v40  ;;  %v503_v54 = vshll.u32 %v8244_v57, %v500_v42  ;;  %v506_v58 = vshll.u32 %v8246_v59, %v500_v42 }
 0x111   :  { %vm393_vm6 = vcmp.gt.s32.totalorder %v392_v37, 0  ;;  %v504_v60 = vshrl.u32 %v8246_v59, %v501_v53  ;;  %v507_v35 = vshrl.u32 %v8241_v63, %v501_v53  ;;  %v509_v61 = vshll.u32 %v8241_v63, %v500_v42 }
 0x112   :  { %v512_v62 = vshll.u32 %v8252_v2, %v500_v42  ;;  %v510_v0 = vshrl.u32 %v8252_v2, %v501_v53  ;;  %v513_v1 = vshrl.u32 %v8250_v5, %v501_v53  ;;  %v515_v3 = vshll.u32 %v8250_v5, %v500_v42 }
 0x113   :  { %v516_v4 = vshrl.u32 %v8248_v8, %v501_v53  ;;  %v317_v6 = vsel %vm311_vm4, %v314_v48, %v316_v49  ;;  %v336_v7 = vadd.s32 1, %v5140_v30  ;;  %v505_v9 = vor.u32 %v504_v60, %v503_v54 }
 0x114   :  { %v508_v10 = vor.u32 %v507_v35, %v506_v58  ;;  %v511_v11 = vor.u32 %v510_v0, %v509_v61  ;;  %v514_v12 = vor.u32 %v513_v1, %v512_v62  ;;  %vm518_vm7 = vcmp.lt.s32.totalorder %v5159_v55, 1 }
 0x115   :  { %v517_v13 = vor.u32 %v516_v4, %v515_v3  ;;  %vm335_vm8 = vc.u32 %v5149_v41, %v5139_v29  ;;  %vm521_vm9 = vcmp.lt.s32.totalorder %v5159_v55, 4  ;;  %v394_v56 = vsel %vm393_vm6, %v392_v37, 0 }
 0x116   :  { %v526_v14 = vsel %vm518_vm7, %v505_v9, %v508_v10  ;;  %vm520_vm10 = vcmp.lt.s32.totalorder %v5159_v55, 3  ;;  %v527_v15 = vsel %vm521_vm9, %v514_v12, 920167782  ;;  %v530_v16 = vsel %vm518_vm7, %v508_v10, %v511_v11 }
 0x117   :  { %v531_v17 = vsel %vm521_vm9, %v517_v13, 1326507024  ;;  %vm519_vm11 = vcmp.lt.s32.totalorder %v5159_v55, 2  ;;  %v528_v19 = vsel %vm520_vm10, %v511_v11, %v527_v15  ;;  %v337_v21 = vsel %vm335_vm8, %v336_v7, %v5140_v30 }
 0x118   :  { %v532_v20 = vsel %vm520_vm10, %v514_v12, %v531_v17  ;;  %v529_v22 = vsel %vm519_vm11, %v526_v14, %v528_v19  ;;  %v396_v23 = vand.u32 31, %v394_v56  ;;  %v333_v24 = vmul.u32 %v326_v27, %v317_v6 }
 0x119   :  { %v533_v25 = vsel %vm519_vm11, %v530_v16, %v532_v20  ;;  %v534_v26 = vshll.u32 %v494_v51, 8  ;;  %v177_v28 = vand.u32 2139095040, %v5153_v44  ;;  %v523_v40 = vsel %vm521_vm9, %v511_v11, 2102212464 }
 0x11a   :  { %v5199_v31 = vsub.s32 32, %v396_v23  ;;  %v338_v33 = vadd.s32 %v337_v21, %v333_v24  ;;  %v502_v42 = vshrl.u32 %v8244_v57, %v501_v53  ;;  %v8239_v48 = vand.u32 2147483647, %v5097_v47 }
 0x11b   :  { %v5201_v36 = vmul.u32.u64.low %v534_v26, %v529_v22  ;;  %v5202_v37 = vmul.u32.u64.high %v534_v26, %v529_v22, %v5201_v36  ;;  %v5205_v38 = vmul.u32.u64.low %v534_v26, %v533_v25  ;;  %v5206_v30 = vmul.u32.u64.high %v534_v26, %v533_v25, %v5205_v38 }
 0x11c   :  { %v178_v27 = vshrl.u32 %v177_v28, 23  ;;  %v409_v49 = vshrl.u32 %v8250_v5, %v5199_v31  ;;  %v339_v51 = vadd.s32 536870912, %v338_v33  ;;  %v412_v54 = vshrl.u32 %v8248_v8, %v5199_v31 }
 0x11d   :  { %v522_v58 = vsel %vm518_vm7, %v502_v42, %v505_v9  ;;  %v524_v60 = vsel %vm520_vm10, %v508_v10, %v523_v40  ;;  %v5220_v35 = vshrl.u32 %v394_v56, 5  ;;  %v408_v61 = vshll.u32 %v8252_v2, %v396_v23 }
 0x11e   :  { %v400_v53 = vshrl.u32 %v8246_v59, %v5199_v31  ;;  %v403_v62 = vshrl.u32 %v8241_v63, %v5199_v31  ;;  %v406_v0 = vshrl.u32 %v8252_v2, %v5199_v31  ;;  %v411_v1 = vshll.u32 %v8250_v5, %v396_v23 }
 0x11f   :  { %v4028_v3 = vadd.s32 4294967169, %v178_v27  ;;  %v389_v4 = vand.u32 8388607, %v8239_v48  ;;  %v399_v6 = vshll.u32 %v8244_v57, %v396_v23  ;;  %v410_v7 = vor.u32 %v409_v49, %v408_v61 }
 0x120   :  { %v544_v9 = vadd.s32 1, %v5202_v37  ;;  %v402_v10 = vshll.u32 %v8246_v59, %v396_v23  ;;  %v405_v11 = vshll.u32 %v8241_v63, %v396_v23  ;;  %v413_v12 = vor.u32 %v412_v54, %v411_v1 }
 0x121   :  { %v5236_v13 = vshrl.u32 %v339_v51, 30  ;;  %v525_v14 = vsel %vm519_vm11, %v522_v58, %v524_v60  ;;  %vm543_vm12 = vc.u32 %v5206_v30, %v5201_v36  ;;  %v5244_v56 = vadd.f32 %v5091_v43, %v5079_v32 }
 0x122   :  { %v401_v15 = vor.u32 %v400_v53, %v399_v6  ;;  %v404_v16 = vor.u32 %v403_v62, %v402_v10  ;;  %v407_v17 = vor.u32 %v406_v0, %v405_v11  ;;  %vm417_vm13 = vcmp.lt.s32.totalorder %v5220_v35, 4 }
 0x123   :  { %v423_v19 = vsel %vm417_vm13, %v410_v7, 920167782  ;;  %v184_v20 = vadd.s32 1, %v4028_v3  ;;  %v545_v21 = vsel %vm543_vm12, %v544_v9, %v5202_v37  ;;  %v427_v55 = vsel %vm417_vm13, %v413_v12, 1326507024 }
 0x124   :  { %v541_v22 = vmul.u32 %v534_v26, %v525_v14  ;;  %vm414_vm14 = vcmp.lt.s32.totalorder %v5220_v35, 1  ;;  %vm416_vm15 = vcmp.lt.s32.totalorder %v5220_v35, 3  ;;  %v697_v43 = vand.u32 2139095040, %v5244_v56 }
 0x125   :  { %v341_v23 = vshll.u32 %v5236_v13, 30  ;;  %v390_v24 = vor.u32 8388608, %v389_v4  ;;  %v422_v25 = vsel %vm414_vm14, %v401_v15, %v404_v16  ;;  %v424_v28 = vsel %vm416_vm15, %v407_v17, %v423_v19 }
 0x126   :  { %v5260_v37 = vadd.s32 %v545_v21, %v541_v22  ;;  %v426_v26 = vsel %vm414_vm14, %v404_v16, %v407_v17  ;;  %v428_v38 = vsel %vm416_vm15, %v410_v7, %v427_v55  ;;  %v698_v40 = vshrl.u32 %v697_v43, 23 }
 0x127   :  { %vm415_vm0 = vcmp.lt.s32.totalorder %v5220_v35, 2  ;;  %v5269_v49 = vsub.s32 %v338_v33, %v341_v23  ;;  %v5273_v54 = vshll.u32 %v390_v24, 8  ;;  %vm185_vm1 = vcmp.gt.s32.totalorder %v184_v20, 0 }
 0x128   :  { %v425_v27 = vsel %vm415_vm0, %v422_v25, %v424_v28  ;;  %v4048_v42 = vadd.s32 4294967169, %v698_v40  ;;  %v429_v51 = vsel %vm415_vm0, %v426_v26, %v428_v38  ;;  %v547_v58 = vadd.s32 536870912, %v5260_v37 }
 0x129   :  { %v5278_v61 = vadd.f32 %v5079_v32, %v5093_v45  ;;  %v398_v53 = vshrl.u32 %v8244_v57, %v5199_v31  ;;  %v419_v33 = vsel %vm417_vm13, %v407_v17, 2102212464  ;;  %v344_v4 = vsub.s32 0, %v5269_v49 }
 0x12a   :  { %v704_v60 = vadd.s32 1, %v4048_v42  ;;  %v5285_v62 = vmul.u32.u64.low %v5273_v54, %v425_v27  ;;  %v5286_v0 = vmul.u32.u64.high %v5273_v54, %v425_v27, %v5285_v62  ;;  %v5294_v45 = vsel %vm185_vm1, %v184_v20, 0 }
 0x12b   :  { %8288 = vst [vmem:[#allocation3_spill] sm:$0xff] %v5278_v61  ;;  %v5290_v1 = vmul.u32.u64.low %v5273_v54, %v429_v51  ;;  %v5291_v3 = vmul.u32.u64.high %v5273_v54, %v429_v51, %v5290_v1  ;;  %v418_v31 = vsel %vm414_vm14, %v398_v53, %v401_v15  ;;  %v5298_v7 = vshrl.u32 %v547_v58, 30 }
 0x12c   :  { %vm705_vm2 = vcmp.gt.s32.totalorder %v704_v60, 0  ;;  %v420_v9 = vsel %vm416_vm15, %v404_v16, %v419_v33  ;;  %v593_v11 = vand.u32 2139095040, %v5278_v61  ;;  %v8235_v12 = vand.u32 2147483647, %v5244_v56 }
 0x12d   :  { %v706_v6 = vsel %vm705_vm2, %v704_v60, 0  ;;  %8289 = vst [vmem:[#allocation4_spill] sm:$0xff] %v5298_v7  ;;  %v5305_v17 = vmin.u32 %v344_v4, %v5269_v49  ;;  %v5308_v19 = vand.u32 31, %v5294_v45  ;;  %v421_v15 = vsel %vm415_vm0, %v418_v31, %v420_v9 }
 0x12e   :  { %v708_v10 = vand.u32 31, %v706_v6  ;;  %v8237_v20 = vand.u32 2147483647, %v5153_v44  ;;  %v549_v21 = vshll.u32 %v5298_v7, 30  ;;  %v594_v22 = vshrl.u32 %v593_v11, 23 }
 0x12f   :  { %v701_v43 = vand.u32 8388607, %v8235_v12  ;;  %vm439_vm3 = vc.u32 %v5291_v3, %v5285_v62  ;;  %v440_v35 = vadd.s32 1, %v5286_v0  ;;  %v707_v28 = vshrl.u32 %v706_v6, 5 }
 0x130   :  { %v709_v14 = vsub.s32 32, %v708_v10  ;;  %v711_v23 = vshll.u32 %v8244_v57, %v708_v10  ;;  %v714_v24 = vshll.u32 %v8246_v59, %v708_v10  ;;  %v717_v26 = vshll.u32 %v8241_v63, %v708_v10 }
 0x131   :  { %v720_v27 = vshll.u32 %v8252_v2, %v708_v10  ;;  %v723_v58 = vshll.u32 %v8250_v5, %v708_v10  ;;  %v4044_v53 = vadd.s32 4294967169, %v594_v22  ;;  %v5330_v33 = vsub.s32 32, %v5308_v19 }
 0x132   :  { %v712_v16 = vshrl.u32 %v8246_v59, %v709_v14  ;;  %v715_v55 = vshrl.u32 %v8241_v63, %v709_v14  ;;  %v718_v25 = vshrl.u32 %v8252_v2, %v709_v14  ;;  %v721_v42 = vshrl.u32 %v8250_v5, %v709_v14 }
 0x133   :  { %v724_v60 = vshrl.u32 %v8248_v8, %v709_v14  ;;  %v702_v1 = vor.u32 8388608, %v701_v43  ;;  %v5334_v31 = vand.u32 8388607, %v8237_v20  ;;  %v346_v6 = vclz %v5305_v17 }
 0x134   :  { %v713_v38 = vor.u32 %v712_v16, %v711_v23  ;;  %v716_v40 = vor.u32 %v715_v55, %v714_v24  ;;  %v719_v51 = vor.u32 %v718_v25, %v717_v26  ;;  %v722_v4 = vor.u32 %v721_v42, %v720_v27 }
 0x135   :  { %v437_v9 = vmul.u32 %v5273_v54, %v421_v15  ;;  %v725_v11 = vor.u32 %v724_v60, %v723_v58  ;;  %vm726_vm4 = vcmp.lt.s32.totalorder %v707_v28, 1  ;;  %v5339_v10 = vsub.s32 %v5260_v37, %v549_v21 }
 0x136   :  { %v441_v16 = vsel %vm439_vm3, %v440_v35, %v5286_v0  ;;  %vm729_vm5 = vcmp.lt.s32.totalorder %v707_v28, 4  ;;  %v734_v55 = vsel %vm726_vm4, %v713_v38, %v716_v40  ;;  %vm728_vm6 = vcmp.lt.s32.totalorder %v707_v28, 3 }
 0x137   :  { %v735_v22 = vsel %vm729_vm5, %v722_v4, 920167782  ;;  %v738_v43 = vsel %vm726_vm4, %v716_v40, %v719_v51  ;;  %v600_v17 = vadd.s32 1, %v4044_v53  ;;  %vm727_vm7 = vcmp.lt.s32.totalorder %v707_v28, 2 }
 0x138   :  { %v736_v54 = vsel %vm728_vm6, %v719_v51, %v735_v22  ;;  %v739_v15 = vsel %vm729_vm5, %v725_v11, 1326507024  ;;  %v742_v23 = vshll.u32 %v702_v1, 8  ;;  %v5348_v37 = vadd.s32 %v441_v16, %v437_v9 }
 0x139   :  { %v737_v21 = vsel %vm727_vm7, %v734_v55, %v736_v54  ;;  %v740_v24 = vsel %vm728_vm6, %v722_v4, %v739_v15  ;;  %v5354_v0 = vadd.f32 %v5099_v50, %v5079_v32  ;;  %v731_v25 = vsel %vm729_vm5, %v719_v51, 2102212464 }
 0x13a   :  { %v741_v35 = vsel %vm727_vm7, %v738_v43, %v740_v24  ;;  %v5357_v26 = vmul.u32.u64.low %v742_v23, %v737_v21  ;;  %v5358_v27 = vmul.u32.u64.high %v742_v23, %v737_v21, %v5357_v26  ;;  %v710_v42 = vshrl.u32 %v8244_v57, %v709_v14 }
 0x13b   :  { %8290 = vst [vmem:[#allocation5_spill] sm:$0xff] %v5354_v0  ;;  %v5362_v58 = vmul.u32.u64.low %v742_v23, %v741_v35  ;;  %v5363_v60 = vmul.u32.u64.high %v742_v23, %v741_v35, %v5362_v58  ;;  %vm601_vm8 = vcmp.gt.s32.totalorder %v600_v17, 0  ;;  %v5366_v53 = vshrl.u32 %v5294_v45, 5 }
 0x13c   :  { %v552_v1 = vsub.s32 0, %v5339_v10  ;;  %v8236_v50 = vand.u32 2147483647, %v5278_v61  ;;  %v602_v51 = vsel %vm601_vm8, %v600_v17, 0  ;;  %v5372_v4 = vshll.u32 %v8252_v2, %v5308_v19 }
 0x13d   :  { %v443_v9 = vadd.s32 536870912, %v5348_v37  ;;  %v730_v14 = vsel %vm726_vm4, %v710_v42, %v713_v38  ;;  %v732_v11 = vsel %vm728_vm6, %v716_v40, %v731_v25  ;;  %v5379_v16 = vshrl.u32 %v8250_v5, %v5330_v33 }
 0x13e   :  { %v5383_v45 = vshll.u32 %v8250_v5, %v5308_v19  ;;  %v752_v55 = vadd.s32 1, %v5358_v27  ;;  %v604_v22 = vand.u32 31, %v602_v51  ;;  %v5386_v43 = vadd.s32 4294967294, %v346_v6 }
 0x13f   :  { %v5390_v17 = vshrl.u32 %v8248_v8, %v5330_v33  ;;  %vm751_vm9 = vc.u32 %v5363_v60, %v5357_v26  ;;  %v905_v38 = vand.u32 2139095040, %v5354_v0  ;;  %v5396_v40 = vmin.u32 %v552_v1, %v5339_v10 }
 0x140   :  { %v733_v54 = vsel %vm727_vm7, %v730_v14, %v732_v11  ;;  %v597_v15 = vand.u32 8388607, %v8236_v50  ;;  %v605_v21 = vsub.s32 32, %v604_v22  ;;  %v5401_v6 = vshrl.u32 %v443_v9, 30 }
 0x141   :  { %v753_v24 = vsel %vm751_vm9, %v752_v55, %v5358_v27  ;;  %v607_v25 = vshll.u32 %v8244_v57, %v604_v22  ;;  %v610_v35 = vshll.u32 %v8246_v59, %v604_v22  ;;  %v613_v1 = vshll.u32 %v8241_v63, %v604_v22 }
 0x142   :  { %8291 = vst [vmem:[#allocation6_spill] sm:$0xff] %v5401_v6  ;;  %v608_v42 = vshrl.u32 %v8246_v59, %v605_v21  ;;  %v611_v58 = vshrl.u32 %v8241_v63, %v605_v21  ;;  %v614_v28 = vshrl.u32 %v8252_v2, %v605_v21  ;;  %v749_v14 = vmul.u32 %v742_v23, %v733_v54 }
 0x143   :  { %v603_v11 = vshrl.u32 %v602_v51, 5  ;;  %v616_v12 = vshll.u32 %v8252_v2, %v604_v22  ;;  %v906_v9 = vshrl.u32 %v905_v38, 23  ;;  %v617_v55 = vshrl.u32 %v8250_v5, %v605_v21 }
 0x144   :  { %v609_v50 = vor.u32 %v608_v42, %v607_v25  ;;  %v612_v20 = vor.u32 %v611_v58, %v610_v35  ;;  %v615_v27 = vor.u32 %v614_v28, %v613_v1  ;;  %vm4035_vm10 = vcmp.lt.s32.totalorder %v5386_v43, 0 }
 0x145   :  { %v5413_v18 = vadd.s32 %v753_v24, %v749_v14  ;;  %v619_v48 = vshll.u32 %v8250_v5, %v604_v22  ;;  %v620_v46 = vshrl.u32 %v8248_v8, %v605_v21  ;;  %v554_v63 = vclz %v5396_v40 }
 0x146   :  { %v445_v23 = vshll.u32 %v5401_v6, 30  ;;  %v598_v51 = vor.u32 8388608, %v597_v15  ;;  %v618_v54 = vor.u32 %v617_v55, %v616_v12  ;;  %vm622_vm11 = vcmp.lt.s32.totalorder %v603_v11, 1 }
 0x147   :  { %v621_v38 = vor.u32 %v620_v46, %v619_v48  ;;  %vm625_vm12 = vcmp.lt.s32.totalorder %v603_v11, 4  ;;  %v4056_v25 = vadd.s32 4294967169, %v906_v9  ;;  %vm624_vm13 = vcmp.lt.s32.totalorder %v603_v11, 3  ;;  %v1006_v48 = vld [vmem:[%s8226_s3] sm:$0xff] }
 0x148   :  { %v627_v35 = vsel %vm625_vm12, %v615_v27, 2102212464  ;;  %v630_v42 = vsel %vm622_vm11, %v609_v50, %v612_v20  ;;  %v631_v24 = vsel %vm625_vm12, %v618_v54, 920167782  ;;  %v755_v58 = vadd.s32 536870912, %v5413_v18 }
 0x149   :  { %v606_v22 = vshrl.u32 %v8244_v57, %v605_v21  ;;  %vm623_vm14 = vcmp.lt.s32.totalorder %v603_v11, 2  ;;  %v632_v1 = vsel %vm624_vm13, %v615_v27, %v631_v24  ;;  %v634_v15 = vsel %vm622_vm11, %v612_v20, %v615_v27  ;;  %v1007_v21 = vld [vmem:[%s8226_s3 + $0x8] sm:$0xff]  ;;  %v1008_v27 = vld [vmem:[%s8226_s3 + $0x10] sm:$0xff] }
 0x14a   :  { %v633_v40 = vsel %vm623_vm14, %v630_v42, %v632_v1  ;;  %v635_v12 = vsel %vm625_vm12, %v621_v38, 1326507024  ;;  %v638_v46 = vshll.u32 %v598_v51, 8  ;;  %v628_v14 = vsel %vm624_vm13, %v612_v20, %v627_v35  ;;  %v1009_v51 = vld [vmem:[%s8226_s3 + $0x18] sm:$0xff] }
 0x14b   :  { %v626_v28 = vsel %vm622_vm11, %v606_v22, %v609_v50  ;;  %v636_v9 = vsel %vm624_vm13, %v618_v54, %v635_v12  ;;  %v8243_v55 = vand.u32 2147483647, %v5354_v0  ;;  %v5439_v38 = vsub.s32 %v5348_v37, %v445_v23 }
 0x14c   :  { %v637_v20 = vsel %vm623_vm14, %v634_v15, %v636_v9  ;;  %v5442_v50 = vmul.u32.u64.low %v638_v46, %v633_v40  ;;  %v5443_v54 = vmul.u32.u64.high %v638_v46, %v633_v40, %v5442_v50  ;;  %v5446_v35 = vshrl.u32 %v755_v58, 30 }
 0x14d   :  { %v5448_v42 = vmul.u32.u64.low %v638_v46, %v637_v20  ;;  %v5449_v24 = vmul.u32.u64.high %v638_v46, %v637_v20, %v5448_v42  ;;  %v912_v22 = vadd.s32 1, %v4056_v25  ;;  %v5453_v1 = vor.u32 %v5379_v16, %v5372_v4  ;;  %v1010_v4 = vld [vmem:[%s8226_s3 + $0x20] sm:$0xff]  ;;  %v1011_v16 = vld [vmem:[%s8226_s3 + $0x28] sm:$0xff] }
 0x14e   :  { %8292 = vst [vmem:[#allocation7_spill] sm:$0xff] %v5446_v35  ;;  %v629_v12 = vsel %vm623_vm14, %v626_v28, %v628_v14  ;;  %v4532_v37 = vpack.c.bf16 %v1007_v21, %v1006_v48  ;;  %v4536_v23 = vpack.c.bf16 %v1009_v51, %v1008_v27  ;;  %v5459_v40 = vsel %vm4035_vm10, 0, %v5386_v43  ;;  %v1013_v21 = vld [vmem:[%s8226_s3 + $0x38] sm:$0xff] }
 0x14f   :  { %v205_v58 = vor.u32 %v5390_v17, %v5383_v45  ;;  %vm209_vm15 = vcmp.lt.s32.totalorder %v5366_v53, 4  ;;  %vm913_vm0 = vcmp.gt.s32.totalorder %v912_v22, 0  ;;  %v4042_v11 = vadd.s32 4294967294, %v554_v63 }
 0x150   :  { %v448_v25 = vsub.s32 0, %v5439_v38  ;;  %v648_v43 = vadd.s32 1, %v5443_v54  ;;  %v914_v15 = vsel %vm913_vm0, %v912_v22, 0  ;;  %4533 = vmatprep.subr.bf16.mxu1 %v4532_v37  ;;  %v757_v45 = vshll.u32 %v5446_v35, 30  ;;  %v1015_v35 = vld [vmem:[%s8226_s3 + $0x48] sm:$0xff] }
 0x151   :  { %v645_v17 = vmul.u32 %v638_v46, %v629_v12  ;;  %vm647_vm1 = vc.u32 %v5449_v24, %v5442_v50  ;;  %v909_v48 = vand.u32 8388607, %v8243_v55  ;;  %4535 = vmatpush3.bf16.msra.mxu1 %v4532_v37  ;;  %v5480_v63 = vsel %vm209_vm15, %v5453_v1, 920167782  ;;  %v1012_v46 = vld [vmem:[%s8226_s3 + $0x30] sm:$0xff] }
 0x152   :  { %v649_v28 = vsel %vm647_vm1, %v648_v43, %v5443_v54  ;;  %v916_v14 = vand.u32 31, %v914_v15  ;;  %4537 = vmatprep.subr.bf16.mxu1 %v4536_v23  ;;  %v4540_v9 = vpack.c.bf16 %v1011_v16, %v1010_v4  ;;  %v5491_v27 = vadd.s32 %v5139_v29, %v5149_v41 }
 0x153   :  { %v5496_v20 = vsel %vm209_vm15, %v205_v58, 1326507024  ;;  %v650_v54 = vadd.s32 %v649_v28, %v645_v17  ;;  %v354_v42 = vsub.s32 4294967266, %v5459_v40  ;;  %vm4043_vm2 = vcmp.lt.s32.totalorder %v4042_v11, 0 }
 0x154   :  { %v5500_v22 = vmin.u32 %v448_v25, %v5439_v38  ;;  %v917_v12 = vsub.s32 32, %v916_v14  ;;  %v5503_v37 = vsub.s32 %v5413_v18, %v757_v45  ;;  %v910_v29 = vor.u32 8388608, %v909_v48 }
 0x155   :  { %v651_v4 = vadd.s32 536870912, %v650_v54  ;;  %4539 = vmatpush3.bf16.msra.mxu1 %v4536_v23  ;;  %v4544_v41 = vpack.c.bf16 %v1013_v21, %v1012_v46  ;;  %v919_v16 = vshll.u32 %v8244_v57, %v916_v14  ;;  %v922_v43 = vshll.u32 %v8246_v59, %v916_v14 }
 0x156   :  { %v920_v58 = vshrl.u32 %v8246_v59, %v917_v12  ;;  %v8293_v17 = vmov 2131351028   ;;  %4541 = vmatprep.subr.bf16.mxu1 %v4540_v9  ;;  %v915_v25 = vshrl.u32 %v914_v15, 5  ;;  %v926_v18 = vshrl.u32 %v8252_v2, %v917_v12 }
 0x157   :  { %v923_v28 = vshrl.u32 %v8293_v17, %v917_v12  ;;  %v5509_v55 = vshrl.u32 %v651_v4, 30  ;;  %v925_v51 = vshll.u32 %v8293_v17, %v916_v14  ;;  %v928_v23 = vshll.u32 %v8252_v2, %v916_v14 }
 0x158   :  { %v921_v45 = vor.u32 %v920_v58, %v919_v16  ;;  %v929_v46 = vshrl.u32 %v8250_v5, %v917_v12  ;;  %v355_v21 = vadd.s32 127, %v354_v42  ;;  %v5516_v57 = vsel %vm4043_vm2, 0, %v4042_v11 }
 0x159   :  { %8294 = vst [vmem:[#allocation8_spill] sm:$0xff] %v5509_v55  ;;  %v924_v48 = vor.u32 %v923_v28, %v922_v43  ;;  %v927_v59 = vor.u32 %v926_v18, %v925_v51  ;;  %v5520_v4 = vadd.f32 %v5079_v32, %v5101_v52  ;;  %4543 = vmatpush3.bf16.msra.mxu1 %v4540_v9  ;;  %v450_v15 = vclz %v5500_v22 }
 0x15a   :  { %v930_v8 = vor.u32 %v929_v46, %v928_v23  ;;  %v931_v16 = vshll.u32 %v8250_v5, %v916_v14  ;;  %v8296_v58 = vmov 1326507024   ;;  %4545 = vmatprep.subr.bf16.mxu1 %v4544_v41  ;;  %v760_v28 = vsub.s32 0, %v5503_v37 }
 0x15b   :  { %8295 = vst [vmem:[#allocation9_spill] sm:$0xff] %v5520_v4  ;;  %v932_v43 = vshrl.u32 %v8296_v58, %v917_v12  ;;  %vm934_vm3 = vcmp.lt.s32.totalorder %v915_v25, 1  ;;  %vm937_vm4 = vcmp.lt.s32.totalorder %v915_v25, 4  ;;  %v950_v11 = vshll.u32 %v910_v29, 8  ;;  %v1014_v29 = vld [vmem:[%s8226_s3 + $0x40] sm:$0xff] }
 0x15c   :  { %v653_v51 = vshll.u32 %v5509_v55, 30  ;;  %v939_v18 = vsel %vm937_vm4, %v927_v59, 2102212464  ;;  %v942_v32 = vsel %vm934_vm3, %v921_v45, %v924_v48  ;;  %v8297_v52 = vmov 683565275  }
 0x15d   :  { %v933_v42 = vor.u32 %v932_v43, %v931_v16  ;;  %v918_v9 = vshrl.u32 %v8297_v52, %v917_v12  ;;  %vm936_vm5 = vcmp.lt.s32.totalorder %v915_v25, 3  ;;  %v943_v22 = vsel %vm937_vm4, %v930_v8, 920167782  ;;  %4547 = vmatpush3.bf16.msra.mxu1 %v4544_v41  ;;  %v1016_v41 = vld [vmem:[%s8226_s3 + $0x50] sm:$0xff] }
 0x15e   :  { %v801_v14 = vand.u32 2139095040, %v5520_v4  ;;  %vm935_vm6 = vcmp.lt.s32.totalorder %v915_v25, 2  ;;  %v944_v23 = vsel %vm936_vm5, %v927_v59, %v943_v22  ;;  %v946_v46 = vsel %vm934_vm3, %v924_v48, %v927_v59  ;;  %v1017_v59 = vld [vmem:[%s8226_s3 + $0x58] sm:$0xff]  ;;  %v1019_v25 = vld [vmem:[%s8226_s3 + $0x68] sm:$0xff] }
 0x15f   :  { %v947_v5 = vsel %vm937_vm4, %v933_v42, 1326507024  ;;  %v938_v16 = vsel %vm934_vm3, %v918_v9, %v921_v45  ;;  %v940_v43 = vsel %vm936_vm5, %v924_v48, %v939_v18  ;;  %v945_v2 = vsel %vm935_vm6, %v942_v32, %v944_v23 }
 0x160   :  { %v948_v12 = vsel %vm936_vm5, %v930_v8, %v947_v5  ;;  %v5545_v42 = vsub.s32 %v650_v54, %v653_v51  ;;  %v5548_v48 = vmul.u32.u64.low %v950_v11, %v945_v2  ;;  %v5549_v18 = vmul.u32.u64.high %v950_v11, %v945_v2, %v5548_v48 }
 0x161   :  { %v949_v45 = vsel %vm935_vm6, %v946_v46, %v948_v12  ;;  %v8298_v5 = vsub.s32 32, %v5459_v40  ;;  %v356_v32 = vshll.u32 %v355_v21, 23  ;;  %v941_v23 = vsel %vm935_vm6, %v938_v16, %v940_v43 }
 0x162   :  { %v5555_v9 = vmul.u32.u64.low %v950_v11, %v949_v45  ;;  %v5556_v22 = vmul.u32.u64.high %v950_v11, %v949_v45, %v5555_v9  ;;  %v802_v55 = vshrl.u32 %v801_v14, 23  ;;  %v4548_v44 = vpack.c.bf16 %v1015_v35, %v1014_v29 }
 0x163   :  { %v352_v8 = vshrl.u32 %v5491_v27, %v8298_v5  ;;  %v4552_v54 = vpack.c.bf16 %v1017_v59, %v1016_v41  ;;  %v351_v51 = vshll.u32 %v5269_v49, %v5459_v40  ;;  %v562_v2 = vsub.s32 4294967266, %v5516_v57  ;;  %v1018_v27 = vld [vmem:[%s8226_s3 + $0x60] sm:$0xff] }
 0x164   :  { %v4038_v46 = vadd.s32 4294967294, %v450_v15  ;;  %v4049_v12 = vmin.u32 %v760_v28, %v5503_v37  ;;  %v656_v21 = vsub.s32 0, %v5545_v42  ;;  %v960_v35 = vadd.s32 1, %v5549_v18  ;;  %4549 = vmatprep.subr.bf16.mxu1 %v4548_v44 }
 0x165   :  { %v8260_v14 = vand.u32 2147483647, %v5520_v4  ;;  %v4052_v49 = vadd.s32 4294967169, %v802_v55  ;;  %v5572_v40 = vor.u32 %v352_v8, %v351_v51  ;;  %v5574_v15 = vor.u32 4788187, %v356_v32  ;;  %4551 = vmatpush3.bf16.msra.mxu1 %v4548_v44  ;;  %v1021_v44 = vld [vmem:[%s8226_s3 + $0x78] sm:$0xff] }
 0x166   :  { %v957_v28 = vmul.u32 %v950_v11, %v941_v23  ;;  %vm959_vm7 = vc.u32 %v5556_v22, %v5548_v48  ;;  %v542_v29 = vadd.s32 %v5201_v36, %v5206_v30  ;;  %4553 = vmatprep.subr.bf16.mxu1 %v4552_v54  ;;  %v4556_v41 = vpack.c.bf16 %v1019_v25, %v1018_v27  ;;  %v1020_v11 = vld [vmem:[%s8226_s3 + $0x70] sm:$0xff] }
 0x167   :  { %v961_v16 = vsel %vm959_vm7, %v960_v35, %v5549_v18  ;;  %v808_v43 = vadd.s32 1, %v4052_v49  ;;  %v558_v55 = vsub.s32 32, %v5516_v57  ;;  %v5582_v59 = vadd.s32 127, %v562_v2 }
 0x168   :  { %vm4039_vm8 = vcmp.lt.s32.totalorder %v4038_v46, 0  ;;  %v962_v45 = vadd.s32 %v961_v16, %v957_v28  ;;  %v762_v36 = vclz %v4049_v12  ;;  %v5591_v30 = vmin.u32 %v656_v21, %v5545_v42 }
 0x169   :  { %v805_v18 = vand.u32 8388607, %v8260_v14  ;;  %vm809_vm9 = vcmp.gt.s32.totalorder %v808_v43, 0  ;;  %4555 = vmatpush3.bf16.msra.mxu1 %v4552_v54  ;;  %v5601_v51 = vadd.s32 %v5285_v62, %v5291_v3  ;;  %v4560_v12 = vpack.c.bf16 %v1021_v44, %v1020_v11 }
 0x16a   :  { %v963_v32 = vadd.s32 536870912, %v962_v45  ;;  %v810_v9 = vsel %vm809_vm9, %v808_v43, 0  ;;  %4557 = vmatprep.subr.bf16.mxu1 %v4556_v41  ;;  %v5603_v27 = vshrl.u32 %v542_v29, %v558_v55  ;;  %v564_v25 = vshll.u32 %v5582_v59, 23 }
 0x16b   :  { %v812_v2 = vand.u32 31, %v810_v9  ;;  %v5607_v21 = vsel %vm4039_vm8, 0, %v4038_v46  ;;  %v5611_v54 = vadd.s32 4294967294, %v762_v36  ;;  %v658_v49 = vclz %v5591_v30 }
 0x16c   :  { %v5609_v35 = vshrl.u32 %v963_v32, 30  ;;  %v806_v28 = vor.u32 8388608, %v805_v18  ;;  %v811_v3 = vshrl.u32 %v810_v9, 5  ;;  %v8300_v29 = vmov 2475754826  }
 0x16d   :  { %v813_v16 = vsub.s32 32, %v812_v2  ;;  %v815_v43 = vshll.u32 %v8297_v52, %v812_v2  ;;  %v818_v55 = vshll.u32 %v8300_v29, %v812_v2  ;;  %4559 = vmatpush3.bf16.msra.mxu1 %v4556_v41  ;;  %v821_v11 = vshll.u32 %v8293_v17, %v812_v2 }
 0x16e   :  { %8299 = vst [vmem:[#allocation10_spill] sm:$0xff] %v5609_v35  ;;  %v965_v62 = vshll.u32 %v5609_v35, 30  ;;  %v8301_v44 = vmov 2102212464   ;;  %4561 = vmatprep.subr.bf16.mxu1 %v4560_v12  ;;  %v8302_v32 = vmov 920167782   ;;  %v192_v7 = vshrl.u32 %v8300_v29, %v5330_v33 }
 0x16f   :  { %v816_v59 = vshrl.u32 %v8300_v29, %v813_v16  ;;  %v819_v46 = vshrl.u32 %v8293_v17, %v813_v16  ;;  %v822_v36 = vshrl.u32 %v8301_v44, %v813_v16  ;;  %v824_v18 = vshll.u32 %v8301_v44, %v812_v2 }
 0x170   :  { %v5621_v30 = vsub.s32 %v962_v45, %v965_v62  ;;  %v825_v9 = vshrl.u32 %v8302_v32, %v813_v16  ;;  %v827_v14 = vshll.u32 %v8302_v32, %v812_v2  ;;  %v828_v5 = vshrl.u32 %v8296_v58, %v813_v16 }
 0x171   :  { %v817_v23 = vor.u32 %v816_v59, %v815_v43  ;;  %v820_v8 = vor.u32 %v819_v46, %v818_v55  ;;  %v823_v41 = vor.u32 %v822_v36, %v821_v11  ;;  %v846_v0 = vshll.u32 %v806_v28, 8  ;;  %4563 = vmatpush3.bf16.msra.mxu1 %v4560_v12 }
 0x172   :  { %v968_v35 = vsub.s32 0, %v5621_v30  ;;  %v826_v4 = vor.u32 %v825_v9, %v824_v18  ;;  %v191_v45 = vshll.u32 %v8297_v52, %v5308_v19  ;;  %v829_v62 = vor.u32 %v828_v5, %v827_v14 }
 0x173   :  { %v194_v2 = vshll.u32 %v8300_v29, %v5308_v19  ;;  %v195_v43 = vshrl.u32 %v8293_v17, %v5330_v33  ;;  %v814_v55 = vshrl.u32 %v8297_v52, %v813_v16  ;;  %vm830_vm10 = vcmp.lt.s32.totalorder %v811_v3, 1 }
 0x174   :  { %vm833_vm11 = vcmp.lt.s32.totalorder %v811_v3, 4  ;;  %v197_v12 = vshll.u32 %v8293_v17, %v5308_v19  ;;  %vm832_vm12 = vcmp.lt.s32.totalorder %v811_v3, 3  ;;  %v838_v59 = vsel %vm830_vm10, %v817_v23, %v820_v8 }
 0x175   :  { %v835_v28 = vsel %vm833_vm11, %v823_v41, 2102212464  ;;  %v839_v14 = vsel %vm833_vm11, %v826_v4, 920167782  ;;  %v4057_v5 = vmin.u32 %v968_v35, %v5621_v30  ;;  %vm831_vm13 = vcmp.lt.s32.totalorder %v811_v3, 2 }
 0x176   :  { %v840_v46 = vsel %vm832_vm12, %v823_v41, %v839_v14  ;;  %v842_v11 = vsel %vm830_vm10, %v820_v8, %v823_v41  ;;  %v834_v36 = vsel %vm830_vm10, %v814_v55, %v817_v23  ;;  %v843_v9 = vsel %vm833_vm11, %v829_v62, 1326507024 }
 0x177   :  { %v841_v18 = vsel %vm831_vm13, %v838_v59, %v840_v46  ;;  %v198_v16 = vshrl.u32 %v8301_v44, %v5330_v33  ;;  %v836_v58 = vsel %vm832_vm12, %v820_v8, %v835_v28  ;;  %v844_v32 = vsel %vm832_vm12, %v826_v4, %v843_v9 }
 0x178   :  { %v5643_v29 = vmul.u32.u64.low %v846_v0, %v841_v18  ;;  %v5644_v19 = vmul.u32.u64.high %v846_v0, %v841_v18, %v5643_v29  ;;  %v845_v17 = vsel %vm831_vm13, %v842_v11, %v844_v32  ;;  %v193_v6 = vor.u32 %v192_v7, %v191_v45 }
 0x179   :  { %v196_v35 = vor.u32 %v195_v43, %v194_v2  ;;  %v199_v61 = vor.u32 %v198_v16, %v197_v12  ;;  %v5648_v14 = vor.u32 4788187, %v564_v25  ;;  %v458_v23 = vsub.s32 4294967266, %v5607_v21 }
 0x17a   :  { %v5651_v41 = vmul.u32.u64.low %v846_v0, %v845_v17  ;;  %v5652_v62 = vmul.u32.u64.high %v846_v0, %v845_v17, %v5651_v41  ;;  %vm4051_vm14 = vcmp.lt.s32.totalorder %v5611_v54, 0  ;;  %v4046_v8 = vadd.s32 4294967294, %v658_v49 }
 0x17b   :  { %v837_v4 = vsel %vm831_vm13, %v834_v36, %v836_v58  ;;  %v182_v55 = vor.u32 8388608, %v5334_v31  ;;  %v970_v28 = vclz %v4057_v5  ;;  %v856_v32 = vadd.s32 1, %v5644_v19 }
 0x17c   :  { %vm206_vm0 = vcmp.lt.s32.totalorder %v5366_v53, 1  ;;  %vm208_vm1 = vcmp.lt.s32.totalorder %v5366_v53, 3  ;;  %v459_v58 = vadd.s32 127, %v458_v23  ;;  %v765_v49 = vsel %vm4051_vm14, 0, %v5611_v54 }
 0x17d   :  { %v214_v7 = vsel %vm206_vm0, %v193_v6, %v196_v35  ;;  %v216_v17 = vsel %vm208_vm1, %v199_v61, %v5480_v63  ;;  %v218_v25 = vsel %vm206_vm0, %v196_v35, %v199_v61  ;;  %v220_v31 = vsel %vm208_vm1, %v5453_v1, %v5496_v20 }
 0x17e   :  { %v853_v3 = vmul.u32 %v846_v0, %v837_v4  ;;  %vm855_vm2 = vc.u32 %v5652_v62, %v5643_v29  ;;  %vm4047_vm3 = vcmp.lt.s32.totalorder %v4046_v8, 0  ;;  %vm207_vm4 = vcmp.lt.s32.totalorder %v5366_v53, 2 }
 0x17f   :  { %v857_v45 = vsel %vm855_vm2, %v856_v32, %v5644_v19  ;;  %v211_v63 = vsel %vm209_vm15, %v199_v61, 2102212464  ;;  %v190_v43 = vshrl.u32 %v8297_v52, %v5330_v33  ;;  %v217_v1 = vsel %vm207_vm4, %v214_v7, %v216_v17 }
 0x180   :  { %v858_v2 = vadd.s32 %v857_v45, %v853_v3  ;;  %v221_v0 = vsel %vm207_vm4, %v218_v25, %v220_v31  ;;  %v454_v20 = vsub.s32 32, %v5607_v21  ;;  %v770_v54 = vsub.s32 4294967266, %v765_v49 }
 0x181   :  { %v4058_v12 = vadd.s32 4294967294, %v970_v28  ;;  %v222_v59 = vshll.u32 %v182_v55, 8  ;;  %v5685_v5 = vsel %vm4047_vm3, 0, %v4046_v8  ;;  %v210_v61 = vsel %vm206_vm0, %v190_v43, %v193_v6 }
 0x182   :  { %v859_v46 = vadd.s32 536870912, %v858_v2  ;;  %v212_v33 = vsel %vm208_vm1, %v196_v35, %v211_v63  ;;  %v8303_v16 = vand.u32 2147483647, %v5574_v15  ;;  %v8304_v19 = vcvt.s32.f32 %v5572_v40 }
 0x183   :  { %v5691_v11 = vmul.u32.u64.low %v222_v59, %v221_v0  ;;  %v5692_v36 = vmul.u32.u64.high %v222_v59, %v221_v0, %v5691_v11  ;;  %v5694_v18 = vmul.u32.u64.low %v222_v59, %v217_v1  ;;  %v5695_v9 = vmul.u32.u64.high %v222_v59, %v217_v1, %v5694_v18 }
 0x184   :  { %v361_v23 = vmul.f32 %v8304_v19, %v8303_v16  ;;  %v8305_v41 = vshll.u32 %v5339_v10, %v5516_v57  ;;  %v460_v8 = vshll.u32 %v459_v58, 23  ;;  %v5706_v4 = vshrl.u32 %v859_v46, 30 }
 0x185   :  { %v766_v35 = vsub.s32 32, %v765_v49  ;;  %v771_v55 = vadd.s32 127, %v770_v54  ;;  %vm4059_vm15 = vcmp.lt.s32.totalorder %v4058_v12, 0  ;;  %v213_v28 = vsel %vm207_vm4, %v210_v61, %v212_v33 }
 0x186   :  { %v561_v6 = vor.u32 %v5603_v27, %v8305_v41  ;;  %v566_v32 = vand.u32 2147483647, %v5648_v14  ;;  %v456_v15 = vshrl.u32 %v5601_v51, %v454_v20  ;;  %v666_v40 = vsub.s32 4294967266, %v5685_v5 }
 0x187   :  { %v861_v7 = vshll.u32 %v5706_v4, 30  ;;  %v455_v57 = vshll.u32 %v5439_v38, %v5607_v21  ;;  %v750_v10 = vadd.s32 %v5357_v26, %v5363_v60  ;;  %vm231_vm5 = vc.u32 %v5692_v36, %v5694_v18 }
 0x188   :  { %v232_v53 = vadd.s32 1, %v5695_v9  ;;  %v461_v27 = vor.u32 4788187, %v460_v8  ;;  %v973_v17 = vsel %vm4059_vm15, 0, %v4058_v12  ;;  %v229_v51 = vmul.u32 %v222_v59, %v213_v28 }
 0x189   :  { %v5721_v14 = vsub.s32 %v858_v2, %v861_v7  ;;  %v568_v25 = vcvt.s32.f32 %v561_v6  ;;  %v768_v31 = vshrl.u32 %v750_v10, %v766_v35  ;;  %v772_v58 = vshll.u32 %v771_v55, 23 }
 0x18a   :  { %v233_v3 = vsel %vm231_vm5, %v232_v53, %v5695_v9  ;;  %v457_v45 = vor.u32 %v456_v15, %v455_v57  ;;  %v667_v38 = vadd.s32 127, %v666_v40  ;;  %v362_v60 = vxor.u32 2147483648, %v361_v23 }
 0x18b   :  { %v864_v21 = vsub.s32 0, %v5721_v14  ;;  %v234_v26 = vadd.s32 %v233_v3, %v229_v51  ;;  %v767_v63 = vshll.u32 %v5503_v37, %v765_v49  ;;  %v978_v43 = vsub.s32 4294967266, %v973_v17 }
 0x18c   :  { %v569_v1 = vmul.f32 %v568_v25, %v566_v32  ;;  %v462_v0 = vand.u32 2147483647, %v461_v27  ;;  %vm280_vm6 = vcmp.lt.s32.totalorder %v5082_v34, 0  ;;  %v773_v12 = vor.u32 4788187, %v772_v58 }
 0x18d   :  { %v4053_v2 = vmin.u32 %v864_v21, %v5721_v14  ;;  %v235_v20 = vadd.s32 536870912, %v234_v26  ;;  %v769_v54 = vor.u32 %v768_v31, %v767_v63  ;;  %v662_v59 = vsub.s32 32, %v5685_v5 }
 0x18e   :  { %v464_v46 = vcvt.s32.f32 %v457_v45  ;;  %v668_v61 = vshll.u32 %v667_v38, 23  ;;  %v363_v37 = vsel %vm280_vm6, %v362_v60, %v361_v23  ;;  %v646_v49 = vadd.s32 %v5442_v50, %v5449_v24 }
 0x18f   :  { %v866_v33 = vclz %v4053_v2  ;;  %v5729_v11 = vshrl.u32 %v235_v20, 30  ;;  %v974_v9 = vsub.s32 32, %v973_v17  ;;  %v979_v16 = vadd.s32 127, %v978_v43  ;;  %v8309_v20 = vld [vmem:[#allocation3_spill] sm:$0xff] }
 0x190   :  { %vm488_vm7 = vcmp.lt.s32.totalorder %v5088_v39, 0  ;;  %v570_v19 = vxor.u32 2147483648, %v569_v1  ;;  %v465_v41 = vmul.f32 %v464_v46, %v462_v0  ;;  %v774_v35 = vand.u32 2147483647, %v773_v12 }
 0x191   :  { %v4054_v6 = vadd.s32 4294967294, %v866_v33  ;;  %v237_v8 = vshll.u32 %v5729_v11, 30  ;;  %v776_v55 = vcvt.s32.f32 %v769_v54  ;;  %v664_v28 = vshrl.u32 %v646_v49, %v662_v59 }
 0x192   :  { %v958_v32 = vadd.s32 %v5548_v48, %v5556_v22  ;;  %v663_v23 = vshll.u32 %v5545_v42, %v5685_v5  ;;  %v669_v15 = vor.u32 4788187, %v668_v61  ;;  %v980_v40 = vshll.u32 %v979_v16, 23  ;;  %v8313_v16 = vld [vmem:[#allocation6_spill] sm:$0xff] }
 0x193   :  { %vm4055_vm8 = vcmp.lt.s32.totalorder %v4054_v6, 0  ;;  %v5741_v50 = vsub.s32 %v234_v26, %v237_v8  ;;  %v854_v7 = vadd.s32 %v5643_v29, %v5652_v62  ;;  %v364_v51 = vsub.s32 4, %v5236_v13 }
 0x194   :  { %v976_v24 = vshrl.u32 %v958_v32, %v974_v9  ;;  %v869_v57 = vsel %vm4055_vm8, 0, %v4054_v6  ;;  %v466_v48 = vxor.u32 2147483648, %v465_v41  ;;  %v777_v22 = vmul.f32 %v776_v55, %v774_v35 }
 0x195   :  { %v870_v10 = vsub.s32 32, %v869_v57  ;;  %v874_v53 = vsub.s32 4294967266, %v869_v57  ;;  %v240_v27 = vsub.s32 0, %v5741_v50  ;;  %v665_v25 = vor.u32 %v664_v28, %v663_v23 }
 0x196   :  { %v975_v42 = vshll.u32 %v5621_v30, %v973_v17  ;;  %v871_v5 = vshll.u32 %v5721_v14, %v869_v57  ;;  %v670_v45 = vand.u32 2147483647, %v669_v15  ;;  %v981_v62 = vor.u32 4788187, %v980_v40 }
 0x197   :  { %v872_v31 = vshrl.u32 %v854_v7, %v870_v10  ;;  %v875_v58 = vadd.s32 127, %v874_v53  ;;  %v4029_v3 = vmin.u32 %v240_v27, %v5741_v50  ;;  %v8306_v38 = vand.u32 2147483647, %v5082_v34  ;;  %v8314_v7 = vld [vmem:[#allocation4_spill] sm:$0xff]  ;;  %v8315_v10 = vld [vmem:[#allocation5_spill] sm:$0xff] }
 0x198   :  { %v977_v29 = vor.u32 %v976_v24, %v975_v42  ;;  %v365_v30 = vsel %vm280_vm6, %v364_v51, %v5236_v13  ;;  %v571_v17 = vsel %vm488_vm7, %v570_v19, %v569_v1  ;;  %vm384_vm10 = vcmp.lt.s32.totalorder %v5097_v47, 0  ;;  %v8316_v53 = vld [vmem:[#allocation9_spill] sm:$0xff] }
 0x199   :  { %vm5752_vm9 = vcmp.le.f32.partialorder %v8306_v38, 0.7853982  ;;  %v873_v26 = vor.u32 %v872_v31, %v871_v5  ;;  %v876_v60 = vshll.u32 %v875_v58, 23  ;;  %v242_v63 = vclz %v4029_v3 }
 0x19a   :  { %v672_v14 = vcvt.s32.f32 %v665_v25  ;;  %v366_v43 = vsel %vm5752_vm9, %v5082_v34, %v363_v37  ;;  %v467_v0 = vsel %vm384_vm10, %v466_v48, %v465_v41  ;;  %vm696_vm11 = vcmp.lt.s32.totalorder %v5244_v56, 0 }
 0x19b   :  { %v778_v2 = vxor.u32 2147483648, %v777_v22  ;;  %vm592_vm12 = vcmp.lt.s32.totalorder %v8309_v20, 0  ;;  %v877_v54 = vor.u32 4788187, %v876_v60  ;;  %v4030_v13 = vadd.s32 4294967294, %v242_v63 }
 0x19c   :  { %v673_v12 = vmul.f32 %v672_v14, %v670_v45  ;;  %v982_v59 = vand.u32 2147483647, %v981_v62  ;;  %v984_v1 = vcvt.s32.f32 %v977_v29  ;;  %v367_v46 = vsel %vm5752_vm9, 0, %v365_v30 }
 0x19d   :  { %v878_v61 = vand.u32 2147483647, %v877_v54  ;;  %v880_v33 = vcvt.s32.f32 %v873_v26  ;;  %vm4031_vm13 = vcmp.lt.s32.totalorder %v4030_v13, 0  ;;  %4810 = vcosq.f32 %v366_v43 }
 0x19e   :  { %v245_v37 = vsel %vm4031_vm13, 0, %v4030_v13  ;;  %4812 = vsinq.f32 %v366_v43  ;;  %v8310_v49 = vand.u32 2147483647, %v5097_v47  ;;  %v468_v19 = vsub.s32 4, %v8313_v16 }
 0x19f   :  { %v881_v41 = vmul.f32 %v880_v33, %v878_v61  ;;  %v230_v6 = vadd.s32 %v5694_v18, %v5692_v36  ;;  %v246_v8 = vsub.s32 32, %v245_v37  ;;  %v250_v35 = vsub.s32 4294967266, %v245_v37  ;;  %v8317_v36 = vld [vmem:[#allocation2_spill] sm:$0xff] }
 0x1a0   :  { %vm5773_vm14 = vcmp.le.f32.partialorder %v8310_v49, 0.7853982  ;;  %v674_v55 = vxor.u32 2147483648, %v673_v12  ;;  %v985_v28 = vmul.f32 %v984_v1, %v982_v59  ;;  %v371_v32 = vadd.s32 3, %v367_v46  ;;  %v8330_v1 = vld [vmem:[#allocation8_spill] sm:$0xff] }
 0x1a1   :  { %v470_v23 = vsel %vm5773_vm14, %v5097_v47, %v467_v0  ;;  %v247_v15 = vshll.u32 %v5741_v50, %v245_v37  ;;  %v248_v24 = vshrl.u32 %v230_v6, %v246_v8  ;;  %v251_v40 = vadd.s32 127, %v250_v35 }
 0x1a2   :  { %v572_v57 = vsub.s32 4, %v8314_v7  ;;  %vm904_vm0 = vcmp.lt.s32.totalorder %v8315_v10, 0  ;;  %vm800_vm1 = vcmp.lt.s32.totalorder %v8316_v53, 0  ;;  %vm176_vm2 = vcmp.lt.s32.totalorder %v8317_v36, 0 }
 0x1a3   :  { %v469_v18 = vsel %vm384_vm10, %v468_v19, %v8313_v16  ;;  %v8318_v27 = vand.u32 2147483647, %v5088_v39  ;;  %v882_v50 = vxor.u32 2147483648, %v881_v41  ;;  %v249_v48 = vor.u32 %v248_v24, %v247_v15 }
 0x1a4   :  { %v252_v25 = vshll.u32 %v251_v40, 23  ;;  %v779_v5 = vsel %vm696_vm11, %v778_v2, %v777_v22  ;;  %v675_v31 = vsel %vm592_vm12, %v674_v55, %v673_v12  ;;  %v986_v58 = vxor.u32 2147483648, %v985_v28 }
 0x1a5   :  { %vm5793_vm3 = vcmp.le.f32.partialorder %v8318_v27, 0.7853982  ;;  %4814 = vcosq.f32 %v470_v23  ;;  %v8321_v3 = vand.u32 2147483647, %v8317_v36  ;;  %v372_v62 = vand.u32 3, %v371_v32 }
 0x1a6   :  { %v574_v42 = vsel %vm5793_vm3, %v5088_v39, %v571_v17  ;;  %v253_v29 = vor.u32 4788187, %v252_v25  ;;  %4816 = vsinq.f32 %v470_v23  ;;  %v573_v38 = vsel %vm488_vm7, %v572_v57, %v8314_v7 }
 0x1a7   :  { %vm5806_vm4 = vcmp.le.f32.partialorder %v8321_v3, 0.7853982  ;;  %v260_v22 = vsub.s32 4, %v5729_v11  ;;  %v471_v21 = vsel %vm5773_vm14, 0, %v469_v18  ;;  %4818 = vcosq.f32 %v574_v42  ;;  %v4811_v63 = vpop.eup %4810 }
 0x1a8   :  { %v8324_v26 = vand.u32 2147483647, %v8309_v20  ;;  %v883_v30 = vsel %vm800_vm1, %v882_v50, %v881_v41  ;;  %v254_v17 = vand.u32 2147483647, %v253_v29  ;;  %v256_v14 = vcvt.s32.f32 %v249_v48  ;;  %v4813_v0 = vpop.eup %4812 }
 0x1a9   :  { %v987_v2 = vsel %vm904_vm0, %v986_v58, %v985_v28  ;;  %v575_v54 = vsel %vm5793_vm3, 0, %v573_v38  ;;  %4820 = vsinq.f32 %v574_v42  ;;  %v8327_v13 = vand.u32 2147483647, %v5244_v56  ;;  %v8334_v28 = vld [vmem:[#allocation7_spill] sm:$0xff] }
 0x1aa   :  { %vm5818_vm15 = vcmp.le.f32.partialorder %v8324_v26, 0.7853982  ;;  %v257_v59 = vmul.f32 %v256_v14, %v254_v17  ;;  %vm373_vm6 = vcmp.lt.s32.totalorder %v372_v62, 2  ;;  %v676_v46 = vsub.s32 4, %v8330_v1 }
 0x1ab   :  { %v678_v43 = vsel %vm5818_vm15, %v8309_v20, %v675_v31  ;;  %vm5833_vm5 = vcmp.le.f32.partialorder %v8327_v13, 0.7853982  ;;  %v8331_v33 = vand.u32 2147483647, %v8316_v53  ;;  %v378_v49 = vxor.u32 2147483648, %v4811_v63 }
 0x1ac   :  { %v782_v61 = vsel %vm5833_vm5, %v5244_v56, %v779_v5  ;;  %v475_v9 = vadd.s32 3, %v471_v21  ;;  %4822 = vcosq.f32 %v678_v43  ;;  %v258_v19 = vxor.u32 2147483648, %v257_v59  ;;  %v8338_v21 = vld [vmem:[#allocation10_spill] sm:$0xff] }
 0x1ad   :  { %vm5843_vm7 = vcmp.le.f32.partialorder %v8331_v33, 0.7853982  ;;  %v261_v41 = vsel %vm176_vm2, %v260_v22, %v5729_v11  ;;  %v375_v6 = vxor.u32 2147483648, %v4813_v0  ;;  %4824 = vsinq.f32 %v678_v43 }
 0x1ae   :  { %v886_v16 = vsel %vm5843_vm7, %v8316_v53, %v883_v30  ;;  %vm374_vm8 = vcmp.eq.s32.totalorder %v372_v62, 0  ;;  %vm377_vm9 = vcmp.eq.s32.totalorder %v372_v62, 2  ;;  %v579_v8 = vadd.s32 3, %v575_v54 }
 0x1af   :  { %4826 = vcosq.f32 %v782_v61  ;;  %v259_v35 = vsel %vm176_vm2, %v258_v19, %v257_v59  ;;  %v677_v55 = vsel %vm592_vm12, %v676_v46, %v8330_v1  ;;  %v780_v32 = vsub.s32 4, %v8334_v28  ;;  %v4815_v23 = vpop.eup %4814 }
 0x1b0   :  { %4828 = vcosq.f32 %v886_v16  ;;  %v262_v11 = vsel %vm5806_vm4, %v8317_v36, %v259_v35  ;;  %v263_v15 = vsel %vm5806_vm4, 0, %v261_v41  ;;  %v884_v24 = vsub.s32 4, %v5706_v4  ;;  %v4817_v40 = vpop.eup %4816 }
 0x1b1   :  { %4830 = vsinq.f32 %v886_v16  ;;  %v376_v7 = vsel %vm374_vm8, %v4811_v63, %v375_v6  ;;  %v379_v57 = vsel %vm377_vm9, %v378_v49, %v4813_v0  ;;  %v476_v18 = vand.u32 3, %v475_v9  ;;  %v4819_v27 = vpop.eup %4818 }
 0x1b2   :  { %4832 = vcosq.f32 %v262_v11  ;;  %v5865_v51 = vand.u32 3, %v579_v8  ;;  %v679_v50 = vsel %vm5818_vm15, 0, %v677_v55  ;;  %v8335_v48 = vand.u32 2147483647, %v8315_v10 }
 0x1b3   :  { %4834 = vsinq.f32 %v262_v11  ;;  %v267_v42 = vadd.s32 3, %v263_v15  ;;  %v781_v5 = vsel %vm696_vm11, %v780_v32, %v8334_v28  ;;  %v4821_v58 = vpop.eup %4820  ;;  %v380_v3 = vsel %vm373_vm6, %v376_v7, %v379_v57 }
 0x1b4   :  { %vm5871_vm10 = vcmp.le.f32.partialorder %v8335_v48, 0.7853982  ;;  %4836 = vsinq.f32 %v782_v61  ;;  %v479_v45 = vxor.u32 2147483648, %v4817_v40  ;;  %v482_v29 = vxor.u32 2147483648, %v4815_v23 }
 0x1b5   :  { %v990_v31 = vsel %vm5871_vm10, %v8315_v10, %v987_v2  ;;  %v885_v38 = vsel %vm800_vm1, %v884_v24, %v5706_v4  ;;  %vm370_vm12 = vweird.f32 %v5082_v34  ;;  %vm477_vm13 = vcmp.lt.s32.totalorder %v476_v18, 2 }
 0x1b6   :  { %v683_v22 = vadd.s32 3, %v679_v50  ;;  %v988_v26 = vsub.s32 4, %v8338_v21  ;;  %v4823_v60 = vpop.eup %4822  ;;  %vm478_vm11 = vcmp.eq.s32.totalorder %v476_v18, 0  ;;  %vm481_vm14 = vcmp.eq.s32.totalorder %v476_v18, 2 }
 0x1b7   :  { %v783_v63 = vsel %vm5833_vm5, 0, %v781_v5  ;;  %4838 = vcosq.f32 %v990_v31  ;;  %v4825_v62 = vpop.eup %4824  ;;  %v268_v30 = vand.u32 3, %v267_v42  ;;  %v381_v17 = vsel %vm370_vm12, nan, %v380_v3 }
 0x1b8   :  { %vm474_vm2 = vweird.f32 %v5097_v47  ;;  %v887_v4 = vsel %vm5843_vm7, 0, %v885_v38  ;;  %4840 = vsinq.f32 %v990_v31  ;;  %vm266_vm1 = vweird.f32 %v8317_v36 }
 0x1b9   :  { %v5892_v34 = vpop.eup %4826  ;;  %v480_v14 = vsel %vm478_vm11, %v4815_v23, %v479_v45  ;;  %v483_v43 = vsel %vm481_vm14, %v482_v29, %v4817_v40  ;;  %vm581_vm3 = vcmp.lt.s32.totalorder %v5865_v51, 2  ;;  %v583_v0 = vxor.u32 2147483648, %v4821_v58 }
 0x1ba   :  { %v586_v2 = vxor.u32 2147483648, %v4819_v27  ;;  %v4829_v54 = vpop.eup %4828  ;;  %vm582_vm4 = vcmp.eq.s32.totalorder %v5865_v51, 0  ;;  %v684_v13 = vand.u32 3, %v683_v22  ;;  %v787_v12 = vadd.s32 3, %v783_v63 }
 0x1bb   :  { %v989_v59 = vsel %vm904_vm0, %v988_v26, %v8338_v21  ;;  %v4831_v1 = vpop.eup %4830  ;;  %vm585_vm15 = vcmp.eq.s32.totalorder %v5865_v51, 2  ;;  %v687_v46 = vxor.u32 2147483648, %v4825_v62  ;;  %v690_v61 = vxor.u32 2147483648, %v4823_v60 }
 0x1bc   :  { %v891_v33 = vadd.s32 3, %v887_v4  ;;  %v4833_v37 = vpop.eup %4832  ;;  %vm269_vm5 = vcmp.lt.s32.totalorder %v268_v30, 2  ;;  %vm270_vm6 = vcmp.eq.s32.totalorder %v268_v30, 0  ;;  %vm273_vm7 = vcmp.eq.s32.totalorder %v268_v30, 2 }
 0x1bd   :  { %v484_v49 = vsel %vm477_vm13, %v480_v14, %v483_v43  ;;  %v4835_v9 = vpop.eup %4834  ;;  %v274_v16 = vxor.u32 2147483648, %v4833_v37  ;;  %v584_v19 = vsel %vm582_vm4, %v4819_v27, %v583_v0  ;;  %v587_v41 = vsel %vm585_vm15, %v586_v2, %v4821_v58 }
 0x1be   :  { %v991_v6 = vsel %vm5871_vm10, 0, %v989_v59  ;;  %v4837_v8 = vpop.eup %4836  ;;  %v271_v35 = vxor.u32 2147483648, %v4835_v9  ;;  %vm686_vm0 = vcmp.eq.s32.totalorder %v684_v13, 0  ;;  %vm689_vm8 = vcmp.eq.s32.totalorder %v684_v13, 2 }
 0x1bf   :  { %v788_v55 = vand.u32 3, %v787_v12  ;;  %v275_v28 = vsel %vm273_vm7, %v274_v16, %v4835_v9  ;;  %v688_v32 = vsel %vm686_vm0, %v4823_v60, %v687_v46  ;;  %v691_v23 = vsel %vm689_vm8, %v690_v61, %v4825_v62 }
 0x1c0   :  { %v892_v11 = vand.u32 3, %v891_v33  ;;  %v272_v15 = vsel %vm270_vm6, %v4833_v37, %v271_v35  ;;  %v895_v24 = vxor.u32 2147483648, %v4831_v1  ;;  %v898_v40 = vxor.u32 2147483648, %v4829_v54 }
 0x1c1   :  { %v995_v7 = vadd.s32 3, %v991_v6  ;;  %v4839_v57 = vpop.eup %4838  ;;  %v276_v18 = vsel %vm269_vm5, %v272_v15, %v275_v28  ;;  %v485_v27 = vsel %vm474_vm2, nan, %v484_v49  ;;  %v791_v50 = vxor.u32 2147483648, %v4837_v8 }
 0x1c2   :  { %v794_v48 = vxor.u32 2147483648, %v5892_v34  ;;  %v4841_v25 = vpop.eup %4840  ;;  %v277_v42 = vsel %vm266_vm1, nan, %v276_v18  ;;  %v588_v5 = vsel %vm581_vm3, %v584_v19, %v587_v41  ;;  %vm682_vm9 = vweird.f32 %v8309_v20 }
 0x1c3   :  { %vm685_vm10 = vcmp.lt.s32.totalorder %v684_v13, 2  ;;  %4356 = vmatprep.mubr.f32.mxu1 %v277_v42  ;;  %vm790_vm12 = vcmp.eq.s32.totalorder %v788_v55, 0  ;;  %vm894_vm13 = vcmp.eq.s32.totalorder %v892_v11, 0  ;;  %vm897_vm11 = vcmp.eq.s32.totalorder %v892_v11, 2 }
 0x1c4   :  { %v692_v31 = vsel %vm685_vm10, %v688_v32, %v691_v23  ;;  %4357 = vmatmul.mubr.f32.vlgmr.msra.gmra.mrb[0].mxu1 %v381_v17  ;;  %vm793_vm14 = vcmp.eq.s32.totalorder %v788_v55, 2  ;;  %v896_v47 = vsel %vm894_vm13, %v4829_v54, %v895_v24  ;;  %v899_v58 = vsel %vm897_vm11, %v898_v40, %v4831_v1  ;;  %v5926_v17 = vld [vmem:[%s8227_s4] ss:$0 sm:$0xff] }
 0x1c5   :  { %v996_v3 = vand.u32 3, %v995_v7  ;;  %4359 = vmatprep.mubr.f32.mxu1 %v485_v27  ;;  %v792_v36 = vsel %vm790_vm12, %v5892_v34, %v791_v50  ;;  %v795_v45 = vsel %vm793_vm14, %v794_v48, %v4837_v8  ;;  %v999_v29 = vxor.u32 2147483648, %v4841_v25 }
 0x1c6   :  { %v1002_v51 = vxor.u32 2147483648, %v4839_v57  ;;  %vm578_vm2 = vweird.f32 %v5088_v39  ;;  %v693_v38 = vsel %vm682_vm9, nan, %v692_v31  ;;  %vm893_vm1 = vcmp.lt.s32.totalorder %v892_v11, 2 }
 0x1c7   :  { %v589_v22 = vsel %vm578_vm2, nan, %v588_v5  ;;  %vm789_vm3 = vcmp.lt.s32.totalorder %v788_v55, 2  ;;  %v900_v21 = vsel %vm893_vm1, %v896_v47, %v899_v58  ;;  %vm998_vm4 = vcmp.eq.s32.totalorder %v996_v3, 0 }
 0x1c8   :  { %4360 = vmatmul.mubr.f32.gmra.mrb[2].mxu1 %v589_v22  ;;  %v796_v26 = vsel %vm789_vm3, %v792_v36, %v795_v45  ;;  %vm1001_vm15 = vcmp.eq.s32.totalorder %v996_v3, 2  ;;  %vm890_vm5 = vweird.f32 %v8316_v53  ;;  %v1000_v60 = vsel %vm998_vm4, %v4839_v57, %v999_v29 }
 0x1c9   :  { %4362 = vmatprep.mubr.f32.mxu1 %v693_v38  ;;  %v1003_v63 = vsel %vm1001_vm15, %v1002_v51, %v4841_v25  ;;  %vm786_vm6 = vweird.f32 %v5244_v56  ;;  %v901_v62 = vsel %vm890_vm5, nan, %v900_v21  ;;  %vm997_vm7 = vcmp.lt.s32.totalorder %v996_v3, 2 }
 0x1ca   :  { %v797_v39 = vsel %vm786_vm6, nan, %v796_v26  ;;  %v1004_v20 = vsel %vm997_vm7, %v1000_v60, %v1003_v63  ;;  %vm994_vm0 = vweird.f32 %v8315_v10  ;;  %v8339_v58 = vmov 2475754826  }
 0x1cb   :  { %v1005_v30 = vsel %vm994_vm0, nan, %v1004_v20  ;;  %v8340_v45 = vmov 2131351028   ;;  %v8341_v38 = vmov 920167782  }
 0x1cc   :  { %4363 = vmatmul.mubr.f32.gmra.mrb[4].mxu1 %v797_v39  ;;  %v8342_v39 = vmov 1326507024  }
 0x1cd   :  { %4365 = vmatprep.mubr.f32.mxu1 %v901_v62 }
 0x1d0   :  { %4366 = vmatmul.mubr.f32.gmra.mrb[6].mxu1 %v1005_v30 }
 0x297   :  { %v4358_v53 = vpop.f32.mrb[0].mxu1 }
 0x298   :  { %v5929_v4 = vadd.f32 %v4358_v53, %v5926_v17  ;;  %v1095_v56 = vpop.f32.mrb[1].mxu1 }
 0x299   :  { %v5932_v34 = vadd.f32 %v5926_v17, %v1095_v56 }
 0x29a   :  { %v1238_v14 = vand.u32 2147483647, %v5929_v4  ;;  %v1241_v43 = vand.u32 2139095040, %v5929_v4 }
 0x29b   :  { %v1134_v10 = vand.u32 2147483647, %v5932_v34  ;;  %v1137_v0 = vand.u32 2139095040, %v5932_v34  ;;  %v4361_v2 = vpop.f32.mrb[2].mxu1 }
 0x29c   :  { %v1242_v54 = vshrl.u32 %v1241_v43, 23  ;;  %v1245_v13 = vand.u32 8388607, %v1238_v14  ;;  %v5941_v12 = vadd.f32 %v4361_v2, %v5926_v17  ;;  %v1105_v59 = vpop.f32.mrb[3].mxu1 }
 0x29d   :  { %v1138_v1 = vshrl.u32 %v1137_v0, 23  ;;  %v1141_v46 = vand.u32 8388607, %v1134_v10  ;;  %v5946_v61 = vadd.f32 %v5926_v17, %v1105_v59 }
 0x29e   :  { %v4065_v33 = vadd.s32 4294967169, %v1242_v54  ;;  %v1446_v37 = vand.u32 2147483647, %v5941_v12  ;;  %v1246_v49 = vor.u32 8388608, %v1245_v13  ;;  %v1449_v16 = vand.u32 2139095040, %v5941_v12 }
 0x29f   :  { %v4061_v9 = vadd.s32 4294967169, %v1138_v1  ;;  %v5950_v19 = vpop.f32.mrb[4].mxu1  ;;  %v1142_v6 = vor.u32 8388608, %v1141_v46  ;;  %v1345_v32 = vand.u32 2139095040, %v5946_v61  ;;  %v1342_v23 = vand.u32 2147483647, %v5946_v61 }
 0x2a0   :  { %v1248_v41 = vadd.s32 1, %v4065_v33  ;;  %v5952_v8 = vpop.f32.mrb[5].mxu1  ;;  %v1450_v55 = vshrl.u32 %v1449_v16, 23  ;;  %v5956_v28 = vand.u32 8388607, %v1446_v37  ;;  %v5960_v15 = vshll.u32 %v1246_v49, 8 }
 0x2a1   :  { %v1144_v35 = vadd.s32 1, %v4061_v9  ;;  %v5964_v27 = vshll.u32 %v1142_v6, 8  ;;  %v5971_v5 = vshrl.u32 %v1345_v32, 23 }
 0x2a2   :  { %vm1249_vm8 = vcmp.gt.s32.totalorder %v1248_v41, 0  ;;  %v4073_v24 = vadd.s32 4294967169, %v1450_v55  ;;  %v1454_v42 = vor.u32 8388608, %v5956_v28 }
 0x2a3   :  { %v1250_v11 = vsel %vm1249_vm8, %v1248_v41, 0  ;;  %vm1145_vm9 = vcmp.gt.s32.totalorder %v1144_v35, 0  ;;  %v5962_v40 = vpop.f32.mrb[6].mxu1 }
 0x2a4   :  { %v1251_v7 = vshrl.u32 %v1250_v11, 5  ;;  %v1252_v57 = vand.u32 31, %v1250_v11  ;;  %v1146_v18 = vsel %vm1145_vm9, %v1144_v35, 0  ;;  %v5966_v50 = vpop.f32.mrb[7].mxu1  ;;  %v5975_v36 = vadd.s32 1, %v4073_v24 }
 0x2a5   :  { %v5968_v48 = vshrl.u32 %v1146_v18, 5  ;;  %v1148_v25 = vand.u32 31, %v1146_v18 }
 0x2a6   :  { %v1253_v31 = vsub.s32 32, %v1252_v57  ;;  %v1255_v47 = vshll.u32 %v8297_v52, %v1252_v57  ;;  %v1258_v3 = vshll.u32 %v8339_v58, %v1252_v57  ;;  %v1261_v29 = vshll.u32 %v8340_v45, %v1252_v57 }
 0x2a7   :  { %v1264_v51 = vshll.u32 %v8301_v44, %v1252_v57  ;;  %v1267_v22 = vshll.u32 %v8341_v38, %v1252_v57  ;;  %vm1270_vm10 = vcmp.lt.s32.totalorder %v1251_v7, 1  ;;  %vm1271_vm12 = vcmp.lt.s32.totalorder %v1251_v7, 2 }
 0x2a8   :  { %v1256_v21 = vshrl.u32 %v8339_v58, %v1253_v31  ;;  %v1259_v26 = vshrl.u32 %v8340_v45, %v1253_v31  ;;  %v1262_v60 = vshrl.u32 %v8301_v44, %v1253_v31  ;;  %v1254_v63 = vshrl.u32 %v8297_v52, %v1253_v31 }
 0x2a9   :  { %v1265_v62 = vshrl.u32 %v8341_v38, %v1253_v31  ;;  %v1268_v20 = vshrl.u32 %v8342_v39, %v1253_v31  ;;  %vm1272_vm13 = vcmp.lt.s32.totalorder %v1251_v7, 3  ;;  %v1149_v43 = vsub.s32 32, %v1148_v25 }
 0x2aa   :  { %v1257_v30 = vor.u32 %v1256_v21, %v1255_v47  ;;  %v1260_v53 = vor.u32 %v1259_v26, %v1258_v3  ;;  %v1263_v56 = vor.u32 %v1262_v60, %v1261_v29  ;;  %vm1273_vm11 = vcmp.lt.s32.totalorder %v1251_v7, 4 }
 0x2ab   :  { %v1266_v0 = vor.u32 %v1265_v62, %v1264_v51  ;;  %v1269_v2 = vor.u32 %v1268_v20, %v1267_v22  ;;  %v1151_v54 = vshll.u32 %v8297_v52, %v1148_v25  ;;  %v1154_v16 = vshll.u32 %v8339_v58, %v1148_v25 }
 0x2ac   :  { %v1274_v13 = vsel %vm1270_vm10, %v1254_v63, %v1257_v30  ;;  %v1275_v59 = vsel %vm1273_vm11, %v1263_v56, 2102212464  ;;  %v1278_v1 = vsel %vm1270_vm10, %v1257_v30, %v1260_v53  ;;  %v1282_v46 = vsel %vm1270_vm10, %v1260_v53, %v1263_v56 }
 0x2ad   :  { %v1276_v33 = vsel %vm1272_vm13, %v1260_v53, %v1275_v59  ;;  %v1279_v49 = vsel %vm1273_vm11, %v1266_v0, 920167782  ;;  %v1283_v9 = vsel %vm1273_vm11, %v1269_v2, 1326507024  ;;  %v1150_v35 = vshrl.u32 %v8297_v52, %v1149_v43 }
 0x2ae   :  { %v1280_v41 = vsel %vm1272_vm13, %v1263_v56, %v1279_v49  ;;  %v1284_v6 = vsel %vm1272_vm13, %v1266_v0, %v1283_v9  ;;  %v1152_v55 = vshrl.u32 %v8339_v58, %v1149_v43  ;;  %v1277_v32 = vsel %vm1271_vm12, %v1274_v13, %v1276_v33 }
 0x2af   :  { %v1281_v11 = vsel %vm1271_vm12, %v1278_v1, %v1280_v41  ;;  %v1285_v24 = vsel %vm1271_vm12, %v1282_v46, %v1284_v6  ;;  %v1155_v57 = vshrl.u32 %v8340_v45, %v1149_v43  ;;  %v1157_v22 = vshll.u32 %v8340_v45, %v1148_v25 }
 0x2b0   :  { %v6001_v18 = vmul.u32.u64.low %v5960_v15, %v1285_v24  ;;  %v6002_v31 = vmul.u32.u64.high %v5960_v15, %v1285_v24, %v6001_v18  ;;  %v6005_v47 = vmul.u32.u64.low %v5960_v15, %v1281_v11  ;;  %v6006_v3 = vmul.u32.u64.high %v5960_v15, %v1281_v11, %v6005_v47 }
 0x2b1   :  { %v1153_v29 = vor.u32 %v1152_v55, %v1151_v54  ;;  %v1156_v51 = vor.u32 %v1155_v57, %v1154_v16  ;;  %v1158_v21 = vshrl.u32 %v8301_v44, %v1149_v43  ;;  %v1293_v7 = vmul.u32 %v5960_v15, %v1277_v32 }
 0x2b2   :  { %v1160_v26 = vshll.u32 %v8301_v44, %v1148_v25  ;;  %v1161_v60 = vshrl.u32 %v8341_v38, %v1149_v43  ;;  %v1164_v63 = vshrl.u32 %v8342_v39, %v1149_v43  ;;  %v1163_v20 = vshll.u32 %v8341_v38, %v1148_v25 }
 0x2b3   :  { %v1159_v62 = vor.u32 %v1158_v21, %v1157_v22  ;;  %vm1166_vm14 = vcmp.lt.s32.totalorder %v5968_v48, 1  ;;  %vm1167_vm2 = vcmp.lt.s32.totalorder %v5968_v48, 2  ;;  %vm1295_vm1 = vc.u32 %v6002_v31, %v6005_v47 }
 0x2b4   :  { %v1296_v30 = vadd.s32 1, %v6006_v3  ;;  %v1162_v53 = vor.u32 %v1161_v60, %v1160_v26  ;;  %vm1168_vm3 = vcmp.lt.s32.totalorder %v5968_v48, 3  ;;  %v1165_v15 = vor.u32 %v1164_v63, %v1163_v20 }
 0x2b5   :  { %vm1169_vm4 = vcmp.lt.s32.totalorder %v5968_v48, 4  ;;  %v1170_v56 = vsel %vm1166_vm14, %v1150_v35, %v1153_v29  ;;  %v1174_v43 = vsel %vm1166_vm14, %v1153_v29, %v1156_v51  ;;  %v1178_v54 = vsel %vm1166_vm14, %v1156_v51, %v1159_v62 }
 0x2b6   :  { %v1297_v0 = vsel %vm1295_vm1, %v1296_v30, %v6006_v3  ;;  %v1171_v25 = vsel %vm1169_vm4, %v1159_v62, 2102212464  ;;  %v1175_v2 = vsel %vm1169_vm4, %v1162_v53, 920167782  ;;  %v1179_v46 = vsel %vm1169_vm4, %v1165_v15, 1326507024 }
 0x2b7   :  { %v1298_v13 = vadd.s32 %v1297_v0, %v1293_v7  ;;  %v1172_v59 = vsel %vm1168_vm3, %v1156_v51, %v1171_v25  ;;  %v1176_v1 = vsel %vm1168_vm3, %v1159_v62, %v1175_v2  ;;  %v1180_v9 = vsel %vm1168_vm3, %v1162_v53, %v1179_v46 }
 0x2b8   :  { %v1173_v33 = vsel %vm1167_vm2, %v1170_v56, %v1172_v59  ;;  %v1177_v49 = vsel %vm1167_vm2, %v1174_v43, %v1176_v1  ;;  %vm1457_vm15 = vcmp.gt.s32.totalorder %v5975_v36, 0  ;;  %v1181_v41 = vsel %vm1167_vm2, %v1178_v54, %v1180_v9 }
 0x2b9   :  { %v1299_v16 = vadd.s32 536870912, %v1298_v13  ;;  %v6032_v6 = vmul.u32.u64.low %v5964_v27, %v1177_v49  ;;  %v6033_v35 = vmul.u32.u64.high %v5964_v27, %v1177_v49, %v6032_v6  ;;  %v1458_v11 = vsel %vm1457_vm15, %v5975_v36, 0 }
 0x2ba   :  { %v6037_v55 = vmul.u32.u64.low %v5964_v27, %v1181_v41  ;;  %v6038_v32 = vmul.u32.u64.high %v5964_v27, %v1181_v41, %v6037_v55  ;;  %v4069_v24 = vadd.s32 4294967169, %v5971_v5  ;;  %v1460_v18 = vand.u32 31, %v1458_v11 }
 0x2bb   :  { %v6042_v57 = vshrl.u32 %v1299_v16, 30  ;;  %v1189_v3 = vmul.u32 %v5964_v27, %v1173_v33  ;;  %v6047_v48 = vshll.u32 %v1454_v42, 8  ;;  %v6051_v29 = vand.u32 8388607, %v1342_v23 }
 0x2bc   :  { %v1192_v22 = vadd.s32 1, %v6033_v35  ;;  %v1459_v36 = vshrl.u32 %v1458_v11, 5  ;;  %v1461_v21 = vsub.s32 32, %v1460_v18  ;;  %vm1191_vm5 = vc.u32 %v6038_v32, %v6032_v6 }
 0x2bd   :  { %v1301_v51 = vshll.u32 %v6042_v57, 30  ;;  %v1463_v5 = vshll.u32 %v8297_v52, %v1460_v18  ;;  %v1466_v27 = vshll.u32 %v8339_v58, %v1460_v18  ;;  %v1352_v28 = vadd.s32 1, %v4069_v24 }
 0x2be   :  { %v1193_v7 = vsel %vm1191_vm5, %v1192_v22, %v6033_v35  ;;  %v1464_v26 = vshrl.u32 %v8339_v58, %v1461_v21  ;;  %v1469_v60 = vshll.u32 %v8340_v45, %v1460_v18  ;;  %v1467_v62 = vshrl.u32 %v8340_v45, %v1461_v21 }
 0x2bf   :  { %v6059_v42 = vsub.s32 %v1298_v13, %v1301_v51  ;;  %v1194_v63 = vadd.s32 %v1193_v7, %v1189_v3  ;;  %v1470_v20 = vshrl.u32 %v8301_v44, %v1461_v21  ;;  %v1472_v30 = vshll.u32 %v8301_v44, %v1460_v18 }
 0x2c0   :  { %v1465_v15 = vor.u32 %v1464_v26, %v1463_v5  ;;  %v1473_v56 = vshrl.u32 %v8341_v38, %v1461_v21  ;;  %v1475_v43 = vshll.u32 %v8341_v38, %v1460_v18  ;;  %v1468_v25 = vor.u32 %v1467_v62, %v1466_v27 }
 0x2c1   :  { %v1304_v53 = vsub.s32 0, %v6059_v42  ;;  %v1195_v0 = vadd.s32 536870912, %v1194_v63  ;;  %v1471_v2 = vor.u32 %v1470_v20, %v1469_v60  ;;  %v1476_v54 = vshrl.u32 %v8342_v39, %v1461_v21 }
 0x2c2   :  { %v1462_v59 = vshrl.u32 %v8297_v52, %v1461_v21  ;;  %v1474_v1 = vor.u32 %v1473_v56, %v1472_v30  ;;  %vm1478_vm6 = vcmp.lt.s32.totalorder %v1459_v36, 1  ;;  %vm1480_vm7 = vcmp.lt.s32.totalorder %v1459_v36, 3 }
 0x2c3   :  { %v4066_v13 = vmin.u32 %v1304_v53, %v6059_v42  ;;  %v6073_v46 = vshrl.u32 %v1195_v0, 30  ;;  %v1477_v33 = vor.u32 %v1476_v54, %v1475_v43  ;;  %vm1481_vm0 = vcmp.lt.s32.totalorder %v1459_v36, 4 }
 0x2c4   :  { %v1482_v9 = vsel %vm1478_vm6, %v1462_v59, %v1465_v15  ;;  %v1483_v16 = vsel %vm1481_vm0, %v1471_v2, 2102212464  ;;  %v1486_v41 = vsel %vm1478_vm6, %v1465_v15, %v1468_v25  ;;  %v1487_v11 = vsel %vm1481_vm0, %v1474_v1, 920167782 }
 0x2c5   :  { %v1306_v49 = vclz %v4066_v13  ;;  %v1197_v35 = vshll.u32 %v6073_v46, 30  ;;  %v1484_v55 = vsel %vm1480_vm7, %v1468_v25, %v1483_v16  ;;  %v1490_v24 = vsel %vm1478_vm6, %v1468_v25, %v1471_v2 }
 0x2c6   :  { %vm1479_vm8 = vcmp.lt.s32.totalorder %v1459_v36, 2  ;;  %v1488_v3 = vsel %vm1480_vm7, %v1471_v2, %v1487_v11  ;;  %v1491_v51 = vsel %vm1481_vm0, %v1477_v33, 1326507024  ;;  %vm1353_vm10 = vcmp.gt.s32.totalorder %v1352_v28, 0 }
 0x2c7   :  { %v4067_v18 = vadd.s32 4294967294, %v1306_v49  ;;  %v6078_v22 = vsub.s32 %v1194_v63, %v1197_v35  ;;  %v1485_v21 = vsel %vm1479_vm8, %v1482_v9, %v1484_v55  ;;  %v1489_v5 = vsel %vm1479_vm8, %v1486_v41, %v1488_v3 }
 0x2c8   :  { %v1492_v27 = vsel %vm1480_vm7, %v1474_v1, %v1491_v51  ;;  %v6082_v26 = vmul.u32.u64.low %v6047_v48, %v1489_v5  ;;  %v6083_v60 = vmul.u32.u64.high %v6047_v48, %v1489_v5, %v6082_v26  ;;  %v1294_v63 = vadd.s32 %v6005_v47, %v6002_v31 }
 0x2c9   :  { %vm4068_vm9 = vcmp.lt.s32.totalorder %v4067_v18, 0  ;;  %v1493_v7 = vsel %vm1479_vm8, %v1490_v24, %v1492_v27  ;;  %v1200_v20 = vsub.s32 0, %v6078_v22  ;;  %v1501_v43 = vmul.u32 %v6047_v48, %v1485_v21 }
 0x2ca   :  { %v1309_v62 = vsel %vm4068_vm9, 0, %v4067_v18  ;;  %v6088_v30 = vmul.u32.u64.low %v6047_v48, %v1493_v7  ;;  %v6089_v53 = vmul.u32.u64.high %v6047_v48, %v1493_v7, %v6088_v30  ;;  %v1354_v0 = vsel %vm1353_vm10, %v1352_v28, 0 }
 0x2cb   :  { %v1310_v15 = vsub.s32 32, %v1309_v62  ;;  %v1314_v36 = vsub.s32 4294967266, %v1309_v62  ;;  %v4062_v56 = vmin.u32 %v1200_v20, %v6078_v22  ;;  %v6097_v25 = vadd.f32 %v5950_v19, %v5926_v17 }
 0x2cc   :  { %v1311_v2 = vshll.u32 %v6059_v42, %v1309_v62  ;;  %v1504_v59 = vadd.s32 1, %v6083_v60  ;;  %vm1503_vm12 = vc.u32 %v6089_v53, %v6082_v26  ;;  %v6103_v31 = vshrl.u32 %v1354_v0, 5 }
 0x2cd   :  { %v1312_v54 = vshrl.u32 %v1294_v63, %v1310_v15  ;;  %v1315_v13 = vadd.s32 127, %v1314_v36  ;;  %v1202_v1 = vclz %v4062_v56  ;;  %v1356_v47 = vand.u32 31, %v1354_v0 }
 0x2ce   :  { %v1505_v28 = vsel %vm1503_vm12, %v1504_v59, %v6083_v60  ;;  %v1350_v19 = vor.u32 8388608, %v6051_v29  ;;  %vm1240_vm13 = vcmp.lt.s32.totalorder %v5929_v4, 0  ;;  %v8279_v16 = vand.u32 2147483647, %v6097_v25 }
 0x2cf   :  { %v1313_v33 = vor.u32 %v1312_v54, %v1311_v2  ;;  %v1316_v48 = vshll.u32 %v1315_v13, 23  ;;  %v4063_v42 = vadd.s32 4294967294, %v1202_v1  ;;  %v1506_v49 = vadd.s32 %v1505_v28, %v1501_v43 }
 0x2d0   :  { %v1357_v9 = vsub.s32 32, %v1356_v47  ;;  %vm6111_vm11 = vcmp.le.f32.partialorder %v1238_v14, 0.7853982  ;;  %v1190_v55 = vadd.s32 %v6032_v6, %v6038_v32  ;;  %v1359_v11 = vshll.u32 %v8297_v52, %v1356_v47 }
 0x2d1   :  { %v1317_v35 = vor.u32 4788187, %v1316_v48  ;;  %v1657_v24 = vand.u32 2139095040, %v6097_v25  ;;  %v1320_v18 = vcvt.s32.f32 %v1313_v33  ;;  %vm4064_vm14 = vcmp.lt.s32.totalorder %v4063_v42, 0 }
 0x2d2   :  { %v1507_v3 = vadd.s32 536870912, %v1506_v49  ;;  %v1360_v51 = vshrl.u32 %v8339_v58, %v1357_v9  ;;  %vm1374_vm2 = vcmp.lt.s32.totalorder %v6103_v31, 1  ;;  %v1205_v14 = vsel %vm4064_vm14, 0, %v4063_v42 }
 0x2d3   :  { %v1318_v21 = vand.u32 2147483647, %v1317_v35  ;;  %v1362_v5 = vshll.u32 %v8339_v58, %v1356_v47  ;;  %v1363_v27 = vshrl.u32 %v8340_v45, %v1357_v9  ;;  %v1206_v7 = vsub.s32 32, %v1205_v14 }
 0x2d4   :  { %v1210_v60 = vsub.s32 4294967266, %v1205_v14  ;;  %v6123_v6 = vshrl.u32 %v1507_v3, 30  ;;  %v1366_v32 = vshrl.u32 %v8301_v44, %v1357_v9  ;;  %v1207_v20 = vshll.u32 %v6078_v22, %v1205_v14 }
 0x2d5   :  { %v1321_v62 = vmul.f32 %v1320_v18, %v1318_v21  ;;  %v1361_v30 = vor.u32 %v1360_v51, %v1359_v11  ;;  %v1365_v63 = vshll.u32 %v8340_v45, %v1356_v47  ;;  %v1208_v15 = vshrl.u32 %v1190_v55, %v1206_v7 }
 0x2d6   :  { %v1211_v36 = vadd.s32 127, %v1210_v60  ;;  %v1509_v56 = vshll.u32 %v6123_v6, 30  ;;  %v1368_v43 = vshll.u32 %v8301_v44, %v1356_v47  ;;  %v1369_v2 = vshrl.u32 %v8341_v38, %v1357_v9 }
 0x2d7   :  { %v1322_v0 = vxor.u32 2147483648, %v1321_v62  ;;  %v1371_v54 = vshll.u32 %v8341_v38, %v1356_v47  ;;  %v1372_v13 = vshrl.u32 %v8342_v39, %v1357_v9  ;;  %v1364_v22 = vor.u32 %v1363_v27, %v1362_v5 }
 0x2d8   :  { %v1212_v59 = vshll.u32 %v1211_v36, 23  ;;  %v6133_v1 = vsub.s32 %v1506_v49, %v1509_v56  ;;  %v1367_v33 = vor.u32 %v1366_v32, %v1365_v63  ;;  %v1358_v28 = vshrl.u32 %v8297_v52, %v1357_v9 }
 0x2d9   :  { %v1323_v48 = vsel %vm1240_vm13, %v1322_v0, %v1321_v62  ;;  %v1370_v42 = vor.u32 %v1369_v2, %v1368_v43  ;;  %v1373_v35 = vor.u32 %v1372_v13, %v1371_v54  ;;  %v1209_v11 = vor.u32 %v1208_v15, %v1207_v20 }
 0x2da   :  { %v1326_v55 = vsel %vm6111_vm11, %v5929_v4, %v1323_v48  ;;  %v1213_v47 = vor.u32 4788187, %v1212_v59  ;;  %v1512_v18 = vsub.s32 0, %v6133_v1  ;;  %vm1376_vm1 = vcmp.lt.s32.totalorder %v6103_v31, 3 }
 0x2db   :  { %vm1377_vm3 = vcmp.lt.s32.totalorder %v6103_v31, 4  ;;  %v1378_v49 = vsel %vm1374_vm2, %v1358_v28, %v1361_v30  ;;  %v1658_v3 = vshrl.u32 %v1657_v24, 23  ;;  %v1382_v14 = vsel %vm1374_vm2, %v1361_v30, %v1364_v22 }
 0x2dc   :  { %v1214_v51 = vand.u32 2147483647, %v1213_v47  ;;  %v4074_v9 = vmin.u32 %v1512_v18, %v6133_v1  ;;  %v1379_v21 = vsel %vm1377_vm3, %v1367_v33, 2102212464  ;;  %v1383_v27 = vsel %vm1377_vm3, %v1370_v42, 920167782 }
 0x2dd   :  { %v1380_v5 = vsel %vm1376_vm1, %v1364_v22, %v1379_v21  ;;  %v1386_v7 = vsel %vm1374_vm2, %v1364_v22, %v1367_v33  ;;  %v1387_v60 = vsel %vm1377_vm3, %v1373_v35, 1326507024  ;;  %v1216_v32 = vcvt.s32.f32 %v1209_v11 }
 0x2de   :  { %v1514_v62 = vclz %v4074_v9  ;;  %vm1375_vm4 = vcmp.lt.s32.totalorder %v6103_v31, 2  ;;  %v1384_v24 = vsel %vm1376_vm1, %v1367_v33, %v1383_v27  ;;  %v1388_v63 = vsel %vm1376_vm1, %v1370_v42, %v1387_v60 }
 0x2df   :  { %v1385_v20 = vsel %vm1375_vm4, %v1382_v14, %v1384_v24  ;;  %v1390_v30 = vshll.u32 %v1350_v19, 8  ;;  %v4081_v15 = vadd.s32 4294967169, %v1658_v3  ;;  %v6160_v36 = vmul.f32 %v1216_v32, %v1214_v51 }
 0x2e0   :  { %v4075_v56 = vadd.s32 4294967294, %v1514_v62  ;;  %v1381_v43 = vsel %vm1375_vm4, %v1378_v49, %v1380_v5  ;;  %v1389_v0 = vsel %vm1375_vm4, %v1386_v7, %v1388_v63  ;;  %4842 = vcosq.f32 %v1326_v55 }
 0x2e1   :  { %v6162_v2 = vmul.u32.u64.low %v1390_v30, %v1389_v0  ;;  %v6163_v54 = vmul.u32.u64.high %v1390_v30, %v1389_v0, %v6162_v2  ;;  %v6165_v13 = vmul.u32.u64.low %v1390_v30, %v1385_v20  ;;  %v6166_v59 = vmul.u32.u64.high %v1390_v30, %v1385_v20, %v6165_v13 }
 0x2e2   :  { %vm4076_vm15 = vcmp.lt.s32.totalorder %v4075_v56, 0  ;;  %v1664_v31 = vadd.s32 1, %v4081_v15  ;;  %4844 = vsinq.f32 %v1326_v55  ;;  %v1502_v29 = vadd.s32 %v6082_v26, %v6089_v53 }
 0x2e3   :  { %v1517_v19 = vsel %vm4076_vm15, 0, %v4075_v56  ;;  %v1661_v22 = vand.u32 8388607, %v8279_v16  ;;  %v1397_v28 = vmul.u32 %v1390_v30, %v1381_v43  ;;  %v1218_v42 = vxor.u32 2147483648, %v6160_v36 }
 0x2e4   :  { %v1518_v33 = vsub.s32 32, %v1517_v19  ;;  %v1522_v48 = vsub.s32 4294967266, %v1517_v19  ;;  %vm1665_vm5 = vcmp.gt.s32.totalorder %v1664_v31, 0  ;;  %vm1399_vm6 = vc.u32 %v6163_v54, %v6165_v13 }
 0x2e5   :  { %v1400_v35 = vadd.s32 1, %v6166_v59  ;;  %v1666_v11 = vsel %vm1665_vm5, %v1664_v31, 0  ;;  %v1519_v55 = vshll.u32 %v6133_v1, %v1517_v19  ;;  %v1662_v49 = vor.u32 8388608, %v1661_v22 }
 0x2e6   :  { %v1520_v47 = vshrl.u32 %v1502_v29, %v1518_v33  ;;  %v1523_v26 = vadd.s32 127, %v1522_v48  ;;  %v1668_v53 = vand.u32 31, %v1666_v11  ;;  %v6181_v3 = vadd.f32 %v5926_v17, %v5952_v8 }
 0x2e7   :  { %v1401_v18 = vsel %vm1399_vm6, %v1400_v35, %v6166_v59  ;;  %v6185_v51 = vadd.f32 %v5962_v40, %v5926_v17  ;;  %v1667_v27 = vshrl.u32 %v1666_v11, 5  ;;  %vm1136_vm7 = vcmp.lt.s32.totalorder %v5932_v34, 0 }
 0x2e8   :  { %v1521_v9 = vor.u32 %v1520_v47, %v1519_v55  ;;  %v1524_v21 = vshll.u32 %v1523_v26, 23  ;;  %v1402_v14 = vadd.s32 %v1401_v18, %v1397_v28  ;;  %v1669_v5 = vsub.s32 32, %v1668_v53 }
 0x2e9   :  { %v1671_v1 = vshll.u32 %v8297_v52, %v1668_v53  ;;  %v1674_v7 = vshll.u32 %v8339_v58, %v1668_v53  ;;  %v1677_v60 = vshll.u32 %v8340_v45, %v1668_v53  ;;  %v1680_v8 = vshll.u32 %v8301_v44, %v1668_v53 }
 0x2ea   :  { %v1525_v32 = vor.u32 4788187, %v1524_v21  ;;  %v1528_v62 = vcvt.s32.f32 %v1521_v9  ;;  %v1403_v24 = vadd.s32 536870912, %v1402_v14  ;;  %v1672_v20 = vshrl.u32 %v8339_v58, %v1669_v5  ;;  %v6195_v15 = vpop.eup %4842 }
 0x2eb   :  { %v1675_v40 = vshrl.u32 %v8340_v45, %v1669_v5  ;;  %v1678_v63 = vshrl.u32 %v8301_v44, %v1669_v5  ;;  %v1681_v30 = vshrl.u32 %v8341_v38, %v1669_v5  ;;  %v1683_v0 = vshll.u32 %v8341_v38, %v1668_v53 }
 0x2ec   :  { %v1526_v56 = vand.u32 2147483647, %v1525_v32  ;;  %v6197_v43 = vshrl.u32 %v1403_v24, 30  ;;  %v1684_v2 = vshrl.u32 %v8342_v39, %v1669_v5  ;;  %v6201_v59 = vpop.eup %4844  ;;  %v1673_v31 = vor.u32 %v1672_v20, %v1671_v1 }
 0x2ed   :  { %v1676_v29 = vor.u32 %v1675_v40, %v1674_v7  ;;  %v1679_v19 = vor.u32 %v1678_v63, %v1677_v60  ;;  %v1682_v22 = vor.u32 %v1681_v30, %v1680_v8  ;;  %vm1448_vm0 = vcmp.lt.s32.totalorder %v5941_v12, 0 }
 0x2ee   :  { %v1529_v33 = vmul.f32 %v1528_v62, %v1526_v56  ;;  %v1405_v48 = vshll.u32 %v6197_v43, 30  ;;  %v1685_v28 = vor.u32 %v1684_v2, %v1683_v0  ;;  %v1702_v35 = vshll.u32 %v1662_v49, 8 }
 0x2ef   :  { %v1670_v11 = vshrl.u32 %v8297_v52, %v1669_v5  ;;  %vm1686_vm8 = vcmp.lt.s32.totalorder %v1667_v27, 1  ;;  %vm1689_vm9 = vcmp.lt.s32.totalorder %v1667_v27, 4  ;;  %v8280_v55 = vand.u32 2147483647, %v6181_v3 }
 0x2f0   :  { %v6208_v47 = vsub.s32 %v1402_v14, %v1405_v48  ;;  %vm1687_vm10 = vcmp.lt.s32.totalorder %v1667_v27, 2  ;;  %v1691_v26 = vsel %vm1689_vm9, %v1679_v19, 2102212464  ;;  %v1694_v53 = vsel %vm1686_vm8, %v1673_v31, %v1676_v29 }
 0x2f1   :  { %vm1688_vm12 = vcmp.lt.s32.totalorder %v1667_v27, 3  ;;  %v1695_v18 = vsel %vm1689_vm9, %v1682_v22, 920167782  ;;  %v1698_v9 = vsel %vm1686_vm8, %v1676_v29, %v1679_v19  ;;  %v1699_v21 = vsel %vm1689_vm9, %v1685_v28, 1326507024 }
 0x2f2   :  { %v1530_v1 = vxor.u32 2147483648, %v1529_v33  ;;  %v1408_v7 = vsub.s32 0, %v6208_v47  ;;  %v1690_v60 = vsel %vm1686_vm8, %v1670_v11, %v1673_v31  ;;  %v1696_v49 = vsel %vm1688_vm12, %v1679_v19, %v1695_v18 }
 0x2f3   :  { %v1692_v32 = vsel %vm1688_vm12, %v1676_v29, %v1691_v26  ;;  %v1697_v5 = vsel %vm1687_vm10, %v1694_v53, %v1696_v49  ;;  %v1700_v62 = vsel %vm1688_vm12, %v1682_v22, %v1699_v21  ;;  %v1553_v24 = vand.u32 2139095040, %v6181_v3 }
 0x2f4   :  { %v4070_v14 = vmin.u32 %v1408_v7, %v6208_v47  ;;  %v1701_v8 = vsel %vm1687_vm10, %v1698_v9, %v1700_v62  ;;  %v6215_v20 = vmul.u32.u64.low %v1702_v35, %v1697_v5  ;;  %v6216_v40 = vmul.u32.u64.high %v1702_v35, %v1697_v5, %v6215_v20 }
 0x2f5   :  { %v6219_v63 = vmul.u32.u64.low %v1702_v35, %v1701_v8  ;;  %v6220_v30 = vmul.u32.u64.high %v1702_v35, %v1701_v8, %v6219_v63  ;;  %v1554_v56 = vshrl.u32 %v1553_v24, 23  ;;  %v1557_v0 = vand.u32 8388607, %v8280_v55 }
 0x2f6   :  { %v1410_v2 = vclz %v4070_v14  ;;  %v1693_v31 = vsel %vm1687_vm10, %v1690_v60, %v1692_v32  ;;  %v1865_v29 = vand.u32 2139095040, %v6185_v51  ;;  %v6228_v19 = vadd.f32 %v5926_v17, %v5966_v50 }
 0x2f7   :  { %v6235_v22 = vsel %vm1136_vm7, %v1218_v42, %v6160_v36  ;;  %v6239_v48 = vsel %vm1448_vm0, %v1530_v1, %v1529_v33  ;;  %v1398_v27 = vadd.s32 %v6165_v13, %v6163_v54  ;;  %v4077_v28 = vadd.s32 4294967169, %v1554_v56 }
 0x2f8   :  { %v4071_v11 = vadd.s32 4294967294, %v1410_v2  ;;  %v1712_v26 = vadd.s32 1, %v6216_v40  ;;  %v8278_v17 = vand.u32 2147483647, %v6185_v51  ;;  %v1866_v50 = vshrl.u32 %v1865_v29, 23 }
 0x2f9   :  { %v1709_v53 = vmul.u32 %v1702_v35, %v1693_v31  ;;  %vm1711_vm14 = vc.u32 %v6220_v30, %v6215_v20  ;;  %v1558_v36 = vor.u32 8388608, %v1557_v0  ;;  %v1560_v42 = vadd.s32 1, %v4077_v28 }
 0x2fa   :  { %vm4072_vm2 = vcmp.lt.s32.totalorder %v4071_v11, 0  ;;  %v1713_v33 = vsel %vm1711_vm14, %v1712_v26, %v6216_v40  ;;  %v4089_v18 = vadd.s32 4294967169, %v1866_v50  ;;  %v8277_v9 = vand.u32 2147483647, %v6228_v19 }
 0x2fb   :  { %v1413_v54 = vsel %vm4072_vm2, 0, %v4071_v11  ;;  %v1714_v13 = vadd.s32 %v1713_v33, %v1709_v53  ;;  %vm1561_vm1 = vcmp.gt.s32.totalorder %v1560_v42, 0  ;;  %v1761_v21 = vand.u32 2139095040, %v6228_v19 }
 0x2fc   :  { %v1414_v1 = vsub.s32 32, %v1413_v54  ;;  %v1418_v7 = vsub.s32 4294967266, %v1413_v54  ;;  %v1562_v60 = vsel %vm1561_vm1, %v1560_v42, 0  ;;  %v6252_v35 = vand.u32 8388607, %v8278_v17 }
 0x2fd   :  { %v1415_v49 = vshll.u32 %v6208_v47, %v1413_v54  ;;  %v1715_v32 = vadd.s32 536870912, %v1714_v13  ;;  %v1564_v5 = vand.u32 31, %v1562_v60  ;;  %v6255_v62 = vshll.u32 %v1558_v36, 8 }
 0x2fe   :  { %v1416_v24 = vshrl.u32 %v1398_v27, %v1414_v1  ;;  %v1419_v14 = vadd.s32 127, %v1418_v7  ;;  %v1563_v8 = vshrl.u32 %v1562_v60, 5  ;;  %v1872_v40 = vadd.s32 1, %v4089_v18 }
 0x2ff   :  { %v6257_v63 = vshrl.u32 %v1715_v32, 30  ;;  %v1565_v56 = vsub.s32 32, %v1564_v5  ;;  %v1567_v0 = vshll.u32 %v8297_v52, %v1564_v5  ;;  %v1762_v2 = vshrl.u32 %v1761_v21, 23 }
 0x300   :  { %v1417_v31 = vor.u32 %v1416_v24, %v1415_v49  ;;  %v1420_v29 = vshll.u32 %v1419_v14, 23  ;;  %v1570_v28 = vshll.u32 %v8339_v58, %v1564_v5  ;;  %v1573_v47 = vshll.u32 %v8340_v45, %v1564_v5 }
 0x301   :  { %v1717_v11 = vshll.u32 %v6257_v63, 30  ;;  %v1568_v26 = vshrl.u32 %v8339_v58, %v1565_v56  ;;  %v1571_v27 = vshrl.u32 %v8340_v45, %v1565_v56  ;;  %v1576_v50 = vshll.u32 %v8301_v44, %v1564_v5 }
 0x302   :  { %v1421_v53 = vor.u32 4788187, %v1420_v29  ;;  %v1424_v36 = vcvt.s32.f32 %v1417_v31  ;;  %v1574_v42 = vshrl.u32 %v8301_v44, %v1565_v56  ;;  %v1577_v33 = vshrl.u32 %v8341_v38, %v1565_v56 }
 0x303   :  { %v6268_v18 = vsub.s32 %v1714_v13, %v1717_v11  ;;  %v1569_v54 = vor.u32 %v1568_v26, %v1567_v0  ;;  %v1572_v21 = vor.u32 %v1571_v27, %v1570_v28  ;;  %v1579_v1 = vshll.u32 %v8341_v38, %v1564_v5 }
 0x304   :  { %v1422_v7 = vand.u32 2147483647, %v1421_v53  ;;  %v1575_v60 = vor.u32 %v1574_v42, %v1573_v47  ;;  %v1578_v49 = vor.u32 %v1577_v33, %v1576_v50  ;;  %v1580_v32 = vshrl.u32 %v8342_v39, %v1565_v56 }
 0x305   :  { %vm1344_vm3 = vcmp.lt.s32.totalorder %v5946_v61, 0  ;;  %v1720_v24 = vsub.s32 0, %v6268_v18  ;;  %v1566_v14 = vshrl.u32 %v8297_v52, %v1565_v56  ;;  %vm1582_vm4 = vcmp.lt.s32.totalorder %v1563_v8, 1 }
 0x306   :  { %vm1583_vm15 = vcmp.lt.s32.totalorder %v1563_v8, 2  ;;  %v1425_v31 = vmul.f32 %v1424_v36, %v1422_v7  ;;  %v1581_v13 = vor.u32 %v1580_v32, %v1579_v1  ;;  %vm1584_vm5 = vcmp.lt.s32.totalorder %v1563_v8, 3 }
 0x307   :  { %vm1585_vm6 = vcmp.lt.s32.totalorder %v1563_v8, 4  ;;  %v4082_v0 = vmin.u32 %v1720_v24, %v6268_v18  ;;  %v1590_v29 = vsel %vm1582_vm4, %v1569_v54, %v1572_v21  ;;  %v1586_v47 = vsel %vm1582_vm4, %v1566_v14, %v1569_v54 }
 0x308   :  { %v1587_v5 = vsel %vm1585_vm6, %v1575_v60, 2102212464  ;;  %v1591_v28 = vsel %vm1585_vm6, %v1578_v49, 920167782  ;;  %v1594_v27 = vsel %vm1582_vm4, %v1572_v21, %v1575_v60  ;;  %v1595_v53 = vsel %vm1585_vm6, %v1581_v13, 1326507024 }
 0x309   :  { %v1588_v11 = vsel %vm1584_vm5, %v1572_v21, %v1587_v5  ;;  %v1592_v26 = vsel %vm1584_vm5, %v1575_v60, %v1591_v28  ;;  %v1722_v50 = vclz %v4082_v0  ;;  %v1870_v36 = vor.u32 8388608, %v6252_v35  ;;  %v1966_v21 = vld [vmem:[%s8228_s5] sm:$0xff]  ;;  %v1967_v35 = vld [vmem:[%s8228_s5 + $0x8] sm:$0xff] }
 0x30a   :  { %v1593_v56 = vsel %vm1583_vm15, %v1590_v29, %v1592_v26  ;;  %v1426_v42 = vxor.u32 2147483648, %v1425_v31  ;;  %v1596_v33 = vsel %vm1584_vm5, %v1578_v49, %v1595_v53  ;;  %v1589_v54 = vsel %vm1583_vm15, %v1586_v47, %v1588_v11 }
 0x30b   :  { %v6282_v1 = vmul.u32.u64.low %v6255_v62, %v1593_v56  ;;  %v6283_v7 = vmul.u32.u64.high %v6255_v62, %v1593_v56, %v6282_v1  ;;  %v4083_v32 = vadd.s32 4294967294, %v1722_v50  ;;  %v1597_v24 = vsel %vm1583_vm15, %v1594_v27, %v1596_v33 }
 0x30c   :  { %vm1873_vm8 = vcmp.gt.s32.totalorder %v1872_v40, 0  ;;  %v6294_v60 = vmul.u32.u64.low %v6255_v62, %v1597_v24  ;;  %v6295_v49 = vmul.u32.u64.high %v6255_v62, %v1597_v24, %v6294_v60  ;;  %v4085_v13 = vadd.s32 4294967169, %v1762_v2 }
 0x30d   :  { %v1874_v14 = vsel %vm1873_vm8, %v1872_v40, 0  ;;  %v1710_v0 = vadd.s32 %v6215_v20, %v6220_v30  ;;  %vm4084_vm9 = vcmp.lt.s32.totalorder %v4083_v32, 0  ;;  %v6299_v5 = vshll.u32 %v1870_v36, 8 }
 0x30e   :  { %v1876_v8 = vand.u32 31, %v1874_v14  ;;  %v6303_v29 = vsel %vm1344_vm3, %v1426_v42, %v1425_v31  ;;  %v1725_v28 = vsel %vm4084_vm9, 0, %v4083_v32  ;;  %v1608_v47 = vadd.s32 1, %v6283_v7 }
 0x30f   :  { %v4564_v11 = vpack.c.bf16 %v1967_v35, %v1966_v21  ;;  %v1730_v26 = vsub.s32 4294967266, %v1725_v28  ;;  %v1605_v27 = vmul.u32 %v6255_v62, %v1589_v54  ;;  %v1875_v40 = vshrl.u32 %v1874_v14, 5 }
 0x310   :  { %v1877_v2 = vsub.s32 32, %v1876_v8  ;;  %v1726_v50 = vsub.s32 32, %v1725_v28  ;;  %vm1607_vm10 = vc.u32 %v6295_v49, %v6282_v1  ;;  %v6310_v20 = vand.u32 8388607, %v8277_v9 }
 0x311   :  { %v1768_v30 = vadd.s32 1, %v4085_v13  ;;  %4565 = vmatprep.subr.bf16.mxu0 %v4564_v11  ;;  %v1727_v31 = vshll.u32 %v6268_v18, %v1725_v28  ;;  %v1731_v56 = vadd.s32 127, %v1730_v26  ;;  %v6314_v53 = vadd.s32 %v6282_v1, %v6295_v49 }
 0x312   :  { %v1609_v36 = vsel %vm1607_vm10, %v1608_v47, %v6283_v7  ;;  %4567 = vmatpush3.bf16.msra.mxu0 %v4564_v11  ;;  %v1879_v42 = vshll.u32 %v8297_v52, %v1876_v8  ;;  %v1880_v33 = vshrl.u32 %v8339_v58, %v1877_v2  ;;  %v1883_v32 = vshrl.u32 %v8340_v45, %v1877_v2 }
 0x313   :  { %v1610_v62 = vadd.s32 %v1609_v36, %v1605_v27  ;;  %v1732_v54 = vshll.u32 %v1731_v56, 23  ;;  %v1882_v24 = vshll.u32 %v8339_v58, %v1876_v8  ;;  %v1885_v21 = vshll.u32 %v8340_v45, %v1876_v8 }
 0x314   :  { %v1886_v18 = vshrl.u32 %v8301_v44, %v1877_v2  ;;  %v1881_v1 = vor.u32 %v1880_v33, %v1879_v42  ;;  %v1888_v60 = vshll.u32 %v8301_v44, %v1876_v8  ;;  %v1889_v7 = vshrl.u32 %v8341_v38, %v1877_v2 }
 0x315   :  { %v1611_v35 = vadd.s32 536870912, %v1610_v62  ;;  %v1728_v49 = vshrl.u32 %v1710_v0, %v1726_v50  ;;  %v1878_v14 = vshrl.u32 %v8297_v52, %v1877_v2  ;;  %v1884_v13 = vor.u32 %v1883_v32, %v1882_v24 }
 0x316   :  { %v1887_v28 = vor.u32 %v1886_v18, %v1885_v21  ;;  %v1890_v11 = vor.u32 %v1889_v7, %v1888_v60  ;;  %v1891_v26 = vshll.u32 %v8341_v38, %v1876_v8  ;;  %v1892_v27 = vshrl.u32 %v8342_v39, %v1877_v2 }
 0x317   :  { %v6326_v47 = vshrl.u32 %v1611_v35, 30  ;;  %v1733_v56 = vor.u32 4788187, %v1732_v54  ;;  %vm1894_vm12 = vcmp.lt.s32.totalorder %v1875_v40, 1  ;;  %vm1896_vm14 = vcmp.lt.s32.totalorder %v1875_v40, 3 }
 0x318   :  { %vm1897_vm2 = vcmp.lt.s32.totalorder %v1875_v40, 4  ;;  %v1893_v42 = vor.u32 %v1892_v27, %v1891_v26  ;;  %v1898_v33 = vsel %vm1894_vm12, %v1878_v14, %v1881_v1  ;;  %v1729_v50 = vor.u32 %v1728_v49, %v1727_v31 }
 0x319   :  { %v1613_v36 = vshll.u32 %v6326_v47, 30  ;;  %v1899_v0 = vsel %vm1897_vm2, %v1887_v28, 2102212464  ;;  %v1902_v24 = vsel %vm1894_vm12, %v1881_v1, %v1884_v13  ;;  %v1903_v21 = vsel %vm1897_vm2, %v1890_v11, 920167782 }
 0x31a   :  { %v1900_v32 = vsel %vm1896_vm14, %v1884_v13, %v1899_v0  ;;  %vm1895_vm1 = vcmp.lt.s32.totalorder %v1875_v40, 2  ;;  %v1904_v8 = vsel %vm1896_vm14, %v1887_v28, %v1903_v21  ;;  %v1906_v2 = vsel %vm1894_vm12, %v1884_v13, %v1887_v28  ;;  %v1969_v13 = vld [vmem:[%s8228_s5 + $0x18] sm:$0xff]  ;;  %v1970_v40 = vld [vmem:[%s8228_s5 + $0x20] sm:$0xff] }
 0x31b   :  { %v6334_v18 = vsub.s32 %v1610_v62, %v1613_v36  ;;  %v1734_v54 = vand.u32 2147483647, %v1733_v56  ;;  %v1901_v35 = vsel %vm1895_vm1, %v1898_v33, %v1900_v32  ;;  %v1905_v60 = vsel %vm1895_vm1, %v1902_v24, %v1904_v8  ;;  %v1968_v62 = vld [vmem:[%s8228_s5 + $0x10] sm:$0xff]  ;;  %v1973_v0 = vld [vmem:[%s8228_s5 + $0x38] sm:$0xff] }
 0x31c   :  { %v1907_v7 = vsel %vm1897_vm2, %v1893_v42, 1326507024  ;;  %v6341_v49 = vmul.u32.u64.low %v6299_v5, %v1905_v60  ;;  %v6342_v1 = vmul.u32.u64.high %v6299_v5, %v1905_v60, %v6341_v49  ;;  %v1736_v28 = vcvt.s32.f32 %v1729_v50 }
 0x31d   :  { %v1616_v14 = vsub.s32 0, %v6334_v18  ;;  %v1908_v31 = vsel %vm1896_vm14, %v1890_v11, %v1907_v7  ;;  %v1766_v27 = vor.u32 8388608, %v6310_v20  ;;  %vm1769_vm4 = vcmp.gt.s32.totalorder %v1768_v30, 0  ;;  %v1971_v11 = vld [vmem:[%s8228_s5 + $0x28] sm:$0xff]  ;;  %v1972_v20 = vld [vmem:[%s8228_s5 + $0x30] sm:$0xff] }
 0x31e   :  { %v1909_v26 = vsel %vm1895_vm1, %v1906_v2, %v1908_v31  ;;  %v1770_v33 = vsel %vm1769_vm4, %v1768_v30, 0  ;;  %v6369_v50 = vmul.f32 %v1736_v28, %v1734_v54  ;;  %v1917_v32 = vmul.u32 %v6299_v5, %v1901_v35 }
 0x31f   :  { %v4078_v56 = vmin.u32 %v1616_v14, %v6334_v18  ;;  %v6360_v36 = vmul.u32.u64.low %v6299_v5, %v1909_v26  ;;  %v6361_v42 = vmul.u32.u64.high %v6299_v5, %v1909_v26, %v6360_v36  ;;  %v1772_v24 = vand.u32 31, %v1770_v33 }
 0x320   :  { %v4568_v21 = vpack.c.bf16 %v1969_v13, %v1968_v62  ;;  %v1920_v2 = vadd.s32 1, %v6342_v1  ;;  %v6373_v60 = vshrl.u32 %v1770_v33, 5  ;;  %v4572_v30 = vpack.c.bf16 %v1971_v11, %v1970_v40 }
 0x321   :  { %v1618_v8 = vclz %v4078_v56  ;;  %v1773_v7 = vsub.s32 32, %v1772_v24  ;;  %v1775_v14 = vshll.u32 %v8297_v52, %v1772_v24  ;;  %v6376_v31 = vshll.u32 %v1766_v27, 8 }
 0x322   :  { %4569 = vmatprep.subr.bf16.mxu0 %v4568_v21  ;;  %v4576_v26 = vpack.c.bf16 %v1973_v0, %v1972_v20  ;;  %vm1919_vm15 = vc.u32 %v6361_v42, %v6341_v49  ;;  %v1778_v5 = vshll.u32 %v8339_v58, %v1772_v24  ;;  %v1781_v54 = vshll.u32 %v8340_v45, %v1772_v24 }
 0x323   :  { %v4079_v36 = vadd.s32 4294967294, %v1618_v8  ;;  %4571 = vmatpush3.bf16.msra.mxu0 %v4568_v21  ;;  %v1921_v35 = vsel %vm1919_vm15, %v1920_v2, %v6342_v1  ;;  %v1776_v62 = vshrl.u32 %v8339_v58, %v1773_v7  ;;  %v1779_v13 = vshrl.u32 %v8340_v45, %v1773_v7 }
 0x324   :  { %v1784_v28 = vshll.u32 %v8301_v44, %v1772_v24  ;;  %4573 = vmatprep.subr.bf16.mxu0 %v4572_v30  ;;  %v1922_v27 = vadd.s32 %v1921_v35, %v1917_v32  ;;  %v1782_v40 = vshrl.u32 %v8301_v44, %v1773_v7  ;;  %v1785_v11 = vshrl.u32 %v8341_v38, %v1773_v7 }
 0x325   :  { %vm4080_vm5 = vcmp.lt.s32.totalorder %v4079_v36, 0  ;;  %v1774_v33 = vshrl.u32 %v8297_v52, %v1773_v7  ;;  %v1777_v20 = vor.u32 %v1776_v62, %v1775_v14  ;;  %v1780_v0 = vor.u32 %v1779_v13, %v1778_v5 }
 0x326   :  { %v1621_v56 = vsel %vm4080_vm5, 0, %v4079_v36  ;;  %v1923_v8 = vadd.s32 536870912, %v1922_v27  ;;  %v1787_v2 = vshll.u32 %v8341_v38, %v1772_v24  ;;  %v1783_v17 = vor.u32 %v1782_v40, %v1781_v54  ;;  %v1975_v54 = vld [vmem:[%s8228_s5 + $0x48] sm:$0xff] }
 0x327   :  { %v1622_v21 = vsub.s32 32, %v1621_v56  ;;  %v1626_v1 = vsub.s32 4294967266, %v1621_v56  ;;  %4575 = vmatpush3.bf16.msra.mxu0 %v4572_v30  ;;  %v1623_v9 = vshll.u32 %v6334_v18, %v1621_v56  ;;  %v1786_v16 = vor.u32 %v1785_v11, %v1784_v28  ;;  %v1976_v56 = vld [vmem:[%s8228_s5 + $0x50] sm:$0xff] }
 0x328   :  { %v1788_v32 = vshrl.u32 %v8342_v39, %v1773_v7  ;;  %4577 = vmatprep.subr.bf16.mxu0 %v4576_v26  ;;  %v6393_v55 = vshrl.u32 %v1923_v8, 30  ;;  %vm1790_vm6 = vcmp.lt.s32.totalorder %v6373_v60, 1  ;;  %vm6398_vm8 = vcmp.le.f32.partialorder %v1134_v10, 0.7853982  ;;  %v1974_v10 = vld [vmem:[%s8228_s5 + $0x40] sm:$0xff] }
 0x329   :  { %v1624_v35 = vshrl.u32 %v6314_v53, %v1622_v21  ;;  %v1627_v36 = vadd.s32 127, %v1626_v1  ;;  %vm1792_vm9 = vcmp.lt.s32.totalorder %v6373_v60, 3  ;;  %vm1793_vm10 = vcmp.lt.s32.totalorder %v6373_v60, 4 }
 0x32a   :  { %v1789_v24 = vor.u32 %v1788_v32, %v1787_v2  ;;  %v1794_v18 = vsel %vm1790_vm6, %v1774_v33, %v1777_v20  ;;  %v1925_v7 = vshll.u32 %v6393_v55, 30  ;;  %v1795_v5 = vsel %vm1793_vm10, %v1783_v17, 2102212464  ;;  %v1977_v33 = vld [vmem:[%s8228_s5 + $0x58] sm:$0xff] }
 0x32b   :  { %v1625_v53 = vor.u32 %v1624_v35, %v1623_v9  ;;  %v1628_v30 = vshll.u32 %v1627_v36, 23  ;;  %4579 = vmatpush3.bf16.msra.mxu0 %v4576_v26  ;;  %vm1791_vm12 = vcmp.lt.s32.totalorder %v6373_v60, 2  ;;  %v1796_v9 = vsel %vm1792_vm9, %v1780_v0, %v1795_v5  ;;  %v1978_v35 = vld [vmem:[%s8228_s5 + $0x60] sm:$0xff] }
 0x32c   :  { %v1798_v62 = vsel %vm1790_vm6, %v1777_v20, %v1780_v0  ;;  %v1799_v13 = vsel %vm1793_vm10, %v1786_v16, 920167782  ;;  %v6422_v40 = vsub.s32 %v1922_v27, %v1925_v7  ;;  %v1802_v11 = vsel %vm1790_vm6, %v1780_v0, %v1783_v17 }
 0x32d   :  { %v1629_v26 = vor.u32 4788187, %v1628_v30  ;;  %v1632_v28 = vcvt.s32.f32 %v1625_v53  ;;  %v1797_v20 = vsel %vm1791_vm12, %v1794_v18, %v1796_v9  ;;  %v1800_v21 = vsel %vm1792_vm9, %v1783_v17, %v1799_v13  ;;  %v1979_v17 = vld [vmem:[%s8228_s5 + $0x68] sm:$0xff]  ;;  %v1981_v9 = vld [vmem:[%s8228_s5 + $0x78] sm:$0xff] }
 0x32e   :  { %v1803_v27 = vsel %vm1793_vm10, %v1789_v24, 1326507024  ;;  %v4580_v1 = vpack.c.bf16 %v1975_v54, %v1974_v10  ;;  %v1928_v0 = vsub.s32 0, %v6422_v40  ;;  %v1801_v2 = vsel %vm1791_vm12, %v1798_v62, %v1800_v21  ;;  %v1980_v54 = vld [vmem:[%s8228_s5 + $0x70] sm:$0xff] }
 0x32f   :  { %v1630_v8 = vand.u32 2147483647, %v1629_v26  ;;  %v1804_v32 = vsel %vm1792_vm9, %v1786_v16, %v1803_v27  ;;  %v6452_v24 = vmul.u32.u64.low %v6376_v31, %v1801_v2  ;;  %v6453_v18 = vmul.u32.u64.high %v6376_v31, %v1801_v2, %v6452_v24 }
 0x330   :  { %v1805_v36 = vsel %vm1791_vm12, %v1802_v11, %v1804_v32  ;;  %4581 = vmatprep.subr.bf16.mxu0 %v4580_v1  ;;  %v4584_v53 = vpack.c.bf16 %v1977_v33, %v1976_v56  ;;  %v4090_v16 = vmin.u32 %v1928_v0, %v6422_v40  ;;  %v1738_v10 = vxor.u32 2147483648, %v6369_v50 }
 0x331   :  { %v6456_v30 = vmul.f32 %v1632_v28, %v1630_v8  ;;  %v6460_v7 = vmul.u32.u64.low %v6376_v31, %v1805_v36  ;;  %v6461_v5 = vmul.u32.u64.high %v6376_v31, %v1805_v36, %v6460_v7  ;;  %4583 = vmatpush3.bf16.msra.mxu0 %v4580_v1  ;;  %v4588_v60 = vpack.c.bf16 %v1979_v17, %v1978_v35 }
 0x332   :  { %4585 = vmatprep.subr.bf16.mxu0 %v4584_v53  ;;  %v1220_v62 = vsub.s32 4, %v6073_v46  ;;  %v1222_v13 = vsel %vm6398_vm8, %v5932_v34, %v6235_v22  ;;  %v1918_v26 = vadd.s32 %v6341_v49, %v6361_v42  ;;  %v1930_v28 = vclz %v4090_v16 }
 0x333   :  { %4846 = vcosq.f32 %v1222_v13  ;;  %v1324_v11 = vsub.s32 4, %v6042_v57  ;;  %v1813_v56 = vmul.u32 %v6376_v31, %v1797_v20  ;;  %v1816_v33 = vadd.s32 1, %v6453_v18 }
 0x334   :  { %v1221_v21 = vsel %vm1136_vm7, %v1220_v62, %v6073_v46  ;;  %4848 = vsinq.f32 %v1222_v13  ;;  %v1634_v27 = vxor.u32 2147483648, %v6456_v30  ;;  %v4091_v1 = vadd.s32 4294967294, %v1930_v28 }
 0x335   :  { %vm1815_vm14 = vc.u32 %v6461_v5, %v6452_v24  ;;  %4587 = vmatpush3.bf16.msra.mxu0 %v4584_v53  ;;  %v4592_v22 = vpack.c.bf16 %v1981_v9, %v1980_v54  ;;  %v1223_v42 = vsel %vm6398_vm8, 0, %v1221_v21  ;;  %v1325_v31 = vsel %vm1240_vm13, %v1324_v11, %v6042_v57 }
 0x336   :  { %v1817_v49 = vsel %vm1815_vm14, %v1816_v33, %v6453_v18  ;;  %4589 = vmatprep.subr.bf16.mxu0 %v4588_v60  ;;  %v1335_v46 = vxor.u32 2147483648, %v6201_v59  ;;  %vm4092_vm7 = vcmp.lt.s32.totalorder %v4091_v1, 0  ;;  %v1227_v8 = vadd.s32 3, %v1223_v42 }
 0x337   :  { %v1818_v20 = vadd.s32 %v1817_v49, %v1813_v56  ;;  %v1327_v0 = vsel %vm6111_vm11, 0, %v1325_v31  ;;  %v1933_v2 = vsel %vm4092_vm7, 0, %v4091_v1  ;;  %v1338_v35 = vxor.u32 2147483648, %v6195_v15 }
 0x338   :  { %v1331_v32 = vadd.s32 3, %v1327_v0  ;;  %v1428_v17 = vsub.s32 4, %v6197_v43  ;;  %v1934_v14 = vsub.s32 32, %v1933_v2  ;;  %v1938_v36 = vsub.s32 4294967266, %v1933_v2 }
 0x339   :  { %v1819_v18 = vadd.s32 536870912, %v1818_v20  ;;  %4591 = vmatpush3.bf16.msra.mxu0 %v4588_v60  ;;  %vm1330_vm13 = vweird.f32 %v5929_v4  ;;  %vm6500_vm2 = vcmp.le.f32.partialorder %v1342_v23, 0.7853982  ;;  %v1935_v41 = vshll.u32 %v6422_v40, %v1933_v2 }
 0x33a   :  { %4593 = vmatprep.subr.bf16.mxu0 %v4592_v22  ;;  %vm1226_vm11 = vweird.f32 %v5932_v34  ;;  %v1228_v53 = vand.u32 3, %v1227_v8  ;;  %v1332_v16 = vand.u32 3, %v1331_v32  ;;  %v1429_v7 = vsel %vm1344_vm3, %v1428_v17, %v6197_v43 }
 0x33b   :  { %v1936_v60 = vshrl.u32 %v1918_v26, %v1934_v14  ;;  %v1939_v54 = vadd.s32 127, %v1938_v36  ;;  %v6509_v9 = vshrl.u32 %v1819_v18, 30  ;;  %v1430_v23 = vsel %vm6500_vm2, %v5946_v61, %v6303_v29 }
 0x33c   :  { %vm1229_vm1 = vcmp.lt.s32.totalorder %v1228_v53, 2  ;;  %vm1230_vm4 = vcmp.eq.s32.totalorder %v1228_v53, 0  ;;  %vm1233_vm15 = vcmp.eq.s32.totalorder %v1228_v53, 2  ;;  %v1431_v40 = vsel %vm6500_vm2, 0, %v1429_v7 }
 0x33d   :  { %v4847_v62 = vpop.eup %4846  ;;  %v1937_v13 = vor.u32 %v1936_v60, %v1935_v41  ;;  %v1940_v28 = vshll.u32 %v1939_v54, 23  ;;  %v1821_v43 = vshll.u32 %v6509_v9, 30  ;;  %4595 = vmatpush3.bf16.msra.mxu0 %v4592_v22  ;;  %vm1334_vm3 = vcmp.eq.s32.totalorder %v1332_v16, 0 }
 0x33e   :  { %v4849_v26 = vpop.eup %4848  ;;  %v1234_v11 = vxor.u32 2147483648, %v4847_v62  ;;  %vm1333_vm5 = vcmp.lt.s32.totalorder %v1332_v16, 2  ;;  %v1336_v56 = vsel %vm1334_vm3, %v6195_v15, %v1335_v46  ;;  %4850 = vcosq.f32 %v1430_v23 }
 0x33f   :  { %v1941_v29 = vor.u32 4788187, %v1940_v28  ;;  %v6519_v33 = vsub.s32 %v1818_v20, %v1821_v43  ;;  %v1231_v21 = vxor.u32 2147483648, %v4849_v26  ;;  %vm1337_vm6 = vcmp.eq.s32.totalorder %v1332_v16, 2 }
 0x340   :  { %v1944_v1 = vcvt.s32.f32 %v1937_v13  ;;  %v1235_v49 = vsel %vm1233_vm15, %v1234_v11, %v4849_v26  ;;  %v1339_v42 = vsel %vm1337_vm6, %v1338_v35, %v6201_v59  ;;  %4852 = vsinq.f32 %v1430_v23 }
 0x341   :  { %v1942_v31 = vand.u32 2147483647, %v1941_v29  ;;  %v1824_v22 = vsub.s32 0, %v6519_v33  ;;  %v1232_v8 = vsel %vm1230_vm4, %v4847_v62, %v1231_v21  ;;  %v1340_v0 = vsel %vm1333_vm5, %v1336_v56, %v1339_v42 }
 0x342   :  { %v1236_v15 = vsel %vm1229_vm1, %v1232_v8, %v1235_v49  ;;  %v1341_v46 = vsel %vm1330_vm13, nan, %v1340_v0  ;;  %v1435_v20 = vadd.s32 3, %v1431_v40  ;;  %vm6530_vm8 = vcmp.le.f32.partialorder %v1446_v37, 0.7853982 }
 0x343   :  { %v6534_v59 = vmul.f32 %v1944_v1, %v1942_v31  ;;  %v4086_v32 = vmin.u32 %v1824_v22, %v6519_v33  ;;  %v1237_v35 = vsel %vm1226_vm11, nan, %v1236_v15  ;;  %v1532_v17 = vsub.s32 4, %v6123_v6 }
 0x344   :  { %vm1656_vm9 = vcmp.lt.s32.totalorder %v6097_v25, 0  ;;  %vm1552_vm10 = vcmp.lt.s32.totalorder %v6181_v3, 0  ;;  %4400 = vmatprep.mubr.f32.mxu0 %v1237_v35  ;;  %v1436_v4 = vand.u32 3, %v1435_v20  ;;  %v1534_v37 = vsel %vm6530_vm8, %v5941_v12, %v6239_v48 }
 0x345   :  { %v1635_v34 = vsel %vm1552_vm10, %v1634_v27, %v6456_v30  ;;  %v1826_v14 = vclz %v4086_v32  ;;  %4401 = vmatmul.mubr.f32.vlgmr.msra.gmra.mrb[8].mxu0 %v1341_v46  ;;  %v1533_v36 = vsel %vm1448_vm0, %v1532_v17, %v6123_v6  ;;  %4854 = vcosq.f32 %v1534_v37 }
 0x346   :  { %v1739_v18 = vsel %vm1656_vm9, %v1738_v10, %v6369_v50  ;;  %v1814_v48 = vadd.s32 %v6452_v24, %v6461_v5  ;;  %vm1434_vm12 = vweird.f32 %v5946_v61  ;;  %v1535_v30 = vsel %vm6530_vm8, 0, %v1533_v36 }
 0x347   :  { %v1946_v27 = vxor.u32 2147483648, %v6534_v59  ;;  %v4087_v57 = vadd.s32 4294967294, %v1826_v14  ;;  %4856 = vsinq.f32 %v1534_v37  ;;  %v8351_v6 = vand.u32 2147483647, %v6181_v3 }
 0x348   :  { %v4851_v53 = vpop.eup %4850  ;;  %vm1437_vm14 = vcmp.lt.s32.totalorder %v1436_v4, 2  ;;  %v1539_v50 = vadd.s32 3, %v1535_v30  ;;  %v1636_v24 = vsub.s32 4, %v6326_v47  ;;  %vm1438_vm13 = vcmp.eq.s32.totalorder %v1436_v4, 0 }
 0x349   :  { %vm6567_vm0 = vcmp.le.f32.partialorder %v8351_v6, 0.7853982  ;;  %vm4088_vm7 = vcmp.lt.s32.totalorder %v4087_v57, 0  ;;  %v1442_v10 = vxor.u32 2147483648, %v4851_v53  ;;  %v1740_v54 = vsub.s32 4, %v6257_v63 }
 0x34a   :  { %v1638_v5 = vsel %vm6567_vm0, %v6181_v3, %v1635_v34  ;;  %v4853_v16 = vpop.eup %4852  ;;  %v1829_v7 = vsel %vm4088_vm7, 0, %v4087_v57  ;;  %v1637_v60 = vsel %vm1552_vm10, %v1636_v24, %v6326_v47  ;;  %vm1441_vm2 = vcmp.eq.s32.totalorder %v1436_v4, 2 }
 0x34b   :  { %4858 = vcosq.f32 %v1638_v5  ;;  %v1830_v23 = vsub.s32 32, %v1829_v7  ;;  %v1834_v40 = vsub.s32 4294967266, %v1829_v7  ;;  %v1439_v62 = vxor.u32 2147483648, %v4853_v16 }
 0x34c   :  { %4860 = vsinq.f32 %v1638_v5  ;;  %v1831_v13 = vshll.u32 %v6519_v33, %v1829_v7  ;;  %v1443_v28 = vsel %vm1441_vm2, %v1442_v10, %v4853_v16  ;;  %v1540_v43 = vand.u32 3, %v1539_v50 }
 0x34d   :  { %v8354_v26 = vand.u32 2147483647, %v6097_v25  ;;  %v1832_v56 = vshrl.u32 %v1814_v48, %v1830_v23  ;;  %v1835_v29 = vadd.s32 127, %v1834_v40  ;;  %v1440_v47 = vsel %vm1438_vm13, %v4851_v53, %v1439_v62 }
 0x34e   :  { %v1639_v21 = vsel %vm6567_vm0, 0, %v1637_v60  ;;  %v1444_v1 = vsel %vm1437_vm14, %v1440_v47, %v1443_v28  ;;  %v1741_v33 = vsel %vm1656_vm9, %v1740_v54, %v6257_v63  ;;  %vm1864_vm1 = vcmp.lt.s32.totalorder %v6185_v51, 0 }
 0x34f   :  { %vm6582_vm11 = vcmp.le.f32.partialorder %v8354_v26, 0.7853982  ;;  %v1643_v49 = vadd.s32 3, %v1639_v21  ;;  %v4855_v31 = vpop.eup %4854  ;;  %v1833_v22 = vor.u32 %v1832_v56, %v1831_v13  ;;  %v1836_v8 = vshll.u32 %v1835_v29, 23 }
 0x350   :  { %v1742_v42 = vsel %vm6582_vm11, %v6097_v25, %v1739_v18  ;;  %v1445_v0 = vsel %vm1434_vm12, nan, %v1444_v1  ;;  %vm1760_vm4 = vcmp.lt.s32.totalorder %v6228_v19, 0  ;;  %v1546_v15 = vxor.u32 2147483648, %v4855_v31 }
 0x351   :  { %4403 = vmatprep.mubr.f32.mxu0 %v1445_v0  ;;  %v1644_v46 = vand.u32 3, %v1643_v49  ;;  %v1743_v63 = vsel %vm6582_vm11, 0, %v1741_v33  ;;  %4862 = vcosq.f32 %v1742_v42  ;;  %v4857_v20 = vpop.eup %4856  ;;  %v1837_v2 = vor.u32 4788187, %v1836_v8 }
 0x352   :  { %vm1538_vm15 = vweird.f32 %v5941_v12  ;;  %vm1545_vm3 = vcmp.eq.s32.totalorder %v1540_v43, 2  ;;  %4864 = vsinq.f32 %v1742_v42  ;;  %v1947_v61 = vsel %vm1864_vm1, %v1946_v27, %v6534_v59 }
 0x353   :  { %v1543_v32 = vxor.u32 2147483648, %v4857_v20  ;;  %v1547_v35 = vsel %vm1545_vm3, %v1546_v15, %v4857_v20  ;;  %vm1642_vm5 = vweird.f32 %v6181_v3  ;;  %v1838_v4 = vand.u32 2147483647, %v1837_v2 }
 0x354   :  { %v1840_v37 = vcvt.s32.f32 %v1833_v22  ;;  %vm1542_vm6 = vcmp.eq.s32.totalorder %v1540_v43, 0  ;;  %v1747_v34 = vadd.s32 3, %v1743_v63  ;;  %vm1541_vm8 = vcmp.lt.s32.totalorder %v1540_v43, 2 }
 0x355   :  { %v4859_v17 = vpop.eup %4858  ;;  %v1544_v36 = vsel %vm1542_vm6, %v4855_v31, %v1543_v32  ;;  %vm1649_vm9 = vcmp.eq.s32.totalorder %v1644_v46, 2  ;;  %v1844_v6 = vsub.s32 4, %v6509_v9  ;;  %vm1645_vm10 = vcmp.lt.s32.totalorder %v1644_v46, 2 }
 0x356   :  { %v4861_v14 = vpop.eup %4860  ;;  %v1650_v18 = vxor.u32 2147483648, %v4859_v17  ;;  %v1841_v48 = vmul.f32 %v1840_v37, %v1838_v4  ;;  %v1548_v30 = vsel %vm1541_vm8, %v1544_v36, %v1547_v35  ;;  %vm1646_vm12 = vcmp.eq.s32.totalorder %v1644_v46, 0  ;;  %v6649_v37 = vld [vmem:[%s8229_s6] ss:$0 sm:$0xff] }
 0x357   :  { %v1647_v57 = vxor.u32 2147483648, %v4861_v14  ;;  %v1549_v59 = vsel %vm1538_vm15, nan, %v1548_v30  ;;  %v1748_v50 = vand.u32 3, %v1747_v34  ;;  %v8357_v24 = vand.u32 2147483647, %v6185_v51 }
 0x358   :  { %v1651_v27 = vsel %vm1649_vm9, %v1650_v18, %v4861_v14  ;;  %v1842_v41 = vxor.u32 2147483648, %v1841_v48  ;;  %4404 = vmatmul.mubr.f32.gmra.mrb[10].mxu0 %v1549_v59  ;;  %v8360_v16 = vand.u32 2147483647, %v6228_v19  ;;  %v1948_v12 = vsub.s32 4, %v6393_v55 }
 0x359   :  { %v1648_v53 = vsel %vm1646_vm12, %v4859_v17, %v1647_v57  ;;  %vm6612_vm0 = vcmp.le.f32.partialorder %v8357_v24, 0.7853982  ;;  %v1845_v40 = vsel %vm1760_vm4, %v1844_v6, %v6509_v9  ;;  %vm1753_vm7 = vcmp.eq.s32.totalorder %v1748_v50, 2 }
 0x35a   :  { %v1652_v10 = vsel %vm1645_vm10, %v1648_v53, %v1651_v27  ;;  %vm6618_vm14 = vcmp.le.f32.partialorder %v8360_v16, 0.7853982  ;;  %v1950_v60 = vsel %vm6612_vm0, %v6185_v51, %v1947_v61  ;;  %v1843_v54 = vsel %vm1760_vm4, %v1842_v41, %v1841_v48 }
 0x35b   :  { %v1653_v23 = vsel %vm1642_vm5, nan, %v1652_v10  ;;  %4866 = vcosq.f32 %v1950_v60  ;;  %v4863_v62 = vpop.eup %4862  ;;  %v1846_v13 = vsel %vm6618_vm14, %v6228_v19, %v1843_v54  ;;  %v1949_v28 = vsel %vm1864_vm1, %v1948_v12, %v6393_v55 }
 0x35c   :  { %4406 = vmatprep.mubr.f32.mxu0 %v1653_v23  ;;  %4868 = vsinq.f32 %v1950_v60  ;;  %v4865_v43 = vpop.eup %4864  ;;  %v1754_v26 = vxor.u32 2147483648, %v4863_v62  ;;  %v1951_v3 = vsel %vm6612_vm0, 0, %v1949_v28  ;;  %v1847_v9 = vsel %vm6618_vm14, 0, %v1845_v40 }
 0x35d   :  { %4870 = vcosq.f32 %v1846_v13  ;;  %v1751_v11 = vxor.u32 2147483648, %v4865_v43  ;;  %vm1750_vm13 = vcmp.eq.s32.totalorder %v1748_v50, 0  ;;  %v1955_v29 = vadd.s32 3, %v1951_v3 }
 0x35e   :  { %4872 = vsinq.f32 %v1846_v13  ;;  %v1755_v56 = vsel %vm1753_vm7, %v1754_v26, %v4865_v43  ;;  %vm1749_vm2 = vcmp.lt.s32.totalorder %v1748_v50, 2  ;;  %vm1746_vm11 = vweird.f32 %v6097_v25 }
 0x35f   :  { %v1752_v47 = vsel %vm1750_vm13, %v4863_v62, %v1751_v11  ;;  %v1851_v21 = vadd.s32 3, %v1847_v9  ;;  %v1956_v49 = vand.u32 3, %v1955_v29  ;;  %vm1850_vm8 = vweird.f32 %v6228_v19 }
 0x360   :  { %v1756_v55 = vsel %vm1749_vm2, %v1752_v47, %v1755_v56  ;;  %vm1954_vm9 = vweird.f32 %v6185_v51 }
 0x361   :  { %v1757_v1 = vsel %vm1746_vm11, nan, %v1756_v55  ;;  %v1852_v42 = vand.u32 3, %v1851_v21  ;;  %vm1961_vm1 = vcmp.eq.s32.totalorder %v1956_v49, 2  ;;  %vm1958_vm4 = vcmp.eq.s32.totalorder %v1956_v49, 0 }
 0x362   :  { %4407 = vmatmul.mubr.f32.gmra.mrb[12].mxu0 %v1757_v1  ;;  %vm1957_vm5 = vcmp.lt.s32.totalorder %v1956_v49, 2 }
 0x363   :  { %vm1857_vm15 = vcmp.eq.s32.totalorder %v1852_v42, 2  ;;  %vm1854_vm3 = vcmp.eq.s32.totalorder %v1852_v42, 0  ;;  %vm1853_vm6 = vcmp.lt.s32.totalorder %v1852_v42, 2 }
 0x365   :  { %v4867_v33 = vpop.eup %4866 }
 0x366   :  { %v4869_v31 = vpop.eup %4868  ;;  %v1962_v22 = vxor.u32 2147483648, %v4867_v33 }
 0x367   :  { %v4871_v8 = vpop.eup %4870  ;;  %v1959_v0 = vxor.u32 2147483648, %v4869_v31 }
 0x368   :  { %v4873_v15 = vpop.eup %4872  ;;  %v1858_v46 = vxor.u32 2147483648, %v4871_v8  ;;  %v1963_v63 = vsel %vm1961_vm1, %v1962_v22, %v4869_v31 }
 0x369   :  { %v1855_v20 = vxor.u32 2147483648, %v4873_v15  ;;  %v1960_v2 = vsel %vm1958_vm4, %v4867_v33, %v1959_v0 }
 0x36a   :  { %v1859_v25 = vsel %vm1857_vm15, %v1858_v46, %v4873_v15  ;;  %v1964_v32 = vsel %vm1957_vm5, %v1960_v2, %v1963_v63 }
 0x36b   :  { %v1856_v61 = vsel %vm1854_vm3, %v4871_v8, %v1855_v20  ;;  %v1965_v4 = vsel %vm1954_vm9, nan, %v1964_v32 }
 0x36c   :  { %v1860_v35 = vsel %vm1853_vm6, %v1856_v61, %v1859_v25 }
 0x36d   :  { %v1861_v17 = vsel %vm1850_vm8, nan, %v1860_v35 }
 0x36e   :  { %4409 = vmatprep.mubr.f32.mxu0 %v1861_v17 }
 0x36f   :  { %4410 = vmatmul.mubr.f32.gmra.mrb[14].mxu0 %v1965_v4 }
 0x418   :  { %v4402_v34 = vpop.f32.mrb[8].mxu0 }
 0x419   :  { %v6652_v14 = vadd.f32 %v4402_v34, %v6649_v37  ;;  %v2055_v36 = vpop.f32.mrb[9].mxu0 }
 0x41a   :  { %v6655_v18 = vadd.f32 %v6649_v37, %v2055_v36 }
 0x41b   :  { %v2198_v19 = vand.u32 2147483647, %v6652_v14  ;;  %v2201_v51 = vand.u32 2139095040, %v6652_v14 }
 0x41c   :  { %v2094_v48 = vand.u32 2147483647, %v6655_v18  ;;  %v2097_v30 = vand.u32 2139095040, %v6655_v18 }
 0x41d   :  { %v2202_v57 = vshrl.u32 %v2201_v51, 23  ;;  %v2205_v6 = vand.u32 8388607, %v2198_v19 }
 0x41e   :  { %v2098_v59 = vshrl.u32 %v2097_v30, 23  ;;  %v2101_v27 = vand.u32 8388607, %v2094_v48 }
 0x41f   :  { %v4098_v41 = vadd.s32 4294967169, %v2202_v57  ;;  %v2206_v24 = vor.u32 8388608, %v2205_v6 }
 0x420   :  { %v4094_v53 = vadd.s32 4294967169, %v2098_v59  ;;  %v2102_v5 = vor.u32 8388608, %v2101_v27 }
 0x421   :  { %v2208_v50 = vadd.s32 1, %v4098_v41  ;;  %v6665_v54 = vshll.u32 %v2206_v24, 8 }
 0x422   :  { %v2104_v10 = vadd.s32 1, %v4094_v53  ;;  %v6667_v23 = vshll.u32 %v2102_v5, 8 }
 0x423   :  { %vm2209_vm10 = vcmp.gt.s32.totalorder %v2208_v50, 0 }
 0x424   :  { %v2210_v16 = vsel %vm2209_vm10, %v2208_v50, 0  ;;  %vm2105_vm12 = vcmp.gt.s32.totalorder %v2104_v10, 0  ;;  %vm2200_vm10 = vcmp.lt.s32.totalorder %v6652_v14, 0 }
 0x425   :  { %v2211_v7 = vshrl.u32 %v2210_v16, 5  ;;  %v2212_v12 = vand.u32 31, %v2210_v16  ;;  %v2106_v60 = vsel %vm2105_vm12, %v2104_v10, 0 }
 0x426   :  { %v6670_v13 = vshrl.u32 %v2106_v60, 5  ;;  %v2108_v28 = vand.u32 31, %v2106_v60 }
 0x427   :  { %v2213_v40 = vsub.s32 32, %v2212_v12  ;;  %v2215_v62 = vshll.u32 %v8297_v52, %v2212_v12  ;;  %v2218_v43 = vshll.u32 %v8339_v58, %v2212_v12  ;;  %v2221_v26 = vshll.u32 %v8340_v45, %v2212_v12 }
 0x428   :  { %v2224_v3 = vshll.u32 %v8301_v44, %v2212_v12  ;;  %v2227_v11 = vshll.u32 %v8341_v38, %v2212_v12  ;;  %vm2230_vm0 = vcmp.lt.s32.totalorder %v2211_v7, 1  ;;  %vm2231_vm14 = vcmp.lt.s32.totalorder %v2211_v7, 2 }
 0x429   :  { %v2216_v9 = vshrl.u32 %v8339_v58, %v2213_v40  ;;  %v2219_v56 = vshrl.u32 %v8340_v45, %v2213_v40  ;;  %v2222_v29 = vshrl.u32 %v8301_v44, %v2213_v40  ;;  %v2214_v47 = vshrl.u32 %v8297_v52, %v2213_v40 }
 0x42a   :  { %v2225_v55 = vshrl.u32 %v8341_v38, %v2213_v40  ;;  %v2228_v21 = vshrl.u32 %v8342_v39, %v2213_v40  ;;  %v2109_v31 = vsub.s32 32, %v2108_v28  ;;  %vm2232_vm7 = vcmp.lt.s32.totalorder %v2211_v7, 3 }
 0x42b   :  { %v6682_v1 = vpop.f32.mrb[10].mxu0  ;;  %v2217_v49 = vor.u32 %v2216_v9, %v2215_v62  ;;  %v2220_v33 = vor.u32 %v2219_v56, %v2218_v43  ;;  %v2223_v42 = vor.u32 %v2222_v29, %v2221_v26  ;;  %vm2233_vm13 = vcmp.lt.s32.totalorder %v2211_v7, 4 }
 0x42c   :  { %v6684_v22 = vpop.f32.mrb[11].mxu0  ;;  %v2226_v8 = vor.u32 %v2225_v55, %v2224_v3  ;;  %v2229_v0 = vor.u32 %v2228_v21, %v2227_v11  ;;  %v2111_v32 = vshll.u32 %v8297_v52, %v2108_v28  ;;  %v2112_v4 = vshrl.u32 %v8339_v58, %v2109_v31 }
 0x42d   :  { %v2234_v15 = vsel %vm2230_vm0, %v2214_v47, %v2217_v49  ;;  %v2235_v46 = vsel %vm2233_vm13, %v2223_v42, 2102212464  ;;  %v2238_v63 = vsel %vm2230_vm0, %v2217_v49, %v2220_v33  ;;  %v2242_v20 = vsel %vm2230_vm0, %v2220_v33, %v2223_v42 }
 0x42e   :  { %v2236_v2 = vsel %vm2232_vm7, %v2220_v33, %v2235_v46  ;;  %v2239_v25 = vsel %vm2233_vm13, %v2226_v8, 920167782  ;;  %v2243_v61 = vsel %vm2233_vm13, %v2229_v0, 1326507024  ;;  %v2114_v34 = vshll.u32 %v8339_v58, %v2108_v28 }
 0x42f   :  { %v2240_v35 = vsel %vm2232_vm7, %v2223_v42, %v2239_v25  ;;  %v2244_v17 = vsel %vm2232_vm7, %v2226_v8, %v2243_v61  ;;  %v2237_v36 = vsel %vm2231_vm14, %v2234_v15, %v2236_v2  ;;  %v2115_v57 = vshrl.u32 %v8340_v45, %v2109_v31 }
 0x430   :  { %v2241_v51 = vsel %vm2231_vm14, %v2238_v63, %v2240_v35  ;;  %v2245_v30 = vsel %vm2231_vm14, %v2242_v20, %v2244_v17  ;;  %v2113_v53 = vor.u32 %v2112_v4, %v2111_v32  ;;  %v2117_v24 = vshll.u32 %v8340_v45, %v2108_v28 }
 0x431   :  { %v6697_v6 = vmul.u32.u64.low %v6665_v54, %v2245_v30  ;;  %v6698_v59 = vmul.u32.u64.high %v6665_v54, %v2245_v30, %v6697_v6  ;;  %v6701_v27 = vmul.u32.u64.low %v6665_v54, %v2241_v51  ;;  %v6702_v41 = vmul.u32.u64.high %v6665_v54, %v2241_v51, %v6701_v27 }
 0x432   :  { %v2116_v50 = vor.u32 %v2115_v57, %v2114_v34  ;;  %v2118_v5 = vshrl.u32 %v8301_v44, %v2109_v31  ;;  %v2110_v10 = vshrl.u32 %v8297_v52, %v2109_v31  ;;  %v2120_v16 = vshll.u32 %v8301_v44, %v2108_v28 }
 0x433   :  { %v2121_v7 = vshrl.u32 %v8341_v38, %v2109_v31  ;;  %v2124_v12 = vshrl.u32 %v8342_v39, %v2109_v31  ;;  %v2253_v60 = vmul.u32 %v6665_v54, %v2237_v36  ;;  %v2123_v62 = vshll.u32 %v8341_v38, %v2108_v28 }
 0x434   :  { %v2119_v40 = vor.u32 %v2118_v5, %v2117_v24  ;;  %vm2126_vm2 = vcmp.lt.s32.totalorder %v6670_v13, 1  ;;  %vm2255_vm11 = vc.u32 %v6698_v59, %v6701_v27  ;;  %v2256_v26 = vadd.s32 1, %v6702_v41 }
 0x435   :  { %v4408_v43 = vpop.f32.mrb[12].mxu0  ;;  %v2122_v3 = vor.u32 %v2121_v7, %v2120_v16  ;;  %vm2127_vm1 = vcmp.lt.s32.totalorder %v6670_v13, 2  ;;  %v2125_v9 = vor.u32 %v2124_v12, %v2123_v62  ;;  %vm2128_vm4 = vcmp.lt.s32.totalorder %v6670_v13, 3 }
 0x436   :  { %v6718_v11 = vpop.f32.mrb[13].mxu0  ;;  %vm2129_vm15 = vcmp.lt.s32.totalorder %v6670_v13, 4  ;;  %v2134_v54 = vsel %vm2126_vm2, %v2113_v53, %v2116_v50  ;;  %v2257_v28 = vsel %vm2255_vm11, %v2256_v26, %v6702_v41  ;;  %v2138_v47 = vsel %vm2126_vm2, %v2116_v50, %v2119_v40 }
 0x437   :  { %v2131_v56 = vsel %vm2129_vm15, %v2119_v40, 2102212464  ;;  %v2135_v29 = vsel %vm2129_vm15, %v2122_v3, 920167782  ;;  %v2258_v55 = vadd.s32 %v2257_v28, %v2253_v60  ;;  %v2130_v21 = vsel %vm2126_vm2, %v2110_v10, %v2113_v53 }
 0x438   :  { %v2136_v49 = vsel %vm2128_vm4, %v2119_v40, %v2135_v29  ;;  %v2139_v33 = vsel %vm2129_vm15, %v2125_v9, 1326507024  ;;  %v2132_v42 = vsel %vm2128_vm4, %v2116_v50, %v2131_v56  ;;  %v6733_v0 = vadd.f32 %v6682_v1, %v6649_v37 }
 0x439   :  { %v2137_v31 = vsel %vm2127_vm1, %v2134_v54, %v2136_v49  ;;  %v2140_v8 = vsel %vm2128_vm4, %v2122_v3, %v2139_v33  ;;  %v2259_v15 = vadd.s32 536870912, %v2258_v55  ;;  %v2133_v1 = vsel %vm2127_vm1, %v2130_v21, %v2132_v42 }
 0x43a   :  { %v2141_v46 = vsel %vm2127_vm1, %v2138_v47, %v2140_v8  ;;  %v6738_v63 = vmul.u32.u64.low %v6667_v23, %v2137_v31  ;;  %v6739_v20 = vmul.u32.u64.high %v6667_v23, %v2137_v31, %v6738_v63  ;;  %v2406_v61 = vand.u32 2147483647, %v6733_v0 }
 0x43b   :  { %v6742_v2 = vmul.u32.u64.low %v6667_v23, %v2141_v46  ;;  %v6743_v25 = vmul.u32.u64.high %v6667_v23, %v2141_v46, %v6742_v2  ;;  %v6746_v32 = vshrl.u32 %v2259_v15, 30  ;;  %v2409_v35 = vand.u32 2139095040, %v6733_v0 }
 0x43c   :  { %v6753_v17 = vadd.f32 %v6649_v37, %v6684_v22  ;;  %v2152_v34 = vadd.s32 1, %v6739_v20  ;;  %v2413_v51 = vand.u32 8388607, %v2406_v61  ;;  %v2149_v30 = vmul.u32 %v6667_v23, %v2133_v1 }
 0x43d   :  { %v2261_v4 = vshll.u32 %v6746_v32, 30  ;;  %v2410_v36 = vshrl.u32 %v2409_v35, 23  ;;  %vm2151_vm3 = vc.u32 %v6743_v25, %v6738_v63  ;;  %v6763_v57 = vadd.f32 %v4408_v43, %v6649_v37 }
 0x43e   :  { %v2302_v13 = vand.u32 2147483647, %v6753_v17  ;;  %v2153_v22 = vsel %vm2151_vm3, %v2152_v34, %v6739_v20  ;;  %v2305_v53 = vand.u32 2139095040, %v6753_v17  ;;  %v2414_v23 = vor.u32 8388608, %v2413_v51 }
 0x43f   :  { %v2262_v6 = vsub.s32 %v2258_v55, %v2261_v4  ;;  %v4106_v41 = vadd.s32 4294967169, %v2410_v36  ;;  %v2154_v24 = vadd.s32 %v2153_v22, %v2149_v30  ;;  %v8283_v40 = vand.u32 2147483647, %v6763_v57 }
 0x440   :  { %v2306_v12 = vshrl.u32 %v2305_v53, 23  ;;  %v6773_v60 = vand.u32 8388607, %v2302_v13  ;;  %v2617_v43 = vand.u32 2139095040, %v6763_v57  ;;  %v2254_v26 = vadd.s32 %v6701_v27, %v6698_v59 }
 0x441   :  { %v2264_v10 = vsub.s32 0, %v2262_v6  ;;  %v2416_v16 = vadd.s32 1, %v4106_v41  ;;  %v2155_v7 = vadd.s32 536870912, %v2154_v24  ;;  %v6782_v28 = vadd.s32 %v6738_v63, %v6743_v25 }
 0x442   :  { %v6767_v50 = vpop.f32.mrb[14].mxu0  ;;  %v6784_v29 = vshll.u32 %v2414_v23, 8  ;;  %v4102_v55 = vadd.s32 4294967169, %v2306_v12  ;;  %v2310_v21 = vor.u32 8388608, %v6773_v60  ;;  %v6790_v49 = vand.u32 8388607, %v8283_v40 }
 0x443   :  { %v6769_v5 = vpop.f32.mrb[15].mxu0  ;;  %v4099_v62 = vmin.u32 %v2264_v10, %v2262_v6  ;;  %vm2417_vm5 = vcmp.gt.s32.totalorder %v2416_v16, 0  ;;  %v6779_v3 = vshrl.u32 %v2155_v7, 30  ;;  %v6794_v42 = vshrl.u32 %v2617_v43, 23 }
 0x444   :  { %v2418_v9 = vsel %vm2417_vm5, %v2416_v16, 0  ;;  %v2312_v43 = vadd.s32 1, %v4102_v55  ;;  %vm6821_vm0 = vcmp.le.f32.partialorder %v2198_v19, 0.7853982 }
 0x445   :  { %v2266_v54 = vclz %v4099_v62  ;;  %v2420_v56 = vand.u32 31, %v2418_v9  ;;  %v2157_v47 = vshll.u32 %v6779_v3, 30  ;;  %v6792_v27 = vshrl.u32 %v2418_v9, 5 }
 0x446   :  { %vm2313_vm13 = vcmp.gt.s32.totalorder %v2312_v43, 0 }
 0x447   :  { %v4100_v59 = vadd.s32 4294967294, %v2266_v54  ;;  %v2421_v33 = vsub.s32 32, %v2420_v56  ;;  %v6796_v31 = vsub.s32 %v2154_v24, %v2157_v47  ;;  %v2423_v8 = vshll.u32 %v8297_v52, %v2420_v56 }
 0x448   :  { %v2426_v15 = vshll.u32 %v8339_v58, %v2420_v56  ;;  %v2429_v46 = vshll.u32 %v8340_v45, %v2420_v56  ;;  %v2432_v2 = vshll.u32 %v8301_v44, %v2420_v56  ;;  %v2435_v30 = vshll.u32 %v8341_v38, %v2420_v56 }
 0x449   :  { %vm4101_vm6 = vcmp.lt.s32.totalorder %v4100_v59, 0  ;;  %v2424_v63 = vshrl.u32 %v8339_v58, %v2421_v33  ;;  %v2427_v20 = vshrl.u32 %v8340_v45, %v2421_v33  ;;  %v2160_v1 = vsub.s32 0, %v6796_v31 }
 0x44a   :  { %v2269_v25 = vsel %vm4101_vm6, 0, %v4100_v59  ;;  %v2430_v35 = vshrl.u32 %v8301_v44, %v2421_v33  ;;  %v2433_v4 = vshrl.u32 %v8341_v38, %v2421_v33  ;;  %v2436_v7 = vshrl.u32 %v8342_v39, %v2421_v33 }
 0x44b   :  { %v2270_v34 = vsub.s32 32, %v2269_v25  ;;  %v2271_v36 = vshll.u32 %v2262_v6, %v2269_v25  ;;  %v2274_v51 = vsub.s32 4294967266, %v2269_v25  ;;  %v4095_v22 = vmin.u32 %v2160_v1, %v6796_v31 }
 0x44c   :  { %v2425_v41 = vor.u32 %v2424_v63, %v2423_v8  ;;  %v2428_v53 = vor.u32 %v2427_v20, %v2426_v15  ;;  %v2434_v24 = vor.u32 %v2433_v4, %v2432_v2  ;;  %v2431_v16 = vor.u32 %v2430_v35, %v2429_v46 }
 0x44d   :  { %v2272_v10 = vshrl.u32 %v2254_v26, %v2270_v34  ;;  %v2275_v23 = vadd.s32 127, %v2274_v51  ;;  %v2162_v12 = vclz %v4095_v22  ;;  %v2422_v62 = vshrl.u32 %v8297_v52, %v2421_v33 }
 0x44e   :  { %vm2438_vm8 = vcmp.lt.s32.totalorder %v6792_v27, 1  ;;  %v2437_v54 = vor.u32 %v2436_v7, %v2435_v30  ;;  %vm2441_vm9 = vcmp.lt.s32.totalorder %v6792_v27, 4  ;;  %vm2440_vm12 = vcmp.lt.s32.totalorder %v6792_v27, 3 }
 0x44f   :  { %v2273_v6 = vor.u32 %v2272_v10, %v2271_v36  ;;  %v2276_v9 = vshll.u32 %v2275_v23, 23  ;;  %v4096_v56 = vadd.s32 4294967294, %v2162_v12  ;;  %v2446_v26 = vsel %vm2438_vm8, %v2425_v41, %v2428_v53 }
 0x450   :  { %v2447_v47 = vsel %vm2441_vm9, %v2434_v24, 920167782  ;;  %vm2439_vm14 = vcmp.lt.s32.totalorder %v6792_v27, 2  ;;  %v2443_v33 = vsel %vm2441_vm9, %v2431_v16, 2102212464  ;;  %v2442_v15 = vsel %vm2438_vm8, %v2422_v62, %v2425_v41 }
 0x451   :  { %v2277_v59 = vor.u32 4788187, %v2276_v9  ;;  %v2448_v8 = vsel %vm2440_vm12, %v2431_v16, %v2447_v47  ;;  %vm4097_vm7 = vcmp.lt.s32.totalorder %v4096_v56, 0  ;;  %v2450_v19 = vsel %vm2438_vm8, %v2428_v53, %v2431_v16 }
 0x452   :  { %v2449_v46 = vsel %vm2439_vm14, %v2446_v26, %v2448_v8  ;;  %v2280_v20 = vcvt.s32.f32 %v2273_v6  ;;  %v2165_v2 = vsel %vm4097_vm7, 0, %v4096_v56  ;;  %v2451_v25 = vsel %vm2441_vm9, %v2437_v54, 1326507024 }
 0x453   :  { %v2278_v63 = vand.u32 2147483647, %v2277_v59  ;;  %v2166_v1 = vsub.s32 32, %v2165_v2  ;;  %v2170_v35 = vsub.s32 4294967266, %v2165_v2  ;;  %v2444_v4 = vsel %vm2440_vm12, %v2428_v53, %v2443_v33 }
 0x454   :  { %v2452_v34 = vsel %vm2440_vm12, %v2434_v24, %v2451_v25  ;;  %v6845_v30 = vmul.u32.u64.low %v6784_v29, %v2449_v46  ;;  %v6846_v22 = vmul.u32.u64.high %v6784_v29, %v2449_v46, %v6845_v30  ;;  %v4114_v24 = vadd.s32 4294967169, %v6794_v42 }
 0x455   :  { %v2281_v36 = vmul.f32 %v2280_v20, %v2278_v63  ;;  %v2453_v51 = vsel %vm2439_vm14, %v2450_v19, %v2452_v34  ;;  %v2168_v41 = vshrl.u32 %v6782_v28, %v2166_v1  ;;  %v2171_v10 = vadd.s32 127, %v2170_v35 }
 0x456   :  { %v6851_v23 = vmul.u32.u64.low %v6784_v29, %v2453_v51  ;;  %v6852_v16 = vmul.u32.u64.high %v6784_v29, %v2453_v51, %v6851_v23  ;;  %v6857_v7 = vadd.f32 %v6649_v37, %v6718_v11  ;;  %v2167_v12 = vshll.u32 %v6796_v31, %v2165_v2 }
 0x457   :  { %v2282_v53 = vxor.u32 2147483648, %v2281_v36  ;;  %v2172_v62 = vshll.u32 %v2171_v10, 23  ;;  %v2445_v6 = vsel %vm2439_vm14, %v2442_v15, %v2444_v4  ;;  %v2314_v28 = vsel %vm2313_vm13, %v2312_v43, 0 }
 0x458   :  { %v2464_v54 = vadd.s32 1, %v6846_v22  ;;  %v2316_v56 = vand.u32 31, %v2314_v28  ;;  %v6867_v42 = vshll.u32 %v2310_v21, 8  ;;  %v2169_v31 = vor.u32 %v2168_v41, %v2167_v12 }
 0x459   :  { %v2283_v9 = vsel %vm2200_vm10, %v2282_v53, %v2281_v36  ;;  %v2173_v26 = vor.u32 4788187, %v2172_v62  ;;  %v2622_v27 = vor.u32 8388608, %v6790_v49  ;;  %v2461_v43 = vmul.u32 %v6784_v29, %v2445_v6 }
 0x45a   :  { %v6872_v11 = vsel %vm6821_vm0, %v6652_v14, %v2283_v9  ;;  %vm2463_vm2 = vc.u32 %v6852_v16, %v6845_v30  ;;  %v2317_v47 = vsub.s32 32, %v2316_v56  ;;  %v2624_v59 = vadd.s32 1, %v4114_v24 }
 0x45b   :  { %v2174_v33 = vand.u32 2147483647, %v2173_v26  ;;  %v2465_v60 = vsel %vm2463_vm2, %v2464_v54, %v6846_v22  ;;  %v2315_v21 = vshrl.u32 %v2314_v28, 5  ;;  %v2319_v8 = vshll.u32 %v8297_v52, %v2316_v56 }
 0x45c   :  { %v2466_v15 = vadd.s32 %v2465_v60, %v2461_v43  ;;  %v2320_v46 = vshrl.u32 %v8339_v58, %v2317_v47  ;;  %v2322_v19 = vshll.u32 %v8339_v58, %v2316_v56  ;;  %v2323_v49 = vshrl.u32 %v8340_v45, %v2317_v47 }
 0x45d   :  { %v2176_v63 = vcvt.s32.f32 %v2169_v31  ;;  %v2325_v29 = vshll.u32 %v8340_v45, %v2316_v56  ;;  %v2326_v20 = vshrl.u32 %v8301_v44, %v2317_v47  ;;  %v2328_v2 = vshll.u32 %v8301_v44, %v2316_v56 }
 0x45e   :  { %v2467_v25 = vadd.s32 536870912, %v2466_v15  ;;  %v2321_v1 = vor.u32 %v2320_v46, %v2319_v8  ;;  %v2324_v35 = vor.u32 %v2323_v49, %v2322_v19  ;;  %v2329_v4 = vshrl.u32 %v8341_v38, %v2317_v47 }
 0x45f   :  { %v2327_v34 = vor.u32 %v2326_v20, %v2325_v29  ;;  %v2331_v36 = vshll.u32 %v8341_v38, %v2316_v56  ;;  %v2332_v51 = vshrl.u32 %v8342_v39, %v2317_v47  ;;  %v2513_v22 = vand.u32 2139095040, %v6857_v7 }
 0x460   :  { %v6890_v41 = vmul.f32 %v2176_v63, %v2174_v33  ;;  %v6892_v10 = vshrl.u32 %v2467_v25, 30  ;;  %v2318_v23 = vshrl.u32 %v8297_v52, %v2317_v47  ;;  %v2330_v53 = vor.u32 %v2329_v4, %v2328_v2 }
 0x461   :  { %v2333_v24 = vor.u32 %v2332_v51, %v2331_v36  ;;  %vm2334_vm11 = vcmp.lt.s32.totalorder %v2315_v21, 1  ;;  %vm2336_vm1 = vcmp.lt.s32.totalorder %v2315_v21, 3  ;;  %vm2337_vm4 = vcmp.lt.s32.totalorder %v2315_v21, 4 }
 0x462   :  { %v2469_v12 = vshll.u32 %v6892_v10, 30  ;;  %v2338_v62 = vsel %vm2334_vm11, %v2318_v23, %v2321_v1  ;;  %v2339_v6 = vsel %vm2337_vm4, %v2327_v34, 2102212464  ;;  %v2342_v28 = vsel %vm2334_vm11, %v2321_v1, %v2324_v35 }
 0x463   :  { %v2340_v9 = vsel %vm2336_vm1, %v2324_v35, %v2339_v6  ;;  %v2343_v54 = vsel %vm2337_vm4, %v2330_v53, 920167782  ;;  %v2346_v56 = vsel %vm2334_vm11, %v2324_v35, %v2327_v34  ;;  %v2347_v31 = vsel %vm2337_vm4, %v2333_v24, 1326507024 }
 0x464   :  { %v6896_v26 = vsub.s32 %v2466_v15, %v2469_v12  ;;  %vm2335_vm15 = vcmp.lt.s32.totalorder %v2315_v21, 2  ;;  %v2344_v43 = vsel %vm2336_vm1, %v2327_v34, %v2343_v54  ;;  %v2348_v33 = vsel %vm2336_vm1, %v2330_v53, %v2347_v31 }
 0x465   :  { %v2341_v47 = vsel %vm2335_vm15, %v2338_v62, %v2340_v9  ;;  %v2345_v60 = vsel %vm2335_vm15, %v2342_v28, %v2344_v43  ;;  %v2349_v8 = vsel %vm2335_vm15, %v2346_v56, %v2348_v33  ;;  %vm2625_vm3 = vcmp.gt.s32.totalorder %v2624_v59, 0 }
 0x466   :  { %v2472_v46 = vsub.s32 0, %v6896_v26  ;;  %v6900_v19 = vmul.u32.u64.low %v6867_v42, %v2349_v8  ;;  %v6901_v49 = vmul.u32.u64.high %v6867_v42, %v2349_v8, %v6900_v19  ;;  %v2626_v63 = vsel %vm2625_vm3, %v2624_v59, 0 }
 0x467   :  { %v6904_v29 = vmul.u32.u64.low %v6867_v42, %v2345_v60  ;;  %v6905_v20 = vmul.u32.u64.high %v6867_v42, %v2345_v60, %v6904_v29  ;;  %v2628_v15 = vand.u32 31, %v2626_v63  ;;  %v2462_v21 = vadd.s32 %v6845_v30, %v6852_v16 }
 0x468   :  { %v4107_v2 = vmin.u32 %v2472_v46, %v6896_v26  ;;  %v6911_v25 = vshll.u32 %v2622_v27, 8  ;;  %v2510_v1 = vand.u32 2147483647, %v6857_v7  ;;  %v2178_v35 = vxor.u32 2147483648, %v6890_v41 }
 0x469   :  { %v2357_v4 = vmul.u32 %v6867_v42, %v2341_v47  ;;  %v6916_v59 = vshrl.u32 %v2626_v63, 5  ;;  %v2629_v34 = vsub.s32 32, %v2628_v15  ;;  %vm2359_vm5 = vc.u32 %v6901_v49, %v6904_v29 }
 0x46a   :  { %v2474_v36 = vclz %v4107_v2  ;;  %v2631_v51 = vshll.u32 %v8297_v52, %v2628_v15  ;;  %v2514_v30 = vshrl.u32 %v2513_v22, 23  ;;  %v2360_v16 = vadd.s32 1, %v6905_v20 }
 0x46b   :  { %v2632_v27 = vshrl.u32 %v8339_v58, %v2629_v34  ;;  %v2634_v23 = vshll.u32 %v8339_v58, %v2628_v15  ;;  %v2635_v53 = vshrl.u32 %v8340_v45, %v2629_v34  ;;  %v2637_v42 = vshll.u32 %v8340_v45, %v2628_v15 }
 0x46c   :  { %v4108_v24 = vadd.s32 4294967294, %v2474_v36  ;;  %v2638_v12 = vshrl.u32 %v8301_v44, %v2629_v34  ;;  %v2641_v62 = vshrl.u32 %v8341_v38, %v2629_v34  ;;  %v2361_v6 = vsel %vm2359_vm5, %v2360_v16, %v6905_v20 }
 0x46d   :  { %v2640_v28 = vshll.u32 %v8301_v44, %v2628_v15  ;;  %v2643_v22 = vshll.u32 %v8341_v38, %v2628_v15  ;;  %v2644_v9 = vshrl.u32 %v8342_v39, %v2629_v34  ;;  %v2362_v54 = vadd.s32 %v2361_v6, %v2357_v4 }
 0x46e   :  { %vm4109_vm6 = vcmp.lt.s32.totalorder %v4108_v24, 0  ;;  %v2633_v56 = vor.u32 %v2632_v27, %v2631_v51  ;;  %v2636_v31 = vor.u32 %v2635_v53, %v2634_v23  ;;  %v2639_v33 = vor.u32 %v2638_v12, %v2637_v42 }
 0x46f   :  { %v2477_v43 = vsel %vm4109_vm6, 0, %v4108_v24  ;;  %v2642_v47 = vor.u32 %v2641_v62, %v2640_v28  ;;  %v2645_v60 = vor.u32 %v2644_v9, %v2643_v22  ;;  %v2363_v46 = vadd.s32 536870912, %v2362_v54 }
 0x470   :  { %v2482_v8 = vsub.s32 4294967266, %v2477_v43  ;;  %v6934_v19 = vand.u32 8388607, %v2510_v1  ;;  %v6938_v63 = vadd.f32 %v6767_v50, %v6649_v37  ;;  %vm2096_vm8 = vcmp.lt.s32.totalorder %v6655_v18, 0 }
 0x471   :  { %v2478_v20 = vsub.s32 32, %v2477_v43  ;;  %v2630_v15 = vshrl.u32 %v8297_v52, %v2629_v34  ;;  %vm2646_vm9 = vcmp.lt.s32.totalorder %v6916_v59, 1  ;;  %vm2647_vm12 = vcmp.lt.s32.totalorder %v6916_v59, 2 }
 0x472   :  { %v2479_v2 = vshll.u32 %v6896_v26, %v2477_v43  ;;  %v2483_v4 = vadd.s32 127, %v2482_v8  ;;  %v6945_v36 = vshrl.u32 %v2363_v46, 30  ;;  %vm2649_vm14 = vcmp.lt.s32.totalorder %v6916_v59, 4 }
 0x473   :  { %v2651_v51 = vsel %vm2649_vm14, %v2639_v33, 2102212464  ;;  %v2654_v50 = vsel %vm2646_vm9, %v2633_v56, %v2636_v31  ;;  %v2655_v16 = vsel %vm2649_vm14, %v2642_v47, 920167782  ;;  %v2659_v27 = vsel %vm2649_vm14, %v2645_v60, 1326507024 }
 0x474   :  { %v2484_v23 = vshll.u32 %v2483_v4, 23  ;;  %v2365_v34 = vshll.u32 %v6945_v36, 30  ;;  %vm2648_vm7 = vcmp.lt.s32.totalorder %v6916_v59, 3  ;;  %v2658_v53 = vsel %vm2646_vm9, %v2636_v31, %v2639_v33 }
 0x475   :  { %v2480_v26 = vshrl.u32 %v2462_v21, %v2478_v20  ;;  %v2656_v24 = vsel %vm2648_vm7, %v2639_v33, %v2655_v16  ;;  %v2660_v42 = vsel %vm2648_vm7, %v2642_v47, %v2659_v27  ;;  %v4110_v12 = vadd.s32 4294967169, %v2514_v30 }
 0x476   :  { %v6954_v62 = vsub.s32 %v2362_v54, %v2365_v34  ;;  %v2650_v6 = vsel %vm2646_vm9, %v2630_v15, %v2633_v56  ;;  %v2652_v28 = vsel %vm2648_vm7, %v2636_v31, %v2651_v51  ;;  %v2657_v22 = vsel %vm2647_vm12, %v2654_v50, %v2656_v24  ;;  %v2926_v56 = vld [vmem:[%s8230_s7] sm:$0xff]  ;;  %v2927_v31 = vld [vmem:[%s8230_s7 + $0x8] sm:$0xff] }
 0x477   :  { %v2485_v9 = vor.u32 4788187, %v2484_v23  ;;  %v2661_v43 = vsel %vm2647_vm12, %v2658_v53, %v2660_v42  ;;  %v6963_v60 = vmul.u32.u64.low %v6911_v25, %v2657_v22  ;;  %v6964_v8 = vmul.u32.u64.high %v6911_v25, %v2657_v22, %v6963_v60 }
 0x478   :  { %4874 = vcosq.f32 %v6872_v11  ;;  %v2368_v21 = vsub.s32 0, %v6954_v62  ;;  %v6970_v30 = vmul.u32.u64.low %v6911_v25, %v2661_v43  ;;  %v6971_v54 = vmul.u32.u64.high %v6911_v25, %v2661_v43, %v6970_v30 }
 0x479   :  { %4876 = vsinq.f32 %v6872_v11  ;;  %v2481_v33 = vor.u32 %v2480_v26, %v2479_v2  ;;  %v2653_v47 = vsel %vm2647_vm12, %v2650_v6, %v2652_v28  ;;  %v2520_v46 = vadd.s32 1, %v4110_v12 }
 0x47a   :  { %v6987_v20 = vsel %vm2096_vm8, %v2178_v35, %v6890_v41  ;;  %v4103_v15 = vmin.u32 %v2368_v21, %v6954_v62  ;;  %v2518_v4 = vor.u32 8388608, %v6934_v19  ;;  %v2825_v51 = vand.u32 2139095040, %v6938_v63 }
 0x47b   :  { %v2486_v50 = vand.u32 2147483647, %v2485_v9  ;;  %v2672_v11 = vadd.s32 1, %v6964_v8  ;;  %vm2521_vm13 = vcmp.gt.s32.totalorder %v2520_v46, 0  ;;  %v4596_v59 = vpack.c.bf16 %v2927_v31, %v2926_v56 }
 0x47c   :  { %v2370_v2 = vclz %v4103_v15  ;;  %v2669_v16 = vmul.u32 %v6911_v25, %v2653_v47  ;;  %vm2671_vm2 = vc.u32 %v6971_v54, %v6963_v60  ;;  %v8282_v41 = vand.u32 2147483647, %v6938_v63 }
 0x47d   :  { %v2488_v35 = vcvt.s32.f32 %v2481_v33  ;;  %v2673_v27 = vsel %vm2671_vm2, %v2672_v11, %v6964_v8  ;;  %v2522_v23 = vsel %vm2521_vm13, %v2520_v46, 0  ;;  %v2826_v19 = vshrl.u32 %v2825_v51, 23  ;;  %4597 = vmatprep.subr.bf16.mxu1 %v4596_v59 }
 0x47e   :  { %v2358_v34 = vadd.s32 %v6904_v29, %v6901_v49  ;;  %v4104_v53 = vadd.s32 4294967294, %v2370_v2  ;;  %v2674_v26 = vadd.s32 %v2673_v27, %v2669_v16  ;;  %v7000_v24 = vshrl.u32 %v2522_v23, 5  ;;  %4599 = vmatpush3.bf16.msra.mxu1 %v4596_v59 }
 0x47f   :  { %v7002_v25 = vmul.f32 %v2488_v35, %v2486_v50  ;;  %v2524_v42 = vand.u32 31, %v2522_v23  ;;  %v7004_v12 = vshll.u32 %v2518_v4, 8  ;;  %v7008_v6 = vadd.f32 %v6649_v37, %v6769_v5 }
 0x480   :  { %vm4105_vm11 = vcmp.lt.s32.totalorder %v4104_v53, 0  ;;  %v2675_v28 = vadd.s32 536870912, %v2674_v26  ;;  %v7010_v22 = vadd.s32 4294967169, %v2826_v19  ;;  %v7014_v49 = vand.u32 8388607, %v8282_v41 }
 0x481   :  { %v2373_v29 = vsel %vm4105_vm11, 0, %v4104_v53  ;;  %v2525_v9 = vsub.s32 32, %v2524_v42  ;;  %v2527_v43 = vshll.u32 %v8297_v52, %v2524_v42  ;;  %vm2542_vm1 = vcmp.lt.s32.totalorder %v7000_v24, 1 }
 0x482   :  { %v7018_v8 = vpop.eup %4874  ;;  %v2374_v21 = vsub.s32 32, %v2373_v29  ;;  %v2378_v30 = vsub.s32 4294967266, %v2373_v29  ;;  %v7020_v37 = vshrl.u32 %v2675_v28, 30  ;;  %v2530_v5 = vshll.u32 %v8339_v58, %v2524_v42 }
 0x483   :  { %v7023_v56 = vpop.eup %4876  ;;  %v2375_v31 = vshll.u32 %v6954_v62, %v2373_v29  ;;  %v2528_v33 = vshrl.u32 %v8339_v58, %v2525_v9  ;;  %v2531_v47 = vshrl.u32 %v8340_v45, %v2525_v9  ;;  %v2533_v46 = vshll.u32 %v8340_v45, %v2524_v42 }
 0x484   :  { %v2376_v15 = vshrl.u32 %v2358_v34, %v2374_v21  ;;  %v2379_v4 = vadd.s32 127, %v2378_v30  ;;  %v2677_v51 = vshll.u32 %v7020_v37, 30  ;;  %v2534_v50 = vshrl.u32 %v8301_v44, %v2525_v9 }
 0x485   :  { %v2529_v11 = vor.u32 %v2528_v33, %v2527_v43  ;;  %v2532_v59 = vor.u32 %v2531_v47, %v2530_v5  ;;  %v2536_v2 = vshll.u32 %v8301_v44, %v2524_v42  ;;  %v2537_v16 = vshrl.u32 %v8341_v38, %v2525_v9 }
 0x486   :  { %v2377_v35 = vor.u32 %v2376_v15, %v2375_v31  ;;  %v2380_v62 = vshll.u32 %v2379_v4, 23  ;;  %v7033_v27 = vsub.s32 %v2674_v26, %v2677_v51  ;;  %v2535_v23 = vor.u32 %v2534_v50, %v2533_v46 }
 0x487   :  { %v2538_v19 = vor.u32 %v2537_v16, %v2536_v2  ;;  %v2539_v53 = vshll.u32 %v8341_v38, %v2524_v42  ;;  %v2540_v34 = vshrl.u32 %v8342_v39, %v2525_v9  ;;  %vm2543_vm4 = vcmp.lt.s32.totalorder %v7000_v24, 2  ;;  %v2928_v16 = vld [vmem:[%s8230_s7 + $0x10] sm:$0xff] }
 0x488   :  { %v2381_v28 = vor.u32 4788187, %v2380_v62  ;;  %v2680_v29 = vsub.s32 0, %v7033_v27  ;;  %v2526_v43 = vshrl.u32 %v8297_v52, %v2525_v9  ;;  %vm2545_vm15 = vcmp.lt.s32.totalorder %v7000_v24, 4 }
 0x489   :  { %v2541_v21 = vor.u32 %v2540_v34, %v2539_v53  ;;  %vm2544_vm3 = vcmp.lt.s32.totalorder %v7000_v24, 3  ;;  %v2547_v26 = vsel %vm2545_vm15, %v2535_v23, 2102212464  ;;  %v2550_v30 = vsel %vm2542_vm1, %v2529_v11, %v2532_v59  ;;  %v2931_v53 = vld [vmem:[%s8230_s7 + $0x28] sm:$0xff] }
 0x48a   :  { %v2382_v5 = vand.u32 2147483647, %v2381_v28  ;;  %v2384_v42 = vcvt.s32.f32 %v2377_v35  ;;  %v4115_v31 = vmin.u32 %v2680_v29, %v7033_v27  ;;  %v2551_v33 = vsel %vm2545_vm15, %v2538_v19, 920167782 }
 0x48b   :  { %v2546_v47 = vsel %vm2542_vm1, %v2526_v43, %v2529_v11  ;;  %v2552_v46 = vsel %vm2544_vm3, %v2535_v23, %v2551_v33  ;;  %v2554_v9 = vsel %vm2542_vm1, %v2532_v59, %v2535_v23  ;;  %v2555_v15 = vsel %vm2545_vm15, %v2541_v21, 1326507024 }
 0x48c   :  { %vm2408_vm5 = vcmp.lt.s32.totalorder %v6733_v0, 0  ;;  %v2682_v4 = vclz %v4115_v31  ;;  %v2548_v51 = vsel %vm2544_vm3, %v2532_v59, %v2547_v26  ;;  %v2553_v50 = vsel %vm2543_vm4, %v2550_v30, %v2552_v46  ;;  %v2929_v59 = vld [vmem:[%s8230_s7 + $0x18] sm:$0xff] }
 0x48d   :  { %v2556_v2 = vsel %vm2544_vm3, %v2538_v19, %v2555_v15  ;;  %vm2304_vm6 = vcmp.lt.s32.totalorder %v6753_v17, 0  ;;  %v7059_v35 = vmul.u32.u64.low %v7004_v12, %v2553_v50  ;;  %v7060_v62 = vmul.u32.u64.high %v7004_v12, %v2553_v50, %v7059_v35  ;;  %v2930_v19 = vld [vmem:[%s8230_s7 + $0x20] sm:$0xff] }
 0x48e   :  { %v2557_v11 = vsel %vm2543_vm4, %v2554_v9, %v2556_v2  ;;  %v8281_v23 = vand.u32 2147483647, %v7008_v6  ;;  %v2385_v34 = vmul.f32 %v2384_v42, %v2382_v5  ;;  %v4116_v28 = vadd.s32 4294967294, %v2682_v4 }
 0x48f   :  { %v7073_v29 = vmul.u32.u64.low %v7004_v12, %v2557_v11  ;;  %v7074_v43 = vmul.u32.u64.high %v7004_v12, %v2557_v11, %v7073_v29  ;;  %v2490_v21 = vxor.u32 2147483648, %v7002_v25  ;;  %v2549_v26 = vsel %vm2543_vm4, %v2546_v47, %v2548_v51 }
 0x490   :  { %v2832_v30 = vadd.s32 1, %v7010_v22  ;;  %v2721_v31 = vand.u32 2139095040, %v7008_v6  ;;  %vm4117_vm9 = vcmp.lt.s32.totalorder %v4116_v28, 0  ;;  %v2830_v33 = vor.u32 8388608, %v7014_v49 }
 0x491   :  { %v4600_v46 = vpack.c.bf16 %v2929_v59, %v2928_v16  ;;  %v4604_v9 = vpack.c.bf16 %v2931_v53, %v2930_v19  ;;  %v7082_v5 = vsel %vm4117_vm9, 0, %v4116_v28  ;;  %v2568_v42 = vadd.s32 1, %v7060_v62 }
 0x492   :  { %vm2833_vm12 = vcmp.gt.s32.totalorder %v2832_v30, 0  ;;  %v2722_v15 = vshrl.u32 %v2721_v31, 23  ;;  %v2386_v4 = vxor.u32 2147483648, %v2385_v34  ;;  %v2690_v50 = vsub.s32 4294967266, %v7082_v5 }
 0x493   :  { %v2565_v24 = vmul.u32 %v7004_v12, %v2549_v26  ;;  %v7089_v22 = vand.u32 8388607, %v8281_v23  ;;  %4601 = vmatprep.subr.bf16.mxu1 %v4600_v46  ;;  %v2686_v49 = vsub.s32 32, %v7082_v5  ;;  %vm2567_vm14 = vc.u32 %v7074_v43, %v7059_v35 }
 0x494   :  { %v2834_v47 = vsel %vm2833_vm12, %v2832_v30, 0  ;;  %v4118_v51 = vadd.s32 4294967169, %v2722_v15  ;;  %4603 = vmatpush3.bf16.msra.mxu1 %v4600_v46  ;;  %v2670_v2 = vadd.s32 %v6963_v60, %v6971_v54  ;;  %v2691_v16 = vadd.s32 127, %v2690_v50 }
 0x495   :  { %v2569_v11 = vsel %vm2567_vm14, %v2568_v42, %v7060_v62  ;;  %v2835_v59 = vshrl.u32 %v2834_v47, 5  ;;  %4605 = vmatprep.subr.bf16.mxu1 %v4604_v9  ;;  %v7099_v12 = vsel %vm2408_vm5, %v2490_v21, %v7002_v25  ;;  %v2836_v53 = vand.u32 31, %v2834_v47 }
 0x496   :  { %v2570_v19 = vadd.s32 %v2569_v11, %v2565_v24  ;;  %v7101_v28 = vshll.u32 %v2830_v33, 8  ;;  %v7105_v29 = vsel %vm2304_vm6, %v2386_v4, %v2385_v34  ;;  %v2687_v60 = vshll.u32 %v7033_v27, %v7082_v5 }
 0x497   :  { %v7110_v54 = vadd.s32 %v7059_v35, %v7074_v43  ;;  %v2726_v62 = vor.u32 8388608, %v7089_v22  ;;  %v2688_v26 = vshrl.u32 %v2670_v2, %v2686_v49  ;;  %v2837_v25 = vsub.s32 32, %v2836_v53 }
 0x498   :  { %v2571_v30 = vadd.s32 536870912, %v2570_v19  ;;  %v2728_v21 = vadd.s32 1, %v4118_v51  ;;  %4607 = vmatpush3.bf16.msra.mxu1 %v4604_v9  ;;  %v2692_v31 = vshll.u32 %v2691_v16, 23  ;;  %v2839_v33 = vshll.u32 %v8297_v52, %v2836_v53 }
 0x499   :  { %v2842_v46 = vshll.u32 %v8339_v58, %v2836_v53  ;;  %vm2854_vm7 = vcmp.lt.s32.totalorder %v2835_v59, 1  ;;  %v2840_v27 = vshrl.u32 %v8339_v58, %v2837_v25  ;;  %v2843_v35 = vshrl.u32 %v8340_v45, %v2837_v25 }
 0x49a   :  { %v7115_v34 = vshrl.u32 %v2571_v30, 30  ;;  %v2845_v43 = vshll.u32 %v8340_v45, %v2836_v53  ;;  %v2846_v5 = vshrl.u32 %v8301_v44, %v2837_v25  ;;  %v2848_v42 = vshll.u32 %v8301_v44, %v2836_v53 }
 0x49b   :  { %v2849_v9 = vshrl.u32 %v8341_v38, %v2837_v25  ;;  %v2851_v15 = vshll.u32 %v8341_v38, %v2836_v53  ;;  %v2841_v50 = vor.u32 %v2840_v27, %v2839_v33  ;;  %v2844_v24 = vor.u32 %v2843_v35, %v2842_v46  ;;  %v2933_v35 = vld [vmem:[%s8230_s7 + $0x38] sm:$0xff] }
 0x49c   :  { %v2573_v4 = vshll.u32 %v7115_v34, 30  ;;  %v2852_v49 = vshrl.u32 %v8342_v39, %v2837_v25  ;;  %v2838_v47 = vshrl.u32 %v8297_v52, %v2837_v25  ;;  %v2847_v51 = vor.u32 %v2846_v5, %v2845_v43 }
 0x49d   :  { %v2850_v2 = vor.u32 %v2849_v9, %v2848_v42  ;;  %vm2855_vm13 = vcmp.lt.s32.totalorder %v2835_v59, 2  ;;  %vm2856_vm2 = vcmp.lt.s32.totalorder %v2835_v59, 3  ;;  %vm2857_vm11 = vcmp.lt.s32.totalorder %v2835_v59, 4  ;;  %v2938_v59 = vld [vmem:[%s8230_s7 + $0x60] sm:$0xff] }
 0x49e   :  { %v7127_v16 = vsub.s32 %v2570_v19, %v2573_v4  ;;  %v2853_v11 = vor.u32 %v2852_v49, %v2851_v15  ;;  %v2858_v30 = vsel %vm2854_vm7, %v2838_v47, %v2841_v50  ;;  %v2859_v23 = vsel %vm2857_vm11, %v2847_v51, 2102212464  ;;  %v2932_v19 = vld [vmem:[%s8230_s7 + $0x30] sm:$0xff] }
 0x49f   :  { %v2862_v53 = vsel %vm2854_vm7, %v2841_v50, %v2844_v24  ;;  %v2863_v41 = vsel %vm2857_vm11, %v2850_v2, 920167782  ;;  %v2860_v46 = vsel %vm2856_vm2, %v2844_v24, %v2859_v23  ;;  %v2866_v27 = vsel %vm2854_vm7, %v2844_v24, %v2847_v51  ;;  %v2934_v50 = vld [vmem:[%s8230_s7 + $0x40] sm:$0xff]  ;;  %v2936_v49 = vld [vmem:[%s8230_s7 + $0x50] sm:$0xff] }
 0x4a0   :  { %v2576_v33 = vsub.s32 0, %v7127_v16  ;;  %v2864_v25 = vsel %vm2856_vm2, %v2847_v51, %v2863_v41  ;;  %v7141_v43 = vor.u32 %v2688_v26, %v2687_v60  ;;  %v7143_v5 = vor.u32 4788187, %v2692_v31  ;;  %v2935_v60 = vld [vmem:[%s8230_s7 + $0x48] sm:$0xff] }
 0x4a1   :  { %v2865_v42 = vsel %vm2855_vm13, %v2862_v53, %v2864_v25  ;;  %v2867_v9 = vsel %vm2857_vm11, %v2853_v11, 1326507024  ;;  %v2861_v26 = vsel %vm2855_vm13, %v2858_v30, %v2860_v46  ;;  %vm2729_vm1 = vcmp.gt.s32.totalorder %v2728_v21, 0  ;;  %v2937_v53 = vld [vmem:[%s8230_s7 + $0x58] sm:$0xff]  ;;  %v2939_v30 = vld [vmem:[%s8230_s7 + $0x68] sm:$0xff] }
 0x4a2   :  { %v4111_v23 = vmin.u32 %v2576_v33, %v7127_v16  ;;  %v2868_v41 = vsel %vm2856_vm2, %v2850_v2, %v2867_v9  ;;  %v7149_v15 = vmul.u32.u64.low %v7101_v28, %v2865_v42  ;;  %v7150_v4 = vmul.u32.u64.high %v7101_v28, %v2865_v42, %v7149_v15 }
 0x4a3   :  { %v2869_v31 = vsel %vm2855_vm13, %v2866_v27, %v2868_v41  ;;  %v4608_v24 = vpack.c.bf16 %v2933_v35, %v2932_v19  ;;  %v2730_v11 = vsel %vm2729_vm1, %v2728_v21, 0  ;;  %v2694_v33 = vand.u32 2147483647, %v7143_v5 }
 0x4a4   :  { %v2578_v47 = vclz %v4111_v23  ;;  %v7165_v51 = vmul.u32.u64.low %v7101_v28, %v2869_v31  ;;  %v7166_v2 = vmul.u32.u64.high %v7101_v28, %v2869_v31, %v7165_v51  ;;  %v2696_v46 = vcvt.s32.f32 %v7141_v43 }
 0x4a5   :  { %v2732_v25 = vand.u32 31, %v2730_v11  ;;  %4609 = vmatprep.subr.bf16.mxu1 %v4608_v24  ;;  %v4612_v27 = vpack.c.bf16 %v2935_v60, %v2934_v50  ;;  %v2877_v19 = vmul.u32 %v7101_v28, %v2861_v26  ;;  %v2880_v35 = vadd.s32 1, %v7150_v4 }
 0x4a6   :  { %v4112_v21 = vadd.s32 4294967294, %v2578_v47  ;;  %v7181_v42 = vshrl.u32 %v2730_v11, 5  ;;  %4611 = vmatpush3.bf16.msra.mxu1 %v4608_v24  ;;  %v4616_v41 = vpack.c.bf16 %v2937_v53, %v2936_v49  ;;  %v4620_v31 = vpack.c.bf16 %v2939_v30, %v2938_v59 }
 0x4a7   :  { %v2733_v9 = vsub.s32 32, %v2732_v25  ;;  %v2735_v23 = vshll.u32 %v8297_v52, %v2732_v25  ;;  %4613 = vmatprep.subr.bf16.mxu1 %v4612_v27  ;;  %vm2879_vm15 = vc.u32 %v7166_v2, %v7149_v15  ;;  %v2738_v43 = vshll.u32 %v8339_v58, %v2732_v25 }
 0x4a8   :  { %vm4113_vm4 = vcmp.lt.s32.totalorder %v4112_v21, 0  ;;  %v2741_v5 = vshll.u32 %v8340_v45, %v2732_v25  ;;  %v2881_v50 = vsel %vm2879_vm15, %v2880_v35, %v7150_v4  ;;  %v2744_v26 = vshll.u32 %v8301_v44, %v2732_v25 }
 0x4a9   :  { %v2581_v28 = vsel %vm4113_vm4, 0, %v4112_v21  ;;  %v2736_v60 = vshrl.u32 %v8339_v58, %v2733_v9  ;;  %v2882_v51 = vadd.s32 %v2881_v50, %v2877_v19  ;;  %v2739_v53 = vshrl.u32 %v8340_v45, %v2733_v9 }
 0x4aa   :  { %v2582_v24 = vsub.s32 32, %v2581_v28  ;;  %v2583_v47 = vshll.u32 %v7127_v16, %v2581_v28  ;;  %v2586_v49 = vsub.s32 4294967266, %v2581_v28  ;;  %4615 = vmatpush3.bf16.msra.mxu1 %v4612_v27  ;;  %v2742_v59 = vshrl.u32 %v8301_v44, %v2733_v9  ;;  %v2940_v16 = vld [vmem:[%s8230_s7 + $0x70] sm:$0xff]  ;;  %v2941_v27 = vld [vmem:[%s8230_s7 + $0x78] sm:$0xff] }
 0x4ab   :  { %v2737_v11 = vor.u32 %v2736_v60, %v2735_v23  ;;  %v2745_v30 = vshrl.u32 %v8341_v38, %v2733_v9  ;;  %4617 = vmatprep.subr.bf16.mxu1 %v4616_v41  ;;  %v2883_v35 = vadd.s32 536870912, %v2882_v51  ;;  %v2747_v40 = vshll.u32 %v8341_v38, %v2732_v25 }
 0x4ac   :  { %v2584_v4 = vshrl.u32 %v7110_v54, %v2582_v24  ;;  %v2587_v21 = vadd.s32 127, %v2586_v49  ;;  %v2740_v19 = vor.u32 %v2739_v53, %v2738_v43  ;;  %v2743_v23 = vor.u32 %v2742_v59, %v2741_v5 }
 0x4ad   :  { %v2746_v28 = vor.u32 %v2745_v30, %v2744_v26  ;;  %v2748_v50 = vshrl.u32 %v8342_v39, %v2733_v9  ;;  %v7204_v60 = vmul.f32 %v2696_v46, %v2694_v33  ;;  %v7206_v24 = vshrl.u32 %v2883_v35, 30 }
 0x4ae   :  { %v2588_v54 = vshll.u32 %v2587_v21, 23  ;;  %v2766_v25 = vshll.u32 %v2726_v62, 8  ;;  %4619 = vmatpush3.bf16.msra.mxu1 %v4616_v41  ;;  %vm7212_vm3 = vcmp.le.f32.partialorder %v2094_v48, 0.7853982  ;;  %v2585_v43 = vor.u32 %v2584_v4, %v2583_v47 }
 0x4af   :  { %v2734_v5 = vshrl.u32 %v8297_v52, %v2733_v9  ;;  %v2749_v26 = vor.u32 %v2748_v50, %v2747_v40  ;;  %4621 = vmatprep.subr.bf16.mxu1 %v4620_v31  ;;  %v4624_v33 = vpack.c.bf16 %v2941_v27, %v2940_v16  ;;  %v2885_v53 = vshll.u32 %v7206_v24, 30 }
 0x4b0   :  { %v2589_v46 = vor.u32 4788187, %v2588_v54  ;;  %vm2750_vm9 = vcmp.lt.s32.totalorder %v7181_v42, 1  ;;  %vm2753_vm12 = vcmp.lt.s32.totalorder %v7181_v42, 4  ;;  %vm2752_vm14 = vcmp.lt.s32.totalorder %v7181_v42, 3 }
 0x4b1   :  { %v2755_v22 = vsel %vm2753_vm12, %v2743_v23, 2102212464  ;;  %v2758_v48 = vsel %vm2750_vm9, %v2737_v11, %v2740_v19  ;;  %v2759_v62 = vsel %vm2753_vm12, %v2746_v28, 920167782  ;;  %v7221_v41 = vsub.s32 %v2882_v51, %v2885_v53 }
 0x4b2   :  { %vm2751_vm7 = vcmp.lt.s32.totalorder %v7181_v42, 2  ;;  %v2760_v40 = vsel %vm2752_vm14, %v2743_v23, %v2759_v62  ;;  %v2762_v9 = vsel %vm2750_vm9, %v2740_v19, %v2743_v23  ;;  %4623 = vmatpush3.bf16.msra.mxu1 %v4620_v31  ;;  %v2754_v47 = vsel %vm2750_vm9, %v2734_v5, %v2737_v11 }
 0x4b3   :  { %v2761_v59 = vsel %vm2751_vm7, %v2758_v48, %v2760_v40  ;;  %v2763_v30 = vsel %vm2753_vm12, %v2749_v26, 1326507024  ;;  %4625 = vmatprep.subr.bf16.mxu1 %v4624_v33  ;;  %v2180_v4 = vsub.s32 4, %v6779_v3  ;;  %v2590_v21 = vand.u32 2147483647, %v2589_v46 }
 0x4b4   :  { %v2888_v35 = vsub.s32 0, %v7221_v41  ;;  %v2756_v51 = vsel %vm2752_vm14, %v2740_v19, %v2755_v22  ;;  %v2764_v16 = vsel %vm2752_vm14, %v2746_v28, %v2763_v30  ;;  %v2592_v50 = vcvt.s32.f32 %v2585_v43 }
 0x4b5   :  { %v2765_v31 = vsel %vm2751_vm7, %v2762_v9, %v2764_v16  ;;  %v7236_v11 = vmul.u32.u64.low %v2766_v25, %v2761_v59  ;;  %v7237_v27 = vmul.u32.u64.high %v2766_v25, %v2761_v59, %v7236_v11  ;;  %v2181_v23 = vsel %vm2096_vm8, %v2180_v4, %v6779_v3 }
 0x4b6   :  { %v4123_v54 = vmin.u32 %v2888_v35, %v7221_v41  ;;  %v7244_v5 = vmul.u32.u64.low %v2766_v25, %v2765_v31  ;;  %v7245_v26 = vmul.u32.u64.high %v2766_v25, %v2765_v31, %v7244_v5  ;;  %4627 = vmatpush3.bf16.msra.mxu1 %v4624_v33  ;;  %v2757_v19 = vsel %vm2751_vm7, %v2754_v47, %v2756_v51 }
 0x4b7   :  { %v2182_v28 = vsel %vm7212_vm3, %v6655_v18, %v6987_v20  ;;  %v2183_v46 = vsel %vm7212_vm3, 0, %v2181_v23  ;;  %v2284_v3 = vsub.s32 4, %v6746_v32  ;;  %v7256_v43 = vmul.f32 %v2592_v50, %v2590_v21 }
 0x4b8   :  { %v2890_v53 = vclz %v4123_v54  ;;  %4878 = vcosq.f32 %v2182_v28  ;;  %v2187_v22 = vadd.s32 3, %v2183_v46  ;;  %v2698_v33 = vxor.u32 2147483648, %v7204_v60 }
 0x4b9   :  { %v2776_v42 = vadd.s32 1, %v7237_v27  ;;  %4880 = vsinq.f32 %v2182_v28  ;;  %v2285_v48 = vsel %vm2200_vm10, %v2284_v3, %v6746_v32  ;;  %v2878_v20 = vadd.s32 %v7149_v15, %v7166_v2 }
 0x4ba   :  { %v4124_v49 = vadd.s32 4294967294, %v2890_v53  ;;  %v2773_v62 = vmul.u32 %v2766_v25, %v2757_v19  ;;  %vm2775_vm8 = vc.u32 %v7245_v26, %v7236_v11  ;;  %v2188_v9 = vand.u32 3, %v2187_v22 }
 0x4bb   :  { %v2777_v40 = vsel %vm2775_vm8, %v2776_v42, %v7237_v27  ;;  %v2287_v47 = vsel %vm6821_vm0, 0, %v2285_v48  ;;  %v2388_v59 = vsub.s32 4, %v6945_v36  ;;  %v2594_v30 = vxor.u32 2147483648, %v7256_v43 }
 0x4bc   :  { %vm4125_vm13 = vcmp.lt.s32.totalorder %v4124_v49, 0  ;;  %v2778_v32 = vadd.s32 %v2777_v40, %v2773_v62  ;;  %v2295_v4 = vxor.u32 2147483648, %v7023_v56  ;;  %vm2290_vm10 = vweird.f32 %v6652_v14 }
 0x4bd   :  { %v2893_v15 = vsel %vm4125_vm13, 0, %v4124_v49  ;;  %v2291_v2 = vadd.s32 3, %v2287_v47  ;;  %v2298_v25 = vxor.u32 2147483648, %v7018_v8  ;;  %vm7277_vm2 = vcmp.le.f32.partialorder %v2302_v13, 0.7853982 }
 0x4be   :  { %vm2512_vm0 = vcmp.lt.s32.totalorder %v6857_v7, 0  ;;  %v2894_v55 = vsub.s32 32, %v2893_v15  ;;  %v2898_v35 = vsub.s32 4294967266, %v2893_v15  ;;  %v2779_v51 = vadd.s32 536870912, %v2778_v32 }
 0x4bf   :  { %v2389_v16 = vsel %vm2304_vm6, %v2388_v59, %v6945_v36  ;;  %vm2186_vm11 = vweird.f32 %v6655_v18  ;;  %vm2189_vm1 = vcmp.lt.s32.totalorder %v2188_v9, 2  ;;  %vm2193_vm4 = vcmp.eq.s32.totalorder %v2188_v9, 2 }
 0x4c0   :  { %v2292_v31 = vand.u32 3, %v2291_v2  ;;  %v2390_v13 = vsel %vm7277_vm2, %v6753_v17, %v7105_v29  ;;  %vm2616_vm15 = vcmp.lt.s32.totalorder %v6763_v57, 0  ;;  %v2896_v27 = vshrl.u32 %v2878_v20, %v2894_v55 }
 0x4c1   :  { %v2899_v23 = vadd.s32 127, %v2898_v35  ;;  %v7291_v50 = vshrl.u32 %v2779_v51, 30  ;;  %4882 = vcosq.f32 %v2390_v13  ;;  %v2895_v54 = vshll.u32 %v7221_v41, %v2893_v15 }
 0x4c2   :  { %vm2294_vm6 = vcmp.eq.s32.totalorder %v2292_v31, 0  ;;  %v2391_v36 = vsel %vm7277_vm2, 0, %v2389_v16  ;;  %4884 = vsinq.f32 %v2390_v13  ;;  %v4879_v5 = vpop.eup %4878  ;;  %vm2297_vm3 = vcmp.eq.s32.totalorder %v2292_v31, 2 }
 0x4c3   :  { %v2900_v19 = vshll.u32 %v2899_v23, 23  ;;  %v2781_v28 = vshll.u32 %v7291_v50, 30  ;;  %v2296_v29 = vsel %vm2294_vm6, %v7018_v8, %v2295_v4  ;;  %v4881_v46 = vpop.eup %4880  ;;  %v2897_v3 = vor.u32 %v2896_v27, %v2895_v54 }
 0x4c4   :  { %v2194_v53 = vxor.u32 2147483648, %v4879_v5  ;;  %vm2293_vm9 = vcmp.lt.s32.totalorder %v2292_v31, 2  ;;  %v2299_v22 = vsel %vm2297_vm3, %v2298_v25, %v7023_v56  ;;  %v2191_v48 = vxor.u32 2147483648, %v4881_v46 }
 0x4c5   :  { %v2901_v42 = vor.u32 4788187, %v2900_v19  ;;  %v7299_v41 = vsub.s32 %v2778_v32, %v2781_v28  ;;  %v2395_v20 = vadd.s32 3, %v2391_v36  ;;  %vm2190_vm12 = vcmp.eq.s32.totalorder %v2188_v9, 0 }
 0x4c6   :  { %v2195_v49 = vsel %vm2193_vm4, %v2194_v53, %v4881_v46  ;;  %v2300_v62 = vsel %vm2293_vm9, %v2296_v29, %v2299_v22  ;;  %v2492_v40 = vsub.s32 4, %v6892_v10  ;;  %v2192_v59 = vsel %vm2190_vm12, %v4879_v5, %v2191_v48 }
 0x4c7   :  { %v2902_v47 = vand.u32 2147483647, %v2901_v42  ;;  %v2784_v8 = vsub.s32 0, %v7299_v41  ;;  %v2301_v4 = vsel %vm2290_vm10, nan, %v2300_v62  ;;  %v2595_v56 = vsel %vm2512_vm0, %v2594_v30, %v7256_v43 }
 0x4c8   :  { %v2904_v32 = vcvt.s32.f32 %v2897_v3  ;;  %v2196_v15 = vsel %vm2189_vm1, %v2192_v59, %v2195_v49  ;;  %vm7312_vm14 = vcmp.le.f32.partialorder %v2406_v61, 0.7853982  ;;  %v2396_v14 = vand.u32 3, %v2395_v20 }
 0x4c9   :  { %v4119_v25 = vmin.u32 %v2784_v8, %v7299_v41  ;;  %v2197_v21 = vsel %vm2186_vm11, nan, %v2196_v15  ;;  %v2493_v55 = vsel %vm2408_vm5, %v2492_v40, %v6892_v10  ;;  %v2699_v43 = vsel %vm2616_vm15, %v2698_v33, %v7204_v60 }
 0x4ca   :  { %v2905_v61 = vmul.f32 %v2904_v32, %v2902_v47  ;;  %4444 = vmatprep.mubr.f32.mxu1 %v2197_v21  ;;  %v2494_v9 = vsel %vm7312_vm14, %v6733_v0, %v7099_v12  ;;  %v2495_v35 = vsel %vm7312_vm14, 0, %v2493_v55  ;;  %vm7335_vm5 = vcmp.le.f32.partialorder %v2510_v1, 0.7853982 }
 0x4cb   :  { %v4883_v18 = vpop.eup %4882  ;;  %v2786_v30 = vclz %v4119_v25  ;;  %4445 = vmatmul.mubr.f32.vlgmr.msra.gmra.mrb[8].mxu1 %v2301_v4  ;;  %4886 = vcosq.f32 %v2494_v9  ;;  %v2596_v51 = vsub.s32 4, %v7115_v34  ;;  %v2598_v12 = vsel %vm7335_vm5, %v6857_v7, %v2595_v56 }
 0x4cc   :  { %v4885_v60 = vpop.eup %4884  ;;  %v2402_v33 = vxor.u32 2147483648, %v4883_v18  ;;  %4888 = vsinq.f32 %v2494_v9  ;;  %vm2398_vm7 = vcmp.eq.s32.totalorder %v2396_v14, 0  ;;  %vm2401_vm8 = vcmp.eq.s32.totalorder %v2396_v14, 2 }
 0x4cd   :  { %v4120_v16 = vadd.s32 4294967294, %v2786_v30  ;;  %v2399_v31 = vxor.u32 2147483648, %v4885_v60  ;;  %v2499_v27 = vadd.s32 3, %v2495_v35  ;;  %v2597_v1 = vsel %vm2512_vm0, %v2596_v51, %v7115_v34 }
 0x4ce   :  { %v2403_v13 = vsel %vm2401_vm8, %v2402_v33, %v4885_v60  ;;  %4890 = vcosq.f32 %v2598_v12  ;;  %v2774_v23 = vadd.s32 %v7236_v11, %v7245_v26  ;;  %vm2397_vm10 = vcmp.lt.s32.totalorder %v2396_v14, 2 }
 0x4cf   :  { %vm4121_vm13 = vcmp.lt.s32.totalorder %v4120_v16, 0  ;;  %v2400_v54 = vsel %vm2398_vm7, %v4883_v18, %v2399_v31  ;;  %v2906_v36 = vxor.u32 2147483648, %v2905_v61  ;;  %vm2394_vm2 = vweird.f32 %v6753_v17 }
 0x4d0   :  { %v2789_v5 = vsel %vm4121_vm13, 0, %v4120_v16  ;;  %v2404_v19 = vsel %vm2397_vm10, %v2400_v54, %v2403_v13  ;;  %v2599_v3 = vsel %vm7335_vm5, 0, %v2597_v1  ;;  %v2500_v34 = vand.u32 3, %v2499_v27 }
 0x4d1   :  { %v2790_v28 = vsub.s32 32, %v2789_v5  ;;  %v2794_v29 = vsub.s32 4294967266, %v2789_v5  ;;  %v2405_v46 = vsel %vm2394_vm2, nan, %v2404_v19  ;;  %4892 = vsinq.f32 %v2598_v12 }
 0x4d2   :  { %4447 = vmatprep.mubr.f32.mxu1 %v2405_v46  ;;  %v8373_v53 = vand.u32 2147483647, %v6763_v57  ;;  %v2700_v26 = vsub.s32 4, %v7020_v37  ;;  %v2791_v17 = vshll.u32 %v7299_v41, %v2789_v5  ;;  %vm2824_vm11 = vcmp.lt.s32.totalorder %v6938_v63, 0 }
 0x4d3   :  { %v2792_v22 = vshrl.u32 %v2774_v23, %v2790_v28  ;;  %v2795_v42 = vadd.s32 127, %v2794_v29  ;;  %v2603_v20 = vadd.s32 3, %v2599_v3  ;;  %v2907_v59 = vsel %vm2824_vm11, %v2906_v36, %v2905_v61 }
 0x4d4   :  { %vm7353_vm0 = vcmp.le.f32.partialorder %v8373_v53, 0.7853982  ;;  %v2701_v49 = vsel %vm2616_vm15, %v2700_v26, %v7020_v37  ;;  %vm2498_vm1 = vweird.f32 %v6733_v0  ;;  %vm2501_vm4 = vcmp.lt.s32.totalorder %v2500_v34, 2 }
 0x4d5   :  { %v2702_v48 = vsel %vm7353_vm0, %v6763_v57, %v2699_v43  ;;  %v4887_v62 = vpop.eup %4886  ;;  %v2793_v40 = vor.u32 %v2792_v22, %v2791_v17  ;;  %v2796_v47 = vshll.u32 %v2795_v42, 23  ;;  %v2703_v41 = vsel %vm7353_vm0, 0, %v2701_v49 }
 0x4d6   :  { %4894 = vcosq.f32 %v2702_v48  ;;  %v4889_v8 = vpop.eup %4888  ;;  %v2506_v4 = vxor.u32 2147483648, %v4887_v62  ;;  %vm2505_vm6 = vcmp.eq.s32.totalorder %v2500_v34, 2  ;;  %v2707_v37 = vadd.s32 3, %v2703_v41 }
 0x4d7   :  { %4896 = vsinq.f32 %v2702_v48  ;;  %v2797_v56 = vor.u32 4788187, %v2796_v47  ;;  %v2503_v32 = vxor.u32 2147483648, %v4889_v8  ;;  %v2800_v2 = vcvt.s32.f32 %v2793_v40 }
 0x4d8   :  { %v4891_v15 = vpop.eup %4890  ;;  %vm2502_vm15 = vcmp.eq.s32.totalorder %v2500_v34, 0  ;;  %v2507_v25 = vsel %vm2505_vm6, %v2506_v4, %v4889_v8  ;;  %v2604_v21 = vand.u32 3, %v2603_v20  ;;  %v8376_v9 = vand.u32 2147483647, %v6938_v63 }
 0x4d9   :  { %v2798_v14 = vand.u32 2147483647, %v2797_v56  ;;  %v2504_v55 = vsel %vm2502_vm15, %v4887_v62, %v2503_v32  ;;  %v2610_v43 = vxor.u32 2147483648, %v4891_v15  ;;  %v2804_v30 = vsub.s32 4, %v7291_v50 }
 0x4da   :  { %vm7373_vm3 = vcmp.le.f32.partialorder %v8376_v9, 0.7853982  ;;  %v2508_v18 = vsel %vm2501_vm4, %v2504_v55, %v2507_v25  ;;  %v2908_v35 = vsub.s32 4, %v7206_v24  ;;  %vm2720_vm9 = vcmp.lt.s32.totalorder %v7008_v6, 0 }
 0x4db   :  { %v2910_v10 = vsel %vm7373_vm3, %v6938_v63, %v2907_v59  ;;  %v2801_v60 = vmul.f32 %v2800_v2, %v2798_v14  ;;  %v2509_v33 = vsel %vm2498_vm1, nan, %v2508_v18  ;;  %v2708_v51 = vand.u32 3, %v2707_v37  ;;  %v4893_v12 = vpop.eup %4892 }
 0x4dc   :  { %4448 = vmatmul.mubr.f32.gmra.mrb[10].mxu1 %v2509_v33  ;;  %vm2602_vm12 = vweird.f32 %v6857_v7  ;;  %vm2609_vm14 = vcmp.eq.s32.totalorder %v2604_v21, 2  ;;  %v8379_v16 = vand.u32 2147483647, %v7008_v6  ;;  %4898 = vcosq.f32 %v2910_v10 }
 0x4dd   :  { %v2802_v13 = vxor.u32 2147483648, %v2801_v60  ;;  %v2607_v27 = vxor.u32 2147483648, %v4893_v12  ;;  %v2611_v1 = vsel %vm2609_vm14, %v2610_v43, %v4893_v12  ;;  %v2909_v0 = vsel %vm2824_vm11, %v2908_v35, %v7206_v24 }
 0x4de   :  { %vm7388_vm5 = vcmp.le.f32.partialorder %v8379_v16, 0.7853982  ;;  %vm2605_vm7 = vcmp.lt.s32.totalorder %v2604_v21, 2  ;;  %vm2606_vm8 = vcmp.eq.s32.totalorder %v2604_v21, 0  ;;  %v2805_v54 = vsel %vm2720_vm9, %v2804_v30, %v7291_v50  ;;  %v7415_v21 = vld [vmem:[%s8231_s8] ss:$0 sm:$0xff] }
 0x4df   :  { %4900 = vsinq.f32 %v2910_v10  ;;  %v2803_v5 = vsel %vm2720_vm9, %v2802_v13, %v2801_v60  ;;  %v2608_v19 = vsel %vm2606_vm8, %v4891_v15, %v2607_v27  ;;  %vm2713_vm13 = vcmp.eq.s32.totalorder %v2708_v51, 2 }
 0x4e0   :  { %v4895_v23 = vpop.eup %4894  ;;  %v2612_v29 = vsel %vm2605_vm7, %v2608_v19, %v2611_v1  ;;  %v2806_v24 = vsel %vm7388_vm5, %v7008_v6, %v2803_v5  ;;  %v2911_v3 = vsel %vm7373_vm3, 0, %v2909_v0  ;;  %vm2710_vm10 = vcmp.eq.s32.totalorder %v2708_v51, 0 }
 0x4e1   :  { %v4897_v36 = vpop.eup %4896  ;;  %v2714_v28 = vxor.u32 2147483648, %v4895_v23  ;;  %v2613_v50 = vsel %vm2602_vm12, nan, %v2612_v29  ;;  %4902 = vcosq.f32 %v2806_v24  ;;  %vm2709_vm2 = vcmp.lt.s32.totalorder %v2708_v51, 2 }
 0x4e2   :  { %v2711_v46 = vxor.u32 2147483648, %v4897_v36  ;;  %4450 = vmatprep.mubr.f32.mxu1 %v2613_v50  ;;  %v2807_v11 = vsel %vm7388_vm5, 0, %v2805_v54  ;;  %4904 = vsinq.f32 %v2806_v24  ;;  %vm2706_vm0 = vweird.f32 %v6763_v57 }
 0x4e3   :  { %v2715_v34 = vsel %vm2713_vm13, %v2714_v28, %v4897_v36  ;;  %v2915_v17 = vadd.s32 3, %v2911_v3  ;;  %v2811_v42 = vadd.s32 3, %v2807_v11  ;;  %vm2810_vm9 = vweird.f32 %v7008_v6 }
 0x4e4   :  { %v2712_v53 = vsel %vm2710_vm10, %v4895_v23, %v2711_v46  ;;  %vm2914_vm12 = vweird.f32 %v6938_v63 }
 0x4e5   :  { %v2716_v26 = vsel %vm2709_vm2, %v2712_v53, %v2715_v34  ;;  %v2916_v7 = vand.u32 3, %v2915_v17  ;;  %v2812_v62 = vand.u32 3, %v2811_v42 }
 0x4e6   :  { %v2717_v22 = vsel %vm2706_vm0, nan, %v2716_v26  ;;  %v4899_v48 = vpop.eup %4898 }
 0x4e7   :  { %4451 = vmatmul.mubr.f32.gmra.mrb[12].mxu1 %v2717_v22  ;;  %v2922_v49 = vxor.u32 2147483648, %v4899_v48  ;;  %vm2918_vm11 = vcmp.eq.s32.totalorder %v2916_v7, 0  ;;  %vm2921_vm1 = vcmp.eq.s32.totalorder %v2916_v7, 2  ;;  %vm2817_vm4 = vcmp.eq.s32.totalorder %v2812_v62, 2 }
 0x4e8   :  { %vm2814_vm6 = vcmp.eq.s32.totalorder %v2812_v62, 0  ;;  %vm2917_vm15 = vcmp.lt.s32.totalorder %v2916_v7, 2  ;;  %vm2813_vm3 = vcmp.lt.s32.totalorder %v2812_v62, 2 }
 0x4e9   :  { %v4901_v20 = vpop.eup %4900 }
 0x4ea   :  { %v2919_v40 = vxor.u32 2147483648, %v4901_v20  ;;  %v2923_v4 = vsel %vm2921_vm1, %v2922_v49, %v4901_v20 }
 0x4eb   :  { %v4903_v47 = vpop.eup %4902 }
 0x4ec   :  { %v4905_v41 = vpop.eup %4904  ;;  %v2818_v8 = vxor.u32 2147483648, %v4903_v47  ;;  %v2920_v59 = vsel %vm2918_vm11, %v4899_v48, %v2919_v40 }
 0x4ed   :  { %v2815_v56 = vxor.u32 2147483648, %v4905_v41  ;;  %v2924_v37 = vsel %vm2917_vm15, %v2920_v59, %v2923_v4 }
 0x4ee   :  { %v2819_v57 = vsel %vm2817_vm4, %v2818_v8, %v4905_v41  ;;  %v2925_v25 = vsel %vm2914_vm12, nan, %v2924_v37 }
 0x4ef   :  { %v2816_v32 = vsel %vm2814_vm6, %v4903_v47, %v2815_v56 }
 0x4f0   :  { %v2820_v15 = vsel %vm2813_vm3, %v2816_v32, %v2819_v57 }
 0x4f1   :  { %v2821_v2 = vsel %vm2810_vm9, nan, %v2820_v15 }
 0x4f2   :  { %4453 = vmatprep.mubr.f32.mxu1 %v2821_v2 }
 0x4f3   :  { %4454 = vmatmul.mubr.f32.gmra.mrb[14].mxu1 %v2925_v25 }
 0x59e   :  { %v4446_v14 = vpop.f32.mrb[8].mxu1 }
 0x59f   :  { %v7418_v55 = vadd.f32 %v4446_v14, %v7415_v21  ;;  %v3015_v43 = vpop.f32.mrb[9].mxu1 }
 0x5a0   :  { %v7421_v9 = vadd.f32 %v7415_v21, %v3015_v43 }
 0x5a1   :  { %v3158_v6 = vand.u32 2147483647, %v7418_v55  ;;  %v3161_v63 = vand.u32 2139095040, %v7418_v55 }
 0x5a2   :  { %v3054_v61 = vand.u32 2147483647, %v7421_v9  ;;  %v3057_v18 = vand.u32 2139095040, %v7421_v9 }
 0x5a3   :  { %v3162_v30 = vshrl.u32 %v3161_v63, 23  ;;  %v3165_v35 = vand.u32 8388607, %v3158_v6 }
 0x5a4   :  { %v3058_v10 = vshrl.u32 %v3057_v18, 23  ;;  %v3061_v60 = vand.u32 8388607, %v3054_v61 }
 0x5a5   :  { %v4131_v33 = vadd.s32 4294967169, %v3162_v30  ;;  %v3166_v16 = vor.u32 8388608, %v3165_v35 }
 0x5a6   :  { %v4127_v51 = vadd.s32 4294967169, %v3058_v10  ;;  %v3062_v31 = vor.u32 8388608, %v3061_v60 }
 0x5a7   :  { %v3168_v12 = vadd.s32 1, %v4131_v33  ;;  %v7431_v54 = vshll.u32 %v3166_v16, 8 }
 0x5a8   :  { %v3064_v13 = vadd.s32 1, %v4127_v51  ;;  %v7433_v36 = vshll.u32 %v3062_v31, 8 }
 0x5a9   :  { %vm3169_vm14 = vcmp.gt.s32.totalorder %v3168_v12, 0 }
 0x5aa   :  { %v3170_v27 = vsel %vm3169_vm14, %v3168_v12, 0  ;;  %vm3065_vm5 = vcmp.gt.s32.totalorder %v3064_v13, 0  ;;  %vm3160_vm14 = vcmp.lt.s32.totalorder %v7418_v55, 0 }
 0x5ab   :  { %v3171_v1 = vshrl.u32 %v3170_v27, 5  ;;  %v3172_v0 = vand.u32 31, %v3170_v27  ;;  %v3066_v23 = vsel %vm3065_vm5, %v3064_v13, 0 }
 0x5ac   :  { %v7436_v28 = vshrl.u32 %v3066_v23, 5  ;;  %v3068_v29 = vand.u32 31, %v3066_v23 }
 0x5ad   :  { %v3173_v5 = vsub.s32 32, %v3172_v0  ;;  %v3175_v19 = vshll.u32 %v8297_v52, %v3172_v0  ;;  %v3178_v46 = vshll.u32 %v8339_v58, %v3172_v0  ;;  %v3181_v24 = vshll.u32 %v8340_v45, %v3172_v0 }
 0x5ae   :  { %v3184_v3 = vshll.u32 %v8301_v44, %v3172_v0  ;;  %v3187_v50 = vshll.u32 %v8341_v38, %v3172_v0  ;;  %vm3190_vm7 = vcmp.lt.s32.totalorder %v3171_v1, 1  ;;  %vm3191_vm8 = vcmp.lt.s32.totalorder %v3171_v1, 2 }
 0x5af   :  { %v3176_v34 = vshrl.u32 %v8339_v58, %v3173_v5  ;;  %v3179_v53 = vshrl.u32 %v8340_v45, %v3173_v5  ;;  %v3182_v11 = vshrl.u32 %v8301_v44, %v3173_v5  ;;  %v7445_v26 = vpop.f32.mrb[10].mxu1  ;;  %v3174_v17 = vshrl.u32 %v8297_v52, %v3173_v5 }
 0x5b0   :  { %v3185_v22 = vshrl.u32 %v8341_v38, %v3173_v5  ;;  %v3188_v42 = vshrl.u32 %v8342_v39, %v3173_v5  ;;  %v7450_v48 = vpop.f32.mrb[11].mxu1  ;;  %v3069_v62 = vsub.s32 32, %v3068_v29  ;;  %vm3192_vm13 = vcmp.lt.s32.totalorder %v3171_v1, 3 }
 0x5b1   :  { %v3177_v7 = vor.u32 %v3176_v34, %v3175_v19  ;;  %v3180_v20 = vor.u32 %v3179_v53, %v3178_v46  ;;  %v3183_v49 = vor.u32 %v3182_v11, %v3181_v24  ;;  %vm3193_vm10 = vcmp.lt.s32.totalorder %v3171_v1, 4 }
 0x5b2   :  { %v3186_v40 = vor.u32 %v3185_v22, %v3184_v3  ;;  %v3189_v47 = vor.u32 %v3188_v42, %v3187_v50  ;;  %v3071_v37 = vshll.u32 %v8297_v52, %v3068_v29  ;;  %v3072_v25 = vshrl.u32 %v8339_v58, %v3069_v62 }
 0x5b3   :  { %v3194_v41 = vsel %vm3190_vm7, %v3174_v17, %v3177_v7  ;;  %v3195_v8 = vsel %vm3193_vm10, %v3183_v49, 2102212464  ;;  %v3198_v59 = vsel %vm3190_vm7, %v3177_v7, %v3180_v20  ;;  %v3202_v4 = vsel %vm3190_vm7, %v3180_v20, %v3183_v49 }
 0x5b4   :  { %v3196_v56 = vsel %vm3192_vm13, %v3180_v20, %v3195_v8  ;;  %v3199_v57 = vsel %vm3193_vm10, %v3186_v40, 920167782  ;;  %v3203_v32 = vsel %vm3193_vm10, %v3189_v47, 1326507024  ;;  %v3074_v14 = vshll.u32 %v8339_v58, %v3068_v29 }
 0x5b5   :  { %v3200_v15 = vsel %vm3192_vm13, %v3183_v49, %v3199_v57  ;;  %v3204_v2 = vsel %vm3192_vm13, %v3186_v40, %v3203_v32  ;;  %v3197_v43 = vsel %vm3191_vm8, %v3194_v41, %v3196_v56  ;;  %v3075_v30 = vshrl.u32 %v8340_v45, %v3069_v62 }
 0x5b6   :  { %v3201_v63 = vsel %vm3191_vm8, %v3198_v59, %v3200_v15  ;;  %v3205_v18 = vsel %vm3191_vm8, %v3202_v4, %v3204_v2  ;;  %v3073_v51 = vor.u32 %v3072_v25, %v3071_v37  ;;  %v3077_v16 = vshll.u32 %v8340_v45, %v3068_v29 }
 0x5b7   :  { %v7463_v35 = vmul.u32.u64.low %v7431_v54, %v3205_v18  ;;  %v7464_v10 = vmul.u32.u64.high %v7431_v54, %v3205_v18, %v7463_v35  ;;  %v7467_v60 = vmul.u32.u64.low %v7431_v54, %v3201_v63  ;;  %v7468_v33 = vmul.u32.u64.high %v7431_v54, %v3201_v63, %v7467_v60 }
 0x5b8   :  { %v3076_v12 = vor.u32 %v3075_v30, %v3074_v14  ;;  %v3078_v31 = vshrl.u32 %v8301_v44, %v3069_v62  ;;  %v3070_v27 = vshrl.u32 %v8297_v52, %v3069_v62  ;;  %v3080_v1 = vshll.u32 %v8301_v44, %v3068_v29 }
 0x5b9   :  { %v3081_v0 = vshrl.u32 %v8341_v38, %v3069_v62  ;;  %v3084_v23 = vshrl.u32 %v8342_v39, %v3069_v62  ;;  %v3213_v19 = vmul.u32 %v7431_v54, %v3197_v43  ;;  %v3083_v24 = vshll.u32 %v8341_v38, %v3068_v29 }
 0x5ba   :  { %v4452_v13 = vpop.f32.mrb[12].mxu1  ;;  %v3079_v46 = vor.u32 %v3078_v31, %v3077_v16  ;;  %vm3086_vm2 = vcmp.lt.s32.totalorder %v7436_v28, 1  ;;  %vm3215_vm0 = vc.u32 %v7464_v10, %v7467_v60  ;;  %v3216_v3 = vadd.s32 1, %v7468_v33 }
 0x5bb   :  { %v7477_v5 = vpop.f32.mrb[13].mxu1  ;;  %v3082_v50 = vor.u32 %v3081_v0, %v3080_v1  ;;  %vm3087_vm11 = vcmp.lt.s32.totalorder %v7436_v28, 2  ;;  %v3085_v34 = vor.u32 %v3084_v23, %v3083_v24  ;;  %vm3088_vm1 = vcmp.lt.s32.totalorder %v7436_v28, 3 }
 0x5bc   :  { %vm3089_vm4 = vcmp.lt.s32.totalorder %v7436_v28, 4  ;;  %v3094_v53 = vsel %vm3086_vm2, %v3073_v51, %v3076_v12  ;;  %v3217_v54 = vsel %vm3215_vm0, %v3216_v3, %v7468_v33  ;;  %v3098_v17 = vsel %vm3086_vm2, %v3076_v12, %v3079_v46 }
 0x5bd   :  { %v3091_v11 = vsel %vm3089_vm4, %v3079_v46, 2102212464  ;;  %v3095_v29 = vsel %vm3089_vm4, %v3082_v50, 920167782  ;;  %v3218_v22 = vadd.s32 %v3217_v54, %v3213_v19  ;;  %v3090_v42 = vsel %vm3086_vm2, %v3070_v27, %v3073_v51 }
 0x5be   :  { %v3096_v7 = vsel %vm3088_vm1, %v3079_v46, %v3095_v29  ;;  %v3099_v20 = vsel %vm3089_vm4, %v3085_v34, 1326507024  ;;  %v3092_v49 = vsel %vm3088_vm1, %v3076_v12, %v3091_v11  ;;  %v7493_v47 = vadd.f32 %v7445_v26, %v7415_v21 }
 0x5bf   :  { %v3097_v62 = vsel %vm3087_vm11, %v3094_v53, %v3096_v7  ;;  %v3100_v40 = vsel %vm3088_vm1, %v3082_v50, %v3099_v20  ;;  %v3219_v41 = vadd.s32 536870912, %v3218_v22  ;;  %v3093_v26 = vsel %vm3087_vm11, %v3090_v42, %v3092_v49 }
 0x5c0   :  { %v3101_v8 = vsel %vm3087_vm11, %v3098_v17, %v3100_v40  ;;  %v7498_v59 = vmul.u32.u64.low %v7433_v36, %v3097_v62  ;;  %v7499_v4 = vmul.u32.u64.high %v7433_v36, %v3097_v62, %v7498_v59  ;;  %v3366_v32 = vand.u32 2147483647, %v7493_v47 }
 0x5c1   :  { %v7502_v56 = vmul.u32.u64.low %v7433_v36, %v3101_v8  ;;  %v7503_v57 = vmul.u32.u64.high %v7433_v36, %v3101_v8, %v7502_v56  ;;  %v7506_v37 = vshrl.u32 %v3219_v41, 30  ;;  %v3369_v15 = vand.u32 2139095040, %v7493_v47 }
 0x5c2   :  { %v7513_v2 = vadd.f32 %v7415_v21, %v7450_v48  ;;  %v3112_v14 = vadd.s32 1, %v7499_v4  ;;  %v3373_v63 = vand.u32 8388607, %v3366_v32  ;;  %v3109_v18 = vmul.u32 %v7433_v36, %v3093_v26 }
 0x5c3   :  { %v3221_v25 = vshll.u32 %v7506_v37, 30  ;;  %v3370_v43 = vshrl.u32 %v3369_v15, 23  ;;  %vm3111_vm6 = vc.u32 %v7503_v57, %v7498_v59  ;;  %v7523_v30 = vadd.f32 %v4452_v13, %v7415_v21 }
 0x5c4   :  { %v3262_v28 = vand.u32 2147483647, %v7513_v2  ;;  %v3113_v48 = vsel %vm3111_vm6, %v3112_v14, %v7499_v4  ;;  %v3265_v51 = vand.u32 2139095040, %v7513_v2  ;;  %v3374_v36 = vor.u32 8388608, %v3373_v63 }
 0x5c5   :  { %v3222_v35 = vsub.s32 %v3218_v22, %v3221_v25  ;;  %v4139_v33 = vadd.s32 4294967169, %v3370_v43  ;;  %v3114_v16 = vadd.s32 %v3113_v48, %v3109_v18  ;;  %v3574_v19 = vand.u32 2147483647, %v7523_v30 }
 0x5c6   :  { %v7527_v12 = vpop.f32.mrb[14].mxu1  ;;  %v3266_v23 = vshrl.u32 %v3265_v51, 23  ;;  %v7533_v13 = vand.u32 8388607, %v3262_v28  ;;  %v3577_v24 = vand.u32 2139095040, %v7523_v30  ;;  %v3214_v3 = vadd.s32 %v7467_v60, %v7464_v10 }
 0x5c7   :  { %v7529_v31 = vpop.f32.mrb[15].mxu1  ;;  %v3224_v27 = vsub.s32 0, %v3222_v35  ;;  %v3376_v1 = vadd.s32 1, %v4139_v33  ;;  %v3115_v0 = vadd.s32 536870912, %v3114_v16  ;;  %v7543_v53 = vadd.f32 %v7415_v21, %v7477_v5 }
 0x5c8   :  { %v7546_v11 = vadd.s32 %v7498_v59, %v7503_v57  ;;  %v7548_v17 = vshll.u32 %v3374_v36, 8  ;;  %v4135_v42 = vadd.s32 4294967169, %v3266_v23  ;;  %v3270_v7 = vor.u32 8388608, %v7533_v13 }
 0x5c9   :  { %v4132_v46 = vmin.u32 %v3224_v27, %v3222_v35  ;;  %vm3377_vm15 = vcmp.gt.s32.totalorder %v3376_v1, 0  ;;  %v7539_v50 = vshrl.u32 %v3115_v0, 30  ;;  %v7554_v10 = vand.u32 8388607, %v3574_v19 }
 0x5ca   :  { %v3378_v34 = vsel %vm3377_vm15, %v3376_v1, 0  ;;  %v3578_v49 = vshrl.u32 %v3577_v24, 23  ;;  %v3272_v24 = vadd.s32 1, %v4135_v42  ;;  %vm7614_vm10 = vcmp.le.f32.partialorder %v3158_v6, 0.7853982 }
 0x5cb   :  { %v3226_v54 = vclz %v4132_v46  ;;  %v3380_v29 = vand.u32 31, %v3378_v34  ;;  %v3117_v22 = vshll.u32 %v7539_v50, 30  ;;  %v7556_v20 = vshrl.u32 %v3378_v34, 5 }
 0x5cc   :  { %vm3273_vm13 = vcmp.gt.s32.totalorder %v3272_v24, 0 }
 0x5cd   :  { %v4133_v60 = vadd.s32 4294967294, %v3226_v54  ;;  %v3381_v5 = vsub.s32 32, %v3380_v29  ;;  %v7558_v62 = vsub.s32 %v3114_v16, %v3117_v22  ;;  %v3383_v40 = vshll.u32 %v8297_v52, %v3380_v29 }
 0x5ce   :  { %v3386_v41 = vshll.u32 %v8339_v58, %v3380_v29  ;;  %v3389_v8 = vshll.u32 %v8340_v45, %v3380_v29  ;;  %v3392_v56 = vshll.u32 %v8301_v44, %v3380_v29  ;;  %v3395_v18 = vshll.u32 %v8341_v38, %v3380_v29 }
 0x5cf   :  { %vm4134_vm3 = vcmp.lt.s32.totalorder %v4133_v60, 0  ;;  %v3384_v59 = vshrl.u32 %v8339_v58, %v3381_v5  ;;  %v3387_v4 = vshrl.u32 %v8340_v45, %v3381_v5  ;;  %v3120_v26 = vsub.s32 0, %v7558_v62 }
 0x5d0   :  { %v3229_v57 = vsel %vm4134_vm3, 0, %v4133_v60  ;;  %v3390_v15 = vshrl.u32 %v8301_v44, %v3381_v5  ;;  %v3393_v25 = vshrl.u32 %v8341_v38, %v3381_v5  ;;  %v3396_v0 = vshrl.u32 %v8342_v39, %v3381_v5 }
 0x5d1   :  { %v3230_v14 = vsub.s32 32, %v3229_v57  ;;  %v3231_v43 = vshll.u32 %v3222_v35, %v3229_v57  ;;  %v3234_v63 = vsub.s32 4294967266, %v3229_v57  ;;  %v4128_v48 = vmin.u32 %v3120_v26, %v7558_v62 }
 0x5d2   :  { %v3385_v33 = vor.u32 %v3384_v59, %v3383_v40  ;;  %v3388_v51 = vor.u32 %v3387_v4, %v3386_v41  ;;  %v3394_v16 = vor.u32 %v3393_v25, %v3392_v56  ;;  %v3391_v1 = vor.u32 %v3390_v15, %v3389_v8 }
 0x5d3   :  { %v3232_v27 = vshrl.u32 %v3214_v3, %v3230_v14  ;;  %v3235_v36 = vadd.s32 127, %v3234_v63  ;;  %v3122_v23 = vclz %v4128_v48  ;;  %v3382_v46 = vshrl.u32 %v8297_v52, %v3381_v5 }
 0x5d4   :  { %vm3398_vm9 = vcmp.lt.s32.totalorder %v7556_v20, 1  ;;  %v3397_v54 = vor.u32 %v3396_v0, %v3395_v18  ;;  %vm3401_vm12 = vcmp.lt.s32.totalorder %v7556_v20, 4  ;;  %vm3400_vm5 = vcmp.lt.s32.totalorder %v7556_v20, 3 }
 0x5d5   :  { %v3233_v35 = vor.u32 %v3232_v27, %v3231_v43  ;;  %v3236_v34 = vshll.u32 %v3235_v36, 23  ;;  %v4129_v29 = vadd.s32 4294967294, %v3122_v23  ;;  %v3406_v3 = vsel %vm3398_vm9, %v3385_v33, %v3388_v51 }
 0x5d6   :  { %v3407_v22 = vsel %vm3401_vm12, %v3394_v16, 920167782  ;;  %vm3399_vm7 = vcmp.lt.s32.totalorder %v7556_v20, 2  ;;  %v3403_v42 = vsel %vm3401_vm12, %v3391_v1, 2102212464  ;;  %v3402_v40 = vsel %vm3398_vm9, %v3382_v46, %v3385_v33 }
 0x5d7   :  { %v3237_v60 = vor.u32 4788187, %v3236_v34  ;;  %v3408_v5 = vsel %vm3400_vm5, %v3391_v1, %v3407_v22  ;;  %vm4130_vm8 = vcmp.lt.s32.totalorder %v4129_v29, 0  ;;  %v3410_v8 = vsel %vm3398_vm9, %v3388_v51, %v3391_v1 }
 0x5d8   :  { %v3409_v41 = vsel %vm3399_vm7, %v3406_v3, %v3408_v5  ;;  %v3240_v4 = vcvt.s32.f32 %v3233_v35  ;;  %v3125_v56 = vsel %vm4130_vm8, 0, %v4129_v29  ;;  %v3411_v57 = vsel %vm3401_vm12, %v3397_v54, 1326507024 }
 0x5d9   :  { %v3238_v59 = vand.u32 2147483647, %v3237_v60  ;;  %v3126_v26 = vsub.s32 32, %v3125_v56  ;;  %v3130_v15 = vsub.s32 4294967266, %v3125_v56  ;;  %v3404_v25 = vsel %vm3400_vm5, %v3388_v51, %v3403_v42 }
 0x5da   :  { %v3412_v14 = vsel %vm3400_vm5, %v3394_v16, %v3411_v57  ;;  %v7601_v18 = vmul.u32.u64.low %v7548_v17, %v3409_v41  ;;  %v7602_v48 = vmul.u32.u64.high %v7548_v17, %v3409_v41, %v7601_v18  ;;  %v4147_v1 = vadd.s32 4294967169, %v3578_v49 }
 0x5db   :  { %v3241_v43 = vmul.f32 %v3240_v4, %v3238_v59  ;;  %v3413_v63 = vsel %vm3399_vm7, %v3410_v8, %v3412_v14  ;;  %v3131_v33 = vadd.s32 127, %v3130_v15  ;;  %v3405_v51 = vsel %vm3399_vm7, %v3402_v40, %v3404_v25 }
 0x5dc   :  { %v7606_v27 = vmul.u32.u64.low %v7548_v17, %v3413_v63  ;;  %v7607_v36 = vmul.u32.u64.high %v7548_v17, %v3413_v63, %v7606_v27  ;;  %v3582_v16 = vor.u32 8388608, %v7554_v10  ;;  %v3128_v46 = vshrl.u32 %v7546_v11, %v3126_v26 }
 0x5dd   :  { %v3242_v0 = vxor.u32 2147483648, %v3241_v43  ;;  %v3132_v35 = vshll.u32 %v3131_v33, 23  ;;  %v3274_v34 = vsel %vm3273_vm13, %v3272_v24, 0  ;;  %v3424_v54 = vadd.s32 1, %v7602_v48 }
 0x5de   :  { %v3276_v20 = vand.u32 31, %v3274_v34  ;;  %v7624_v29 = vshll.u32 %v3270_v7, 8  ;;  %v3127_v10 = vshll.u32 %v7558_v62, %v3125_v56  ;;  %v3421_v11 = vmul.u32 %v7548_v17, %v3405_v51 }
 0x5df   :  { %v3243_v49 = vsel %vm3160_vm14, %v3242_v0, %v3241_v43  ;;  %v8286_v24 = vand.u32 2147483647, %v7543_v53  ;;  %vm3423_vm2 = vc.u32 %v7607_v36, %v7601_v18  ;;  %v3584_v22 = vadd.s32 1, %v4147_v1 }
 0x5e0   :  { %v7629_v6 = vsel %vm7614_vm10, %v7418_v55, %v3243_v49  ;;  %v3277_v3 = vsub.s32 32, %v3276_v20  ;;  %v7636_v60 = vshll.u32 %v3582_v16, 8  ;;  %v3129_v13 = vor.u32 %v3128_v46, %v3127_v10 }
 0x5e1   :  { %v3133_v7 = vor.u32 4788187, %v3132_v35  ;;  %v3425_v42 = vsel %vm3423_vm2, %v3424_v54, %v7602_v48  ;;  %v3279_v5 = vshll.u32 %v8297_v52, %v3276_v20  ;;  %v3282_v17 = vshll.u32 %v8339_v58, %v3276_v20 }
 0x5e2   :  { %v3426_v40 = vadd.s32 %v3425_v42, %v3421_v11  ;;  %v3280_v62 = vshrl.u32 %v8339_v58, %v3277_v3  ;;  %v3283_v41 = vshrl.u32 %v8340_v45, %v3277_v3  ;;  %v3275_v8 = vshrl.u32 %v3274_v34, 5 }
 0x5e3   :  { %v3285_v59 = vshll.u32 %v8340_v45, %v3276_v20  ;;  %v3286_v4 = vshrl.u32 %v8301_v44, %v3277_v3  ;;  %v3288_v56 = vshll.u32 %v8301_v44, %v3276_v20  ;;  %v3289_v25 = vshrl.u32 %v8341_v38, %v3277_v3 }
 0x5e4   :  { %v3427_v57 = vadd.s32 536870912, %v3426_v40  ;;  %v3281_v26 = vor.u32 %v3280_v62, %v3279_v5  ;;  %v3284_v15 = vor.u32 %v3283_v41, %v3282_v17  ;;  %v3136_v14 = vcvt.s32.f32 %v3129_v13 }
 0x5e5   :  { %v3287_v43 = vor.u32 %v3286_v4, %v3285_v59  ;;  %v3291_v63 = vshll.u32 %v8341_v38, %v3276_v20  ;;  %v3292_v48 = vshrl.u32 %v8342_v39, %v3277_v3  ;;  %v3134_v33 = vand.u32 2147483647, %v3133_v7 }
 0x5e6   :  { %v7649_v27 = vshrl.u32 %v3427_v57, 30  ;;  %v3278_v1 = vshrl.u32 %v8297_v52, %v3277_v3  ;;  %v3290_v0 = vor.u32 %v3289_v25, %v3288_v56  ;;  %vm3294_vm0 = vcmp.lt.s32.totalorder %v3275_v8, 1 }
 0x5e7   :  { %v3293_v51 = vor.u32 %v3292_v48, %v3291_v63  ;;  %vm3296_vm11 = vcmp.lt.s32.totalorder %v3275_v8, 3  ;;  %vm3297_vm1 = vcmp.lt.s32.totalorder %v3275_v8, 4  ;;  %v3302_v34 = vsel %vm3294_vm0, %v3281_v26, %v3284_v15 }
 0x5e8   :  { %v3429_v16 = vshll.u32 %v7649_v27, 30  ;;  %v3298_v46 = vsel %vm3294_vm0, %v3278_v1, %v3281_v26  ;;  %v3299_v35 = vsel %vm3297_vm1, %v3287_v43, 2102212464  ;;  %v3303_v54 = vsel %vm3297_vm1, %v3290_v0, 920167782 }
 0x5e9   :  { %v3300_v49 = vsel %vm3296_vm11, %v3284_v15, %v3299_v35  ;;  %v3306_v20 = vsel %vm3294_vm0, %v3284_v15, %v3287_v43  ;;  %v3307_v10 = vsel %vm3297_vm1, %v3293_v51, 1326507024  ;;  %vm3295_vm4 = vcmp.lt.s32.totalorder %v3275_v8, 2 }
 0x5ea   :  { %v7653_v11 = vsub.s32 %v3426_v40, %v3429_v16  ;;  %v3304_v13 = vsel %vm3296_vm11, %v3287_v43, %v3303_v54  ;;  %v3308_v7 = vsel %vm3296_vm11, %v3290_v0, %v3307_v10  ;;  %v3301_v3 = vsel %vm3295_vm4, %v3298_v46, %v3300_v49 }
 0x5eb   :  { %v3305_v42 = vsel %vm3295_vm4, %v3302_v34, %v3304_v13  ;;  %v3309_v5 = vsel %vm3295_vm4, %v3306_v20, %v3308_v7  ;;  %vm3585_vm6 = vcmp.gt.s32.totalorder %v3584_v22, 0  ;;  %v3422_v4 = vadd.s32 %v7601_v18, %v7607_v36 }
 0x5ec   :  { %v3432_v62 = vsub.s32 0, %v7653_v11  ;;  %v7657_v17 = vmul.u32.u64.low %v7624_v29, %v3309_v5  ;;  %v7658_v41 = vmul.u32.u64.high %v7624_v29, %v3309_v5, %v7657_v17  ;;  %v3586_v59 = vsel %vm3585_vm6, %v3584_v22, 0 }
 0x5ed   :  { %v7663_v40 = vmul.u32.u64.low %v7624_v29, %v3305_v42  ;;  %v7664_v56 = vmul.u32.u64.high %v7624_v29, %v3305_v42, %v7663_v40  ;;  %v3588_v8 = vand.u32 31, %v3586_v59  ;;  %v7667_v57 = vmul.f32 %v3136_v14, %v3134_v33 }
 0x5ee   :  { %v4140_v26 = vmin.u32 %v3432_v62, %v7653_v11  ;;  %v3317_v15 = vmul.u32 %v7624_v29, %v3301_v3  ;;  %v3587_v25 = vshrl.u32 %v3586_v59, 5  ;;  %v3473_v63 = vand.u32 2139095040, %v7543_v53 }
 0x5ef   :  { %v3589_v43 = vsub.s32 32, %v3588_v8  ;;  %v7674_v22 = vand.u32 8388607, %v8286_v24  ;;  %v7678_v18 = vadd.f32 %v7527_v12, %v7415_v21  ;;  %vm3319_vm15 = vc.u32 %v7658_v41, %v7663_v40 }
 0x5f0   :  { %v3434_v36 = vclz %v4140_v26  ;;  %v3591_v14 = vshll.u32 %v8297_v52, %v3588_v8  ;;  %v3594_v29 = vshll.u32 %v8339_v58, %v3588_v8  ;;  %v3320_v48 = vadd.s32 1, %v7664_v56 }
 0x5f1   :  { %v3592_v33 = vshrl.u32 %v8339_v58, %v3589_v43  ;;  %v3595_v1 = vshrl.u32 %v8340_v45, %v3589_v43  ;;  %v3597_v0 = vshll.u32 %v8340_v45, %v3588_v8  ;;  %v3598_v12 = vshrl.u32 %v8301_v44, %v3589_v43 }
 0x5f2   :  { %v4141_v51 = vadd.s32 4294967294, %v3434_v36  ;;  %v3600_v16 = vshll.u32 %v8301_v44, %v3588_v8  ;;  %v3601_v46 = vshrl.u32 %v8341_v38, %v3589_v43  ;;  %v3321_v35 = vsel %vm3319_vm15, %v3320_v48, %v7664_v56 }
 0x5f3   :  { %v3593_v34 = vor.u32 %v3592_v33, %v3591_v14  ;;  %v3603_v49 = vshll.u32 %v8341_v38, %v3588_v8  ;;  %v3604_v54 = vshrl.u32 %v8342_v39, %v3589_v43  ;;  %v3322_v20 = vadd.s32 %v3321_v35, %v3317_v15 }
 0x5f4   :  { %vm4142_vm3 = vcmp.lt.s32.totalorder %v4141_v51, 0  ;;  %v3590_v10 = vshrl.u32 %v8297_v52, %v3589_v43  ;;  %v3599_v13 = vor.u32 %v3598_v12, %v3597_v0  ;;  %v3596_v3 = vor.u32 %v3595_v1, %v3594_v29 }
 0x5f5   :  { %v3437_v7 = vsel %vm4142_vm3, 0, %v4141_v51  ;;  %v3602_v42 = vor.u32 %v3601_v46, %v3600_v16  ;;  %v3605_v5 = vor.u32 %v3604_v54, %v3603_v49  ;;  %v3323_v59 = vadd.s32 536870912, %v3322_v20 }
 0x5f6   :  { %v3438_v62 = vsub.s32 32, %v3437_v7  ;;  %v3442_v17 = vsub.s32 4294967266, %v3437_v7  ;;  %vm3606_vm9 = vcmp.lt.s32.totalorder %v3587_v25, 1  ;;  %v3439_v56 = vshll.u32 %v7653_v11, %v3437_v7 }
 0x5f7   :  { %vm3608_vm12 = vcmp.lt.s32.totalorder %v3587_v25, 3  ;;  %vm3609_vm5 = vcmp.lt.s32.totalorder %v3587_v25, 4  ;;  %v3610_v8 = vsel %vm3606_vm9, %v3590_v10, %v3593_v34  ;;  %v7697_v15 = vshrl.u32 %v3323_v59, 30 }
 0x5f8   :  { %v3440_v26 = vshrl.u32 %v3422_v4, %v3438_v62  ;;  %v3443_v36 = vadd.s32 127, %v3442_v17  ;;  %v3611_v43 = vsel %vm3609_vm5, %v3599_v13, 2102212464  ;;  %v3614_v29 = vsel %vm3606_vm9, %v3593_v34, %v3596_v3 }
 0x5f9   :  { %v3612_v14 = vsel %vm3608_vm12, %v3596_v3, %v3611_v43  ;;  %v3615_v48 = vsel %vm3609_vm5, %v3602_v42, 920167782  ;;  %v3619_v33 = vsel %vm3609_vm5, %v3605_v5, 1326507024  ;;  %v3325_v0 = vshll.u32 %v7697_v15, 30 }
 0x5fa   :  { %v3444_v1 = vshll.u32 %v3443_v36, 23  ;;  %vm3607_vm7 = vcmp.lt.s32.totalorder %v3587_v25, 2  ;;  %v3618_v11 = vsel %vm3606_vm9, %v3596_v3, %v3599_v13  ;;  %v3441_v51 = vor.u32 %v3440_v26, %v3439_v56 }
 0x5fb   :  { %v3616_v12 = vsel %vm3608_vm12, %v3599_v13, %v3615_v48  ;;  %v3620_v4 = vsel %vm3608_vm12, %v3602_v42, %v3619_v33  ;;  %v3474_v16 = vshrl.u32 %v3473_v63, 23  ;;  %v7705_v35 = vsub.s32 %v3322_v20, %v3325_v0 }
 0x5fc   :  { %v3445_v46 = vor.u32 4788187, %v3444_v1  ;;  %v3613_v49 = vsel %vm3607_vm7, %v3610_v8, %v3612_v14  ;;  %v3617_v54 = vsel %vm3607_vm7, %v3614_v29, %v3616_v12  ;;  %v3621_v34 = vsel %vm3607_vm7, %v3618_v11, %v3620_v4 }
 0x5fd   :  { %v7708_v10 = vmul.u32.u64.low %v7636_v60, %v3617_v54  ;;  %v7709_v7 = vmul.u32.u64.high %v7636_v60, %v3617_v54, %v7708_v10  ;;  %v4143_v5 = vadd.s32 4294967169, %v3474_v16  ;;  %v3328_v3 = vsub.s32 0, %v7705_v35 }
 0x5fe   :  { %v3446_v62 = vand.u32 2147483647, %v3445_v46  ;;  %v7714_v13 = vmul.u32.u64.low %v7636_v60, %v3621_v34  ;;  %v7715_v25 = vmul.u32.u64.high %v7636_v60, %v3621_v34, %v7714_v13  ;;  %4906 = vcosq.f32 %v7629_v6 }
 0x5ff   :  { %vm3056_vm8 = vcmp.lt.s32.totalorder %v7421_v9, 0  ;;  %v3480_v63 = vadd.s32 1, %v4143_v5  ;;  %v8285_v20 = vand.u32 2147483647, %v7678_v18  ;;  %v3138_v42 = vxor.u32 2147483648, %v7667_v57 }
 0x600   :  { %v3448_v17 = vcvt.s32.f32 %v3441_v51  ;;  %v4136_v59 = vmin.u32 %v3328_v3, %v7705_v35  ;;  %v3785_v56 = vand.u32 2139095040, %v7678_v18  ;;  %v3629_v8 = vmul.u32 %v7636_v60, %v3613_v49 }
 0x601   :  { %v3632_v26 = vadd.s32 1, %v7709_v7  ;;  %v3478_v36 = vor.u32 8388608, %v7674_v22  ;;  %vm3481_vm13 = vcmp.gt.s32.totalorder %v3480_v63, 0  ;;  %vm3631_vm2 = vc.u32 %v7715_v25, %v7708_v10 }
 0x602   :  { %v7726_v43 = vmul.f32 %v3448_v17, %v3446_v62  ;;  %v3330_v14 = vclz %v4136_v59  ;;  %v7732_v29 = vand.u32 8388607, %v8285_v20  ;;  %4908 = vsinq.f32 %v7629_v6 }
 0x603   :  { %v3633_v48 = vsel %vm3631_vm2, %v3632_v26, %v7709_v7  ;;  %v3482_v60 = vsel %vm3481_vm13, %v3480_v63, 0  ;;  %v3786_v33 = vshrl.u32 %v3785_v56, 23  ;;  %v7739_v22 = vsel %vm3056_vm8, %v3138_v42, %v7667_v57 }
 0x604   :  { %v4137_v1 = vadd.s32 4294967294, %v3330_v14  ;;  %v3634_v0 = vadd.s32 %v3633_v48, %v3629_v8  ;;  %v7741_v11 = vshrl.u32 %v3482_v60, 5  ;;  %v3318_v51 = vadd.s32 %v7663_v40, %v7658_v41 }
 0x605   :  { %v3484_v12 = vand.u32 31, %v3482_v60  ;;  %v7745_v4 = vshll.u32 %v3478_v36, 8  ;;  %v7749_v6 = vadd.f32 %v7415_v21, %v7529_v31  ;;  %v3450_v16 = vxor.u32 2147483648, %v7726_v43 }
 0x606   :  { %vm4138_vm0 = vcmp.lt.s32.totalorder %v4137_v1, 0  ;;  %v3635_v46 = vadd.s32 536870912, %v3634_v0  ;;  %v3790_v57 = vor.u32 8388608, %v7732_v29  ;;  %vm3502_vm11 = vcmp.lt.s32.totalorder %v7741_v11, 1 }
 0x607   :  { %v3333_v49 = vsel %vm4138_vm0, 0, %v4137_v1  ;;  %v3485_v54 = vsub.s32 32, %v3484_v12  ;;  %v4155_v34 = vadd.s32 4294967169, %v3786_v33  ;;  %v3487_v5 = vshll.u32 %v8297_v52, %v3484_v12 }
 0x608   :  { %v3334_v7 = vsub.s32 32, %v3333_v49  ;;  %v3338_v41 = vsub.s32 4294967266, %v3333_v49  ;;  %v7754_v40 = vshrl.u32 %v3635_v46, 30  ;;  %v7757_v62 = vpop.eup %4906  ;;  %v3490_v31 = vshll.u32 %v8339_v58, %v3484_v12 }
 0x609   :  { %v3488_v21 = vshrl.u32 %v8339_v58, %v3485_v54  ;;  %v3491_v3 = vshrl.u32 %v8340_v45, %v3485_v54  ;;  %v3493_v13 = vshll.u32 %v8340_v45, %v3484_v12  ;;  %v3494_v59 = vshrl.u32 %v8301_v44, %v3485_v54 }
 0x60a   :  { %v3336_v63 = vshrl.u32 %v3318_v51, %v3334_v7  ;;  %v3339_v42 = vadd.s32 127, %v3338_v41  ;;  %v3637_v17 = vshll.u32 %v7754_v40, 30  ;;  %v3496_v26 = vshll.u32 %v8301_v44, %v3484_v12 }
 0x60b   :  { %v3489_v56 = vor.u32 %v3488_v21, %v3487_v5  ;;  %v3492_v8 = vor.u32 %v3491_v3, %v3490_v31  ;;  %v3497_v36 = vshrl.u32 %v8341_v38, %v3485_v54  ;;  %v3495_v60 = vor.u32 %v3494_v59, %v3493_v13 }
 0x60c   :  { %v3340_v14 = vshll.u32 %v3339_v42, 23  ;;  %v7767_v48 = vsub.s32 %v3634_v0, %v3637_v17  ;;  %vm3503_vm1 = vcmp.lt.s32.totalorder %v7741_v11, 2  ;;  %v7770_v33 = vpop.eup %4908  ;;  %v3335_v1 = vshll.u32 %v7705_v35, %v3333_v49 }
 0x60d   :  { %v3498_v51 = vor.u32 %v3497_v36, %v3496_v26  ;;  %v3499_v46 = vshll.u32 %v8341_v38, %v3484_v12  ;;  %v3500_v7 = vshrl.u32 %v8342_v39, %v3485_v54  ;;  %v3486_v21 = vshrl.u32 %v8297_v52, %v3485_v54 }
 0x60e   :  { %v3341_v41 = vor.u32 4788187, %v3340_v14  ;;  %v3640_v5 = vsub.s32 0, %v7767_v48  ;;  %vm3505_vm4 = vcmp.lt.s32.totalorder %v7741_v11, 4  ;;  %v3337_v0 = vor.u32 %v3336_v63, %v3335_v1  ;;  %v3886_v1 = vld [vmem:[%s8232_s9] sm:$0xff] }
 0x60f   :  { %v3501_v31 = vor.u32 %v3500_v7, %v3499_v46  ;;  %v3507_v3 = vsel %vm3505_vm4, %v3495_v60, 2102212464  ;;  %v3510_v13 = vsel %vm3502_vm11, %v3489_v56, %v3492_v8  ;;  %vm3504_vm6 = vcmp.lt.s32.totalorder %v7741_v11, 3 }
 0x610   :  { %v4148_v35 = vmin.u32 %v3640_v5, %v7767_v48  ;;  %v3506_v12 = vsel %vm3502_vm11, %v3486_v21, %v3489_v56  ;;  %v3511_v49 = vsel %vm3505_vm4, %v3498_v51, 920167782  ;;  %v3342_v42 = vand.u32 2147483647, %v3341_v41  ;;  %v3889_v41 = vld [vmem:[%s8232_s9 + $0x18] sm:$0xff] }
 0x611   :  { %v3512_v17 = vsel %vm3504_vm6, %v3495_v60, %v3511_v49  ;;  %v3514_v54 = vsel %vm3502_vm11, %v3492_v8, %v3495_v60  ;;  %v3515_v59 = vsel %vm3505_vm4, %v3501_v31, 1326507024  ;;  %v3508_v26 = vsel %vm3504_vm6, %v3492_v8, %v3507_v3  ;;  %v3887_v8 = vld [vmem:[%s8232_s9 + $0x8] sm:$0xff] }
 0x612   :  { %v3642_v63 = vclz %v4148_v35  ;;  %v3513_v36 = vsel %vm3503_vm1, %v3510_v13, %v3512_v17  ;;  %v3516_v14 = vsel %vm3504_vm6, %v3498_v51, %v3515_v59  ;;  %v8284_v60 = vand.u32 2147483647, %v7749_v6  ;;  %v3888_v51 = vld [vmem:[%s8232_s9 + $0x10] sm:$0xff] }
 0x613   :  { %v3517_v56 = vsel %vm3503_vm1, %v3514_v54, %v3516_v14  ;;  %v7794_v46 = vmul.u32.u64.low %v7745_v4, %v3513_v36  ;;  %v7795_v7 = vmul.u32.u64.high %v7745_v4, %v3513_v36, %v7794_v46  ;;  %v3344_v5 = vcvt.s32.f32 %v3337_v0 }
 0x614   :  { %v4149_v21 = vadd.s32 4294967294, %v3642_v63  ;;  %v7809_v31 = vmul.u32.u64.low %v7745_v4, %v3517_v56  ;;  %v7810_v3 = vmul.u32.u64.high %v7745_v4, %v3517_v56, %v7809_v31  ;;  %v3630_v13 = vadd.s32 %v7708_v10, %v7715_v25 }
 0x615   :  { %v3509_v35 = vsel %vm3503_vm1, %v3506_v12, %v3508_v26  ;;  %v3792_v49 = vadd.s32 1, %v4155_v34  ;;  %v3681_v17 = vand.u32 2139095040, %v7749_v6  ;;  %v7817_v54 = vmul.f32 %v3344_v5, %v3342_v42 }
 0x616   :  { %vm4150_vm15 = vcmp.lt.s32.totalorder %v4149_v21, 0  ;;  %v4628_v59 = vpack.c.bf16 %v3887_v8, %v3886_v1  ;;  %v4632_v36 = vpack.c.bf16 %v3889_v41, %v3888_v51  ;;  %v3528_v63 = vadd.s32 1, %v7795_v7 }
 0x617   :  { %v3645_v0 = vsel %vm4150_vm15, 0, %v4149_v21  ;;  %vm3793_vm3 = vcmp.gt.s32.totalorder %v3792_v49, 0  ;;  %v3682_v14 = vshrl.u32 %v3681_v17, 23  ;;  %v7822_v10 = vshll.u32 %v3790_v57, 8 }
 0x618   :  { %v3646_v56 = vsub.s32 32, %v3645_v0  ;;  %v3650_v31 = vsub.s32 4294967266, %v3645_v0  ;;  %v7826_v25 = vand.u32 8388607, %v8284_v60  ;;  %4629 = vmatprep.subr.bf16.mxu0 %v4628_v59  ;;  %4660 = vmatprep.subr.bf16.mxu1 %v4628_v59  ;;  %v3647_v11 = vshll.u32 %v7767_v48, %v3645_v0 }
 0x619   :  { %v3525_v34 = vmul.u32 %v7745_v4, %v3509_v35  ;;  %vm3527_vm9 = vc.u32 %v7810_v3, %v7794_v46  ;;  %v3794_v12 = vsel %vm3793_vm3, %v3792_v49, 0  ;;  %4631 = vmatpush3.bf16.msra.mxu0 %v4628_v59  ;;  %4668 = vmatpush3.bf16.msra.mxu1 %v4628_v59  ;;  %v3346_v1 = vxor.u32 2147483648, %v7817_v54 }
 0x61a   :  { %v3648_v42 = vshrl.u32 %v3630_v13, %v3646_v56  ;;  %v3651_v29 = vadd.s32 127, %v3650_v31  ;;  %v3529_v57 = vsel %vm3527_vm9, %v3528_v63, %v7795_v7  ;;  %v7833_v26 = vshrl.u32 %v3794_v12, 5  ;;  %4633 = vmatprep.subr.bf16.mxu0 %v4632_v36  ;;  %4661 = vmatprep.subr.bf16.mxu1 %v4632_v36 }
 0x61b   :  { %v3530_v8 = vadd.s32 %v3529_v57, %v3525_v34  ;;  %v3796_v48 = vand.u32 31, %v3794_v12  ;;  %v4151_v51 = vadd.s32 4294967169, %v3682_v14  ;;  %v3686_v5 = vor.u32 8388608, %v7826_v25 }
 0x61c   :  { %v3649_v4 = vor.u32 %v3648_v42, %v3647_v11  ;;  %v3652_v41 = vshll.u32 %v3651_v29, 23  ;;  %vm3814_vm12 = vcmp.lt.s32.totalorder %v7833_v26, 1  ;;  %vm3576_vm5 = vcmp.lt.s32.totalorder %v7523_v30, 0 }
 0x61d   :  { %v3531_v21 = vadd.s32 536870912, %v3530_v8  ;;  %v3797_v13 = vsub.s32 32, %v3796_v48  ;;  %v3799_v7 = vshll.u32 %v8297_v52, %v3796_v48  ;;  %v3802_v35 = vshll.u32 %v8339_v58, %v3796_v48  ;;  %4635 = vmatpush3.bf16.msra.mxu0 %v4632_v36  ;;  %4669 = vmatpush3.bf16.msra.mxu1 %v4632_v36 }
 0x61e   :  { %vm3815_vm7 = vcmp.lt.s32.totalorder %v7833_v26, 2  ;;  %vm7844_vm13 = vcmp.le.f32.partialorder %v3574_v19, 0.7853982  ;;  %v3653_v17 = vor.u32 4788187, %v3652_v41  ;;  %v3656_v59 = vcvt.s32.f32 %v3649_v4 }
 0x61f   :  { %v3805_v0 = vshll.u32 %v8340_v45, %v3796_v48  ;;  %v3808_v63 = vshll.u32 %v8301_v44, %v3796_v48  ;;  %v7850_v14 = vshrl.u32 %v3531_v21, 30  ;;  %v3798_v56 = vshrl.u32 %v8297_v52, %v3797_v13 }
 0x620   :  { %v3800_v31 = vshrl.u32 %v8339_v58, %v3797_v13  ;;  %v3803_v36 = vshrl.u32 %v8340_v45, %v3797_v13  ;;  %v3654_v25 = vand.u32 2147483647, %v3653_v17  ;;  %v3806_v19 = vshrl.u32 %v8301_v44, %v3797_v13 }
 0x621   :  { %v3809_v11 = vshrl.u32 %v8341_v38, %v3797_v13  ;;  %v3811_v34 = vshll.u32 %v8341_v38, %v3796_v48  ;;  %v3533_v12 = vshll.u32 %v7850_v14, 30  ;;  %v3812_v57 = vshrl.u32 %v8342_v39, %v3797_v13 }
 0x622   :  { %v3801_v42 = vor.u32 %v3800_v31, %v3799_v7  ;;  %v3804_v29 = vor.u32 %v3803_v36, %v3802_v35  ;;  %v3657_v4 = vmul.f32 %v3656_v59, %v3654_v25  ;;  %v3807_v41 = vor.u32 %v3806_v19, %v3805_v0  ;;  %v3890_v25 = vld [vmem:[%s8232_s9 + $0x20] sm:$0xff] }
 0x623   :  { %v3810_v21 = vor.u32 %v3809_v11, %v3808_v63  ;;  %vm3816_vm2 = vcmp.lt.s32.totalorder %v7833_v26, 3  ;;  %v7861_v60 = vsub.s32 %v3530_v8, %v3533_v12  ;;  %v3813_v17 = vor.u32 %v3812_v57, %v3811_v34  ;;  %v3892_v12 = vld [vmem:[%s8232_s9 + $0x30] sm:$0xff] }
 0x624   :  { %vm3817_vm0 = vcmp.lt.s32.totalorder %v7833_v26, 4  ;;  %v3818_v20 = vsel %vm3814_vm12, %v3798_v56, %v3801_v42  ;;  %v3658_v48 = vxor.u32 2147483648, %v3657_v4  ;;  %v3822_v7 = vsel %vm3814_vm12, %v3801_v42, %v3804_v29  ;;  %v3893_v42 = vld [vmem:[%s8232_s9 + $0x38] sm:$0xff]  ;;  %v3896_v26 = vld [vmem:[%s8232_s9 + $0x50] sm:$0xff] }
 0x625   :  { %v3819_v24 = vsel %vm3817_vm0, %v3807_v41, 2102212464  ;;  %v3823_v35 = vsel %vm3817_vm0, %v3810_v21, 920167782  ;;  %v3536_v13 = vsub.s32 0, %v7861_v60  ;;  %v3826_v0 = vsel %vm3814_vm12, %v3804_v29, %v3807_v41 }
 0x626   :  { %v3820_v59 = vsel %vm3816_vm2, %v3804_v29, %v3819_v24  ;;  %v3824_v8 = vsel %vm3816_vm2, %v3807_v41, %v3823_v35  ;;  %v3659_v63 = vsel %vm3576_vm5, %v3658_v48, %v3657_v4  ;;  %v3827_v31 = vsel %vm3817_vm0, %v3813_v17, 1326507024  ;;  %v3894_v4 = vld [vmem:[%s8232_s9 + $0x40] sm:$0xff] }
 0x627   :  { %v3825_v56 = vsel %vm3815_vm7, %v3822_v7, %v3824_v8  ;;  %v3688_v36 = vadd.s32 1, %v4151_v51  ;;  %v3662_v24 = vsel %vm7844_vm13, %v7523_v30, %v3659_v63  ;;  %v3526_v19 = vadd.s32 %v7794_v46, %v7810_v3  ;;  %v3891_v51 = vld [vmem:[%s8232_s9 + $0x28] sm:$0xff]  ;;  %v3897_v7 = vld [vmem:[%s8232_s9 + $0x58] sm:$0xff] }
 0x628   :  { %v4144_v11 = vmin.u32 %v3536_v13, %v7861_v60  ;;  %v3828_v34 = vsel %vm3816_vm2, %v3810_v21, %v3827_v31  ;;  %v3821_v46 = vsel %vm3815_vm7, %v3818_v20, %v3820_v59  ;;  %v7915_v48 = vshll.u32 %v3686_v5, 8  ;;  %v3895_v20 = vld [vmem:[%s8232_s9 + $0x48] sm:$0xff]  ;;  %v3898_v5 = vld [vmem:[%s8232_s9 + $0x60] sm:$0xff] }
 0x629   :  { %v3829_v3 = vsel %vm3815_vm7, %v3826_v0, %v3828_v34  ;;  %v7904_v29 = vmul.u32.u64.low %v7822_v10, %v3825_v56  ;;  %v7905_v57 = vmul.u32.u64.high %v7822_v10, %v3825_v56, %v7904_v29  ;;  %4910 = vcosq.f32 %v3662_v24  ;;  %v3899_v59 = vld [vmem:[%s8232_s9 + $0x68] sm:$0xff] }
 0x62a   :  { %v3538_v41 = vclz %v4144_v11  ;;  %v7912_v21 = vmul.u32.u64.low %v7822_v10, %v3829_v3  ;;  %v7913_v17 = vmul.u32.u64.high %v7822_v10, %v3829_v3, %v7912_v21  ;;  %vm3689_vm11 = vcmp.gt.s32.totalorder %v3688_v36, 0 }
 0x62b   :  { %v4636_v35 = vpack.c.bf16 %v3891_v51, %v3890_v25  ;;  %v4640_v13 = vpack.c.bf16 %v3893_v42, %v3892_v12  ;;  %4912 = vsinq.f32 %v3662_v24  ;;  %v3837_v0 = vmul.u32 %v7822_v10, %v3821_v46 }
 0x62c   :  { %v4145_v8 = vadd.s32 4294967294, %v3538_v41  ;;  %v3690_v63 = vsel %vm3689_vm11, %v3688_v36, 0  ;;  %v3840_v56 = vadd.s32 1, %v7905_v57  ;;  %v4644_v25 = vpack.c.bf16 %v3895_v20, %v3894_v4 }
 0x62d   :  { %v3692_v31 = vand.u32 31, %v3690_v63  ;;  %4637 = vmatprep.subr.bf16.mxu0 %v4636_v35  ;;  %4662 = vmatprep.subr.bf16.mxu1 %v4636_v35  ;;  %v7934_v11 = vpack.c.bf16 %v3897_v7, %v3896_v26  ;;  %vm3839_vm4 = vc.u32 %v7913_v17, %v7904_v29  ;;  %v7938_v34 = vshrl.u32 %v3690_v63, 5 }
 0x62e   :  { %vm4146_vm1 = vcmp.lt.s32.totalorder %v4145_v8, 0  ;;  %4639 = vmatpush3.bf16.msra.mxu0 %v4636_v35  ;;  %4670 = vmatpush3.bf16.msra.mxu1 %v4636_v35  ;;  %v7940_v24 = vpack.c.bf16 %v3899_v59, %v3898_v5  ;;  %v3841_v36 = vsel %vm3839_vm4, %v3840_v56, %v7905_v57  ;;  %v3140_v12 = vsub.s32 4, %v7539_v50 }
 0x62f   :  { %v3541_v10 = vsel %vm4146_vm1, 0, %v4145_v8  ;;  %v3693_v51 = vsub.s32 32, %v3692_v31  ;;  %4641 = vmatprep.subr.bf16.mxu0 %v4640_v13  ;;  %4663 = vmatprep.subr.bf16.mxu1 %v4640_v13  ;;  %v3842_v3 = vadd.s32 %v3841_v36, %v3837_v0  ;;  %v3695_v4 = vshll.u32 %v8297_v52, %v3692_v31 }
 0x630   :  { %v3542_v42 = vsub.s32 32, %v3541_v10  ;;  %v3546_v46 = vsub.s32 4294967266, %v3541_v10  ;;  %v3543_v41 = vshll.u32 %v7861_v60, %v3541_v10  ;;  %v3698_v5 = vshll.u32 %v8339_v58, %v3692_v31 }
 0x631   :  { %v3694_v21 = vshrl.u32 %v8297_v52, %v3693_v51  ;;  %v3696_v20 = vshrl.u32 %v8339_v58, %v3693_v51  ;;  %v3699_v26 = vshrl.u32 %v8340_v45, %v3693_v51  ;;  %v3843_v35 = vadd.s32 536870912, %v3842_v3 }
 0x632   :  { %v3544_v7 = vshrl.u32 %v3526_v19, %v3542_v42  ;;  %v3547_v57 = vadd.s32 127, %v3546_v46  ;;  %4643 = vmatpush3.bf16.msra.mxu0 %v4640_v13  ;;  %4671 = vmatpush3.bf16.msra.mxu1 %v4640_v13  ;;  %v3701_v8 = vshll.u32 %v8340_v45, %v3692_v31  ;;  %v3702_v0 = vshrl.u32 %v8301_v44, %v3693_v51 }
 0x633   :  { %v3697_v59 = vor.u32 %v3696_v20, %v3695_v4  ;;  %v3704_v60 = vshll.u32 %v8301_v44, %v3692_v31  ;;  %4645 = vmatprep.subr.bf16.mxu0 %v4644_v25  ;;  %vm7955_vm6 = vcmp.le.f32.partialorder %v3054_v61, 0.7853982  ;;  %v7959_v56 = vshrl.u32 %v3843_v35, 30  ;;  %4664 = vmatprep.subr.bf16.mxu1 %v4644_v25  ;;  %v7962_v13 = vpop.eup %4910 }
 0x634   :  { %v3545_v19 = vor.u32 %v3544_v7, %v3543_v41  ;;  %v3548_v63 = vshll.u32 %v3547_v57, 23  ;;  %v3705_v58 = vshrl.u32 %v8341_v38, %v3693_v51  ;;  %v3700_v45 = vor.u32 %v3699_v26, %v3698_v5 }
 0x635   :  { %v3703_v10 = vor.u32 %v3702_v0, %v3701_v8  ;;  %v3707_v44 = vshll.u32 %v8341_v38, %v3692_v31  ;;  %v3708_v36 = vshrl.u32 %v8342_v39, %v3693_v51  ;;  %v7966_v42 = vpop.eup %4912  ;;  %vm3368_vm15 = vcmp.lt.s32.totalorder %v7493_v47, 0  ;;  %v3900_v38 = vld [vmem:[%s8232_s9 + $0x70] sm:$0xff]  ;;  %v3901_v51 = vld [vmem:[%s8232_s9 + $0x78] sm:$0xff] }
 0x636   :  { %vm3264_vm3 = vcmp.lt.s32.totalorder %v7513_v2, 0  ;;  %v3549_v61 = vor.u32 4788187, %v3548_v63  ;;  %v3845_v46 = vshll.u32 %v7959_v56, 30  ;;  %v3706_v4 = vor.u32 %v3705_v58, %v3704_v60  ;;  %4647 = vmatpush3.bf16.msra.mxu0 %v4644_v25  ;;  %4672 = vmatpush3.bf16.msra.mxu1 %v4644_v25 }
 0x637   :  { %vm3710_vm9 = vcmp.lt.s32.totalorder %v7938_v34, 1  ;;  %v3552_v41 = vcvt.s32.f32 %v3545_v19  ;;  %v3709_v20 = vor.u32 %v3708_v36, %v3707_v44  ;;  %vm3711_vm12 = vcmp.lt.s32.totalorder %v7938_v34, 2  ;;  %4649 = vmatprep.subr.bf16.mxu0 %v7934_v11  ;;  %4665 = vmatprep.subr.bf16.mxu1 %v7934_v11 }
 0x638   :  { %vm3713_vm7 = vcmp.lt.s32.totalorder %v7938_v34, 4  ;;  %v3550_v39 = vand.u32 2147483647, %v3549_v61  ;;  %v7979_v31 = vsub.s32 %v3842_v3, %v3845_v46  ;;  %vm3712_vm2 = vcmp.lt.s32.totalorder %v7938_v34, 3 }
 0x639   :  { %v3715_v25 = vsel %vm3713_vm7, %v3703_v10, 2102212464  ;;  %vm3472_vm0 = vcmp.lt.s32.totalorder %v7543_v53, 0  ;;  %v3714_v26 = vsel %vm3710_vm9, %v3694_v21, %v3697_v59  ;;  %v3718_v3 = vsel %vm3710_vm9, %v3697_v59, %v3700_v45 }
 0x63a   :  { %v3716_v7 = vsel %vm3712_vm2, %v3700_v45, %v3715_v25  ;;  %v3719_v57 = vsel %vm3713_vm7, %v3706_v4, 920167782  ;;  %v3553_v35 = vmul.f32 %v3552_v41, %v3550_v39  ;;  %v3848_v5 = vsub.s32 0, %v7979_v31  ;;  %4651 = vmatpush3.bf16.msra.mxu0 %v7934_v11  ;;  %4673 = vmatpush3.bf16.msra.mxu1 %v7934_v11 }
 0x63b   :  { %v3720_v8 = vsel %vm3712_vm2, %v3703_v10, %v3719_v57  ;;  %v3722_v0 = vsel %vm3710_vm9, %v3700_v45, %v3703_v10  ;;  %v3723_v59 = vsel %vm3713_vm7, %v3709_v20, 1326507024  ;;  %4653 = vmatprep.subr.bf16.mxu0 %v7940_v24  ;;  %v4656_v60 = vpack.c.bf16 %v3901_v51, %v3900_v38  ;;  %4666 = vmatprep.subr.bf16.mxu1 %v7940_v24 }
 0x63c   :  { %v3721_v21 = vsel %vm3711_vm12, %v3718_v3, %v3720_v8  ;;  %v3141_v19 = vsel %vm3056_vm8, %v3140_v12, %v7539_v50  ;;  %v4156_v63 = vmin.u32 %v3848_v5, %v7979_v31  ;;  %v3717_v11 = vsel %vm3711_vm12, %v3714_v26, %v3716_v7 }
 0x63d   :  { %v3724_v58 = vsel %vm3712_vm2, %v3706_v4, %v3723_v59  ;;  %v3142_v45 = vsel %vm7955_vm6, %v7421_v9, %v7739_v22  ;;  %v8026_v50 = vmul.u32.u64.low %v7915_v48, %v3721_v21  ;;  %v8027_v12 = vmul.u32.u64.high %v7915_v48, %v3721_v21, %v8026_v50 }
 0x63e   :  { %v3725_v10 = vsel %vm3711_vm12, %v3722_v0, %v3724_v58  ;;  %v3143_v44 = vsel %vm7955_vm6, 0, %v3141_v19  ;;  %v3554_v36 = vxor.u32 2147483648, %v3553_v35  ;;  %v3850_v61 = vclz %v4156_v63  ;;  %4655 = vmatpush3.bf16.msra.mxu0 %v7940_v24  ;;  %4674 = vmatpush3.bf16.msra.mxu1 %v7940_v24 }
 0x63f   :  { %v8033_v46 = vmul.u32.u64.low %v7915_v48, %v3725_v10  ;;  %v8034_v4 = vmul.u32.u64.high %v7915_v48, %v3725_v10, %v8033_v46  ;;  %v8043_v22 = vsel %vm3368_vm15, %v3450_v16, %v7726_v43  ;;  %v3347_v34 = vsel %vm3264_vm3, %v3346_v1, %v7817_v54  ;;  %4657 = vmatprep.subr.bf16.mxu0 %v4656_v60  ;;  %4667 = vmatprep.subr.bf16.mxu1 %v4656_v60 }
 0x640   :  { %4914 = vcosq.f32 %v3142_v45  ;;  %v3244_v52 = vsub.s32 4, %v7506_v37  ;;  %v3838_v24 = vadd.s32 %v7904_v29, %v7913_v17  ;;  %v4157_v41 = vadd.s32 4294967294, %v3850_v61 }
 0x641   :  { %4916 = vsinq.f32 %v3142_v45  ;;  %v3147_v20 = vadd.s32 3, %v3143_v44  ;;  %v3733_v43 = vmul.u32 %v7915_v48, %v3717_v11  ;;  %v3736_v16 = vadd.s32 1, %v8027_v12 }
 0x642   :  { %v3245_v38 = vsel %vm3160_vm14, %v3244_v52, %v7506_v37  ;;  %v3348_v54 = vsub.s32 4, %v7697_v15  ;;  %v8061_v1 = vsel %vm3472_vm0, %v3554_v36, %v3553_v35  ;;  %vm4158_vm8 = vcmp.lt.s32.totalorder %v4157_v41, 0  ;;  %4659 = vmatpush3.bf16.msra.mxu0 %v4656_v60  ;;  %4675 = vmatpush3.bf16.msra.mxu1 %v4656_v60 }
 0x643   :  { %vm3735_vm11 = vc.u32 %v8034_v4, %v8026_v50  ;;  %v3247_v29 = vsel %vm7614_vm10, 0, %v3245_v38  ;;  %v3853_v17 = vsel %vm4158_vm8, 0, %v4157_v41  ;;  %v3255_v37 = vxor.u32 2147483648, %v7770_v33 }
 0x644   :  { %v3737_v48 = vsel %vm3735_vm11, %v3736_v16, %v8027_v12  ;;  %vm8071_vm14 = vcmp.le.f32.partialorder %v3262_v28, 0.7853982  ;;  %v3854_v25 = vsub.s32 32, %v3853_v17  ;;  %v3858_v51 = vsub.s32 4294967266, %v3853_v17 }
 0x645   :  { %v3738_v26 = vadd.s32 %v3737_v48, %v3733_v43  ;;  %v3148_v7 = vand.u32 3, %v3147_v20  ;;  %vm3250_vm1 = vweird.f32 %v7418_v55  ;;  %v3251_v23 = vadd.s32 3, %v3247_v29 }
 0x646   :  { %v3258_v3 = vxor.u32 2147483648, %v7757_v62  ;;  %v3349_v57 = vsel %vm3264_vm3, %v3348_v54, %v7697_v15  ;;  %v3350_v28 = vsel %vm8071_vm14, %v7513_v2, %v3347_v34  ;;  %v3856_v35 = vshrl.u32 %v3838_v24, %v3854_v25 }
 0x647   :  { %v3859_v5 = vadd.s32 127, %v3858_v51  ;;  %v3739_v8 = vadd.s32 536870912, %v3738_v26  ;;  %vm3146_vm10 = vweird.f32 %v7421_v9  ;;  %v3351_v0 = vsel %vm8071_vm14, 0, %v3349_v57 }
 0x648   :  { %v3855_v21 = vshll.u32 %v7979_v31, %v3853_v17  ;;  %v3252_v59 = vand.u32 3, %v3251_v23  ;;  %4918 = vcosq.f32 %v3350_v28  ;;  %v3355_v60 = vadd.s32 3, %v3351_v0 }
 0x649   :  { %v3860_v19 = vshll.u32 %v3859_v5, 23  ;;  %v8087_v63 = vshrl.u32 %v3739_v8, 30  ;;  %vm3150_vm4 = vcmp.eq.s32.totalorder %v3148_v7, 0  ;;  %4920 = vsinq.f32 %v3350_v28 }
 0x64a   :  { %v4915_v15 = vpop.eup %4914  ;;  %v3857_v11 = vor.u32 %v3856_v35, %v3855_v21  ;;  %vm3153_vm6 = vcmp.eq.s32.totalorder %v3148_v7, 2  ;;  %vm3254_vm3 = vcmp.eq.s32.totalorder %v3252_v59, 0  ;;  %vm3257_vm9 = vcmp.eq.s32.totalorder %v3252_v59, 2 }
 0x64b   :  { %v4917_v58 = vpop.eup %4916  ;;  %v3861_v45 = vor.u32 4788187, %v3860_v19  ;;  %v3741_v10 = vshll.u32 %v8087_v63, 30  ;;  %v3154_v12 = vxor.u32 2147483648, %v4915_v15  ;;  %v3356_v44 = vand.u32 3, %v3355_v60 }
 0x64c   :  { %v3151_v31 = vxor.u32 2147483648, %v4917_v58  ;;  %vm3253_vm12 = vcmp.lt.s32.totalorder %v3252_v59, 2  ;;  %v3256_v36 = vsel %vm3254_vm3, %v7757_v62, %v3255_v37  ;;  %v3259_v61 = vsel %vm3257_vm9, %v3258_v3, %v7770_v33 }
 0x64d   :  { %v3862_v46 = vand.u32 2147483647, %v3861_v45  ;;  %v8092_v34 = vsub.s32 %v3738_v26, %v3741_v10  ;;  %v3155_v52 = vsel %vm3153_vm6, %v3154_v12, %v4917_v58  ;;  %v3260_v24 = vsel %vm3253_vm12, %v3256_v36, %v3259_v61 }
 0x64e   :  { %v3864_v41 = vcvt.s32.f32 %v3857_v11  ;;  %vm3149_vm7 = vcmp.lt.s32.totalorder %v3148_v7, 2  ;;  %v3152_v20 = vsel %vm3150_vm4, %v4915_v15, %v3151_v31  ;;  %v3261_v43 = vsel %vm3250_vm1, nan, %v3260_v24 }
 0x64f   :  { %v3744_v16 = vsub.s32 0, %v8092_v34  ;;  %v3156_v38 = vsel %vm3149_vm7, %v3152_v20, %v3155_v52  ;;  %vm3357_vm2 = vcmp.lt.s32.totalorder %v3356_v44, 2  ;;  %vm8100_vm8 = vcmp.le.f32.partialorder %v3366_v32, 0.7853982 }
 0x650   :  { %v3157_v33 = vsel %vm3146_vm10, nan, %v3156_v38  ;;  %vm3358_vm11 = vcmp.eq.s32.totalorder %v3356_v44, 0  ;;  %v3452_v54 = vsub.s32 4, %v7649_v27  ;;  %v3454_v55 = vsel %vm8100_vm8, %v7493_v47, %v8043_v22 }
 0x651   :  { %v3865_v29 = vmul.f32 %v3864_v41, %v3862_v46  ;;  %v4152_v17 = vmin.u32 %v3744_v16, %v8092_v34  ;;  %4488 = vmatprep.mubr.f32.mxu0 %v3157_v33  ;;  %4922 = vcosq.f32 %v3454_v55  ;;  %v8392_v32 = vand.u32 2147483647, %v7543_v53 }
 0x652   :  { %v4919_v9 = vpop.eup %4918  ;;  %4489 = vmatmul.mubr.f32.vlgmr.msra.gmra.mrb[16].mxu0 %v3261_v43  ;;  %v3453_v37 = vsel %vm3368_vm15, %v3452_v54, %v7649_v27  ;;  %4924 = vsinq.f32 %v3454_v55  ;;  %v3556_v22 = vsub.s32 4, %v7850_v14  ;;  %vm3361_vm1 = vcmp.eq.s32.totalorder %v3356_v44, 2 }
 0x653   :  { %vm8114_vm14 = vcmp.le.f32.partialorder %v8392_v32, 0.7853982  ;;  %v4921_v25 = vpop.eup %4920  ;;  %v3746_v51 = vclz %v4152_v17  ;;  %v3362_v26 = vxor.u32 2147483648, %v4919_v9  ;;  %v3455_v7 = vsel %vm8100_vm8, 0, %v3453_v37 }
 0x654   :  { %v3558_v39 = vsel %vm8114_vm14, %v7543_v53, %v8061_v1  ;;  %v3359_v23 = vxor.u32 2147483648, %v4921_v25  ;;  %v3459_v3 = vadd.s32 3, %v3455_v7  ;;  %v3557_v27 = vsel %vm3472_vm0, %v3556_v22, %v7850_v14 }
 0x655   :  { %4926 = vcosq.f32 %v3558_v39  ;;  %v4153_v57 = vadd.s32 4294967294, %v3746_v51  ;;  %v3363_v28 = vsel %vm3361_vm1, %v3362_v26, %v4921_v25  ;;  %v3559_v35 = vsel %vm8114_vm14, 0, %v3557_v27 }
 0x656   :  { %4928 = vsinq.f32 %v3558_v39  ;;  %v3866_v1 = vxor.u32 2147483648, %v3865_v29  ;;  %v3360_v5 = vsel %vm3358_vm11, %v4919_v9, %v3359_v23  ;;  %v3460_v8 = vand.u32 3, %v3459_v3 }
 0x657   :  { %v3563_v0 = vadd.s32 3, %v3559_v35  ;;  %vm4154_vm15 = vcmp.lt.s32.totalorder %v4153_v57, 0  ;;  %vm3354_vm10 = vweird.f32 %v7513_v2  ;;  %v3364_v21 = vsel %vm3357_vm2, %v3360_v5, %v3363_v28 }
 0x658   :  { %v3660_v59 = vsub.s32 4, %v7754_v40  ;;  %vm3784_vm0 = vcmp.lt.s32.totalorder %v7678_v18, 0  ;;  %v3749_v14 = vsel %vm4154_vm15, 0, %v4153_v57  ;;  %v3365_v60 = vsel %vm3354_vm10, nan, %v3364_v21 }
 0x659   :  { %v3734_v19 = vadd.s32 %v8026_v50, %v8034_v4  ;;  %v3750_v15 = vsub.s32 32, %v3749_v14  ;;  %v3754_v11 = vsub.s32 4294967266, %v3749_v14  ;;  %4491 = vmatprep.mubr.f32.mxu0 %v3365_v60  ;;  %vm3458_vm4 = vweird.f32 %v7493_v47 }
 0x65a   :  { %v3867_v58 = vsel %vm3784_vm0, %v3866_v1, %v3865_v29  ;;  %vm3461_vm6 = vcmp.lt.s32.totalorder %v3460_v8, 2  ;;  %v3564_v2 = vand.u32 3, %v3563_v0  ;;  %v3661_v45 = vsel %vm3576_vm5, %v3660_v59, %v7754_v40 }
 0x65b   :  { %v4923_v10 = vpop.eup %4922  ;;  %v3751_v12 = vshll.u32 %v8092_v34, %v3749_v14  ;;  %v3752_v44 = vshrl.u32 %v3734_v19, %v3750_v15  ;;  %v3755_v31 = vadd.s32 127, %v3754_v11  ;;  %vm3562_vm3 = vweird.f32 %v7543_v53 }
 0x65c   :  { %v3663_v50 = vsel %vm7844_vm13, 0, %v3661_v45  ;;  %v4925_v4 = vpop.eup %4924  ;;  %vm3462_vm9 = vcmp.eq.s32.totalorder %v3460_v8, 0  ;;  %vm3465_vm12 = vcmp.eq.s32.totalorder %v3460_v8, 2  ;;  %v3466_v36 = vxor.u32 2147483648, %v4923_v10 }
 0x65d   :  { %vm3666_vm7 = vweird.f32 %v7523_v30  ;;  %v3671_v61 = vxor.u32 2147483648, %v7966_v42  ;;  %v3753_v46 = vor.u32 %v3752_v44, %v3751_v12  ;;  %v3756_v40 = vshll.u32 %v3755_v31, 23 }
 0x65e   :  { %v3463_v52 = vxor.u32 2147483648, %v4925_v4  ;;  %v3667_v24 = vadd.s32 3, %v3663_v50  ;;  %v3467_v41 = vsel %vm3465_vm12, %v3466_v36, %v4925_v4  ;;  %vm3565_vm5 = vcmp.lt.s32.totalorder %v3564_v2, 2  ;;  %v4159_v4 = vld [vmem:[%s8233_s10] ss:$0 sm:$0xff] }
 0x65f   :  { %v4927_v34 = vpop.eup %4926  ;;  %vm3566_vm2 = vcmp.eq.s32.totalorder %v3564_v2, 0  ;;  %v3674_v20 = vxor.u32 2147483648, %v7962_v13  ;;  %v3757_v43 = vor.u32 4788187, %v3756_v40  ;;  %vm3569_vm13 = vcmp.eq.s32.totalorder %v3564_v2, 2 }
 0x660   :  { %v4929_v49 = vpop.eup %4928  ;;  %v3464_v16 = vsel %vm3462_vm9, %v4923_v10, %v3463_v52  ;;  %v3570_v38 = vxor.u32 2147483648, %v4927_v34  ;;  %v3668_v54 = vand.u32 3, %v3667_v24  ;;  %v3764_v55 = vsub.s32 4, %v8087_v63 }
 0x661   :  { %v3468_v62 = vsel %vm3461_vm6, %v3464_v16, %v3467_v41  ;;  %v3567_v33 = vxor.u32 2147483648, %v4929_v49  ;;  %v3758_v29 = vand.u32 2147483647, %v3757_v43  ;;  %v3760_v17 = vcvt.s32.f32 %v3753_v46 }
 0x662   :  { %v3469_v32 = vsel %vm3458_vm4, nan, %v3468_v62  ;;  %v3571_v48 = vsel %vm3569_vm13, %v3570_v38, %v4929_v49  ;;  %vm3669_vm8 = vcmp.lt.s32.totalorder %v3668_v54, 2  ;;  %vm3670_vm11 = vcmp.eq.s32.totalorder %v3668_v54, 0 }
 0x663   :  { %4492 = vmatmul.mubr.f32.gmra.mrb[18].mxu0 %v3469_v32  ;;  %v3568_v9 = vsel %vm3566_vm2, %v4927_v34, %v3567_v33  ;;  %vm3673_vm14 = vcmp.eq.s32.totalorder %v3668_v54, 2  ;;  %v3761_v37 = vmul.f32 %v3760_v17, %v3758_v29  ;;  %v3672_v39 = vsel %vm3670_vm11, %v7962_v13, %v3671_v61 }
 0x664   :  { %v3572_v22 = vsel %vm3565_vm5, %v3568_v9, %v3571_v48  ;;  %v3675_v25 = vsel %vm3673_vm14, %v3674_v20, %v7966_v42  ;;  %v8395_v47 = vand.u32 2147483647, %v7678_v18  ;;  %v3868_v23 = vsub.s32 4, %v7959_v56 }
 0x665   :  { %v3573_v51 = vsel %vm3562_vm3, nan, %v3572_v22  ;;  %v3676_v26 = vsel %vm3669_vm8, %v3672_v39, %v3675_v25  ;;  %v3762_v3 = vxor.u32 2147483648, %v3761_v37  ;;  %vm3680_vm15 = vcmp.lt.s32.totalorder %v7749_v6, 0 }
 0x666   :  { %vm8166_vm1 = vcmp.le.f32.partialorder %v8395_v47, 0.7853982  ;;  %4494 = vmatprep.mubr.f32.mxu1 %v3573_v51  ;;  %v3677_v27 = vsel %vm3666_vm7, nan, %v3676_v26  ;;  %v3869_v53 = vsel %vm3784_vm0, %v3868_v23, %v7959_v56  ;;  %v8398_v57 = vand.u32 2147483647, %v7749_v6 }
 0x667   :  { %v3870_v13 = vsel %vm8166_vm1, %v7678_v18, %v3867_v58  ;;  %4495 = vmatmul.mubr.f32.vlgmr.msra.gmra.mrb[16].mxu1 %v3677_v27  ;;  %v3763_v42 = vsel %vm3680_vm15, %v3762_v3, %v3761_v37  ;;  %v3765_v28 = vsel %vm3680_vm15, %v3764_v55, %v8087_v63  ;;  %v3871_v35 = vsel %vm8166_vm1, 0, %v3869_v53 }
 0x668   :  { %4930 = vcosq.f32 %v3870_v13  ;;  %vm3679_vm10 = vcmp.le.f32.partialorder %v8398_v57, 0.7853982  ;;  %v3875_v5 = vadd.s32 3, %v3871_v35  ;;  %vm3770_vm7 = vweird.f32 %v7749_v6 }
 0x669   :  { %4932 = vsinq.f32 %v3870_v13  ;;  %v3766_v30 = vsel %vm3679_vm10, %v7749_v6, %v3763_v42  ;;  %v3767_v1 = vsel %vm3679_vm10, 0, %v3765_v28  ;;  %vm3874_vm5 = vweird.f32 %v7678_v18 }
 0x66a   :  { %4934 = vcosq.f32 %v3766_v30  ;;  %v3771_v8 = vadd.s32 3, %v3767_v1  ;;  %v3876_v0 = vand.u32 3, %v3875_v5  ;;  %vm4014_vm2 = vcmask 31744  }
 0x66b   :  { %4936 = vsinq.f32 %v3766_v30 }
 0x66c   :  { %v3772_v59 = vand.u32 3, %v3771_v8  ;;  %vm3878_vm0 = vcmp.eq.s32.totalorder %v3876_v0, 0  ;;  %vm3881_vm4 = vcmp.eq.s32.totalorder %v3876_v0, 2  ;;  %vm3877_vm9 = vcmp.lt.s32.totalorder %v3876_v0, 2 }
 0x66e   :  { %vm3777_vm6 = vcmp.eq.s32.totalorder %v3772_v59, 2  ;;  %vm3774_vm3 = vcmp.eq.s32.totalorder %v3772_v59, 0  ;;  %vm3773_vm12 = vcmp.lt.s32.totalorder %v3772_v59, 2 }
 0x672   :  { %v4931_v56 = vpop.eup %4930 }
 0x673   :  { %v4933_v21 = vpop.eup %4932  ;;  %v3882_v14 = vxor.u32 2147483648, %v4931_v56 }
 0x674   :  { %v3879_v60 = vxor.u32 2147483648, %v4933_v21  ;;  %v4935_v19 = vpop.eup %4934 }
 0x675   :  { %v4937_v63 = vpop.eup %4936  ;;  %v3778_v15 = vxor.u32 2147483648, %v4935_v19  ;;  %v3883_v58 = vsel %vm3881_vm4, %v3882_v14, %v4933_v21 }
 0x676   :  { %v3880_v11 = vsel %vm3878_vm0, %v4931_v56, %v3879_v60  ;;  %v3775_v2 = vxor.u32 2147483648, %v4937_v63 }
 0x677   :  { %v3779_v45 = vsel %vm3777_vm6, %v3778_v15, %v4937_v63  ;;  %v3884_v12 = vsel %vm3877_vm9, %v3880_v11, %v3883_v58 }
 0x678   :  { %v3776_v10 = vsel %vm3774_vm3, %v4935_v19, %v3775_v2  ;;  %v3885_v50 = vsel %vm3874_vm5, nan, %v3884_v12 }
 0x679   :  { %v3780_v44 = vsel %vm3773_vm12, %v3776_v10, %v3779_v45 }
 0x67a   :  { %v3781_v31 = vsel %vm3770_vm7, nan, %v3780_v44 }
 0x67b   :  { %4497 = vmatprep.mubr.f32.mxu1 %v3781_v31 }
 0x67c   :  { %4498 = vmatmul.mubr.f32.gmra.mrb[18].mxu1 %v3885_v50 }
 0x725   :  { %v4490_v36 = vpop.f32.mrb[16].mxu0 }
 0x726   :  { %v3981_v61 = vadd.f32 %v4490_v36, %v4159_v4  ;;  %v3975_v46 = vpop.f32.mrb[17].mxu0 }
 0x727   :  { %v3976_v40 = vadd.f32 %v4159_v4, %v3975_v46 }
 0x728   :  { %4016 = vst.msk [vmem:[%s8234_s11 + $0x8] sm:$0xff] %vm4014_vm2, %v3981_v61 }
 0x729   :  { %4015 = vst.msk [vmem:[%s8234_s11] sm:$0xff] %vm4014_vm2, %v3976_v40 }
 0x736   :  { %v4493_v18 = vpop.f32.mrb[18].mxu0 }
 0x737   :  { %v3991_v6 = vadd.f32 %v4493_v18, %v4159_v4  ;;  %v3985_v52 = vpop.f32.mrb[19].mxu0 }
 0x738   :  { %v3986_v24 = vadd.f32 %v4159_v4, %v3985_v52 }
 0x739   :  { %4018 = vst.msk [vmem:[%s8234_s11 + $0x18] sm:$0xff] %vm4014_vm2, %v3991_v6 }
 0x73a   :  { %4017 = vst.msk [vmem:[%s8234_s11 + $0x10] sm:$0xff] %vm4014_vm2, %v3986_v24  ;;  %v4496_v34 = vpop.f32.mrb[16].mxu1 }
 0x73b   :  { %v4001_v41 = vadd.f32 %v4496_v34, %v4159_v4  ;;  %v3995_v20 = vpop.f32.mrb[17].mxu1 }
 0x73c   :  { %v3996_v49 = vadd.f32 %v4159_v4, %v3995_v20 }
 0x73d   :  { %4020 = vst.msk [vmem:[%s8234_s11 + $0x28] sm:$0xff] %vm4014_vm2, %v4001_v41 }
 0x73e   :  { %4019 = vst.msk [vmem:[%s8234_s11 + $0x20] sm:$0xff] %vm4014_vm2, %v3996_v49 }
 0x74f   :  { %v4499_v43 = vpop.f32.mrb[18].mxu1 }
 0x750   :  { %v4011_v16 = vadd.f32 %v4499_v43, %v4159_v4  ;;  %v4005_v38 = vpop.f32.mrb[19].mxu1 }
 0x751   :  { %v4006_v62 = vadd.f32 %v4159_v4, %v4005_v38 }
 0x752   :  { %4022 = vst.msk [vmem:[%s8234_s11 + $0x38] sm:$0xff] %vm4014_vm2, %v4011_v16 }
 0x753   :  { %4021 = vst.msk [vmem:[%s8234_s11 + $0x30] sm:$0xff] %vm4014_vm2, %v4006_v62 }

</bundles_post_ra>
